<compile_context>
chip_gen: v6e
topology: v6e:2x2x1
jax: 0.10.0
libtpu: 0.0.40
codegen_flags: <defaults>
</compile_context>

<pallas_src>
import functools

import jax
import jax.numpy as jnp
from jax.experimental import pallas as pl
from jax.experimental.pallas import tpu as pltpu


# ------------------------------ small helpers -------------------------------

def _vmem_spec():
    # whole-array block resident in VMEM, no grid
    return pl.BlockSpec(memory_space=pltpu.MemorySpace.VMEM)


def _layernorm(x, gamma, beta, eps=1e-5):
    """Row-wise LayerNorm in f32 (biased variance, matching torch/CLIP)."""
    mu = jnp.mean(x, axis=-1, keepdims=True)
    d = x - mu
    var = jnp.mean(d * d, axis=-1, keepdims=True)
    return d * jax.lax.rsqrt(var + eps) * gamma + beta


def _mm(a, b):
    """MXU matmul: bf16 operands, f32 accumulation."""
    return jnp.dot(a.astype(jnp.bfloat16), b.astype(jnp.bfloat16),
                   preferred_element_type=jnp.float32)


# ------------------------------ Pallas kernels ------------------------------

def _embed_kernel(patches_ref, pw_ref, clsrow_ref, posrest_ref, g_ref, b_ref, o_ref,
                  *, batch, n_patch):
    """conv1-as-matmul + class token + positional embedding + ln_pre, fused."""
    g, beta = g_ref[...], b_ref[...]
    tok = _mm(patches_ref[...], pw_ref[...])           # (B*Np, D)
    pos = posrest_ref[...]                             # (Np, D) = pos_emb[1:]
    # CLS row (class_emb + pos_emb[0]) is batch-independent -> layernorm once.
    cls_ln = _layernorm(clsrow_ref[...], g, beta)      # (1, D)
    for bi in range(batch):                            # static unroll, B tiny
        tb = tok[bi * n_patch:(bi + 1) * n_patch, :] + pos
        o_ref[bi, 0:n_patch, :] = _layernorm(tb, g, beta)
        # NOTE: the CLS token is stored LAST (index n_patch) instead of first.
        # CLIP's ViT attention is unmasked, so the encoder is permutation
        # equivariant; positions only enter via pos_emb (added with the original
        # indexing above), and the head reads token n_patch. Semantics identical,
        # but all sequence stores stay 8-sublane aligned.
        o_ref[bi, n_patch:n_patch + 1, :] = cls_ln


def _block_kernel(x_ref, ln1g_ref, ln1b_ref, qkvw_ref, qkvb_ref, outw_ref, outb_ref,
                  ln2g_ref, ln2b_ref, fc1w_ref, fc1b_ref, fc2w_ref, fc2b_ref,
                  o_ref, *, heads):
    """Whole CLIP residual attention block in one kernel, activations in VMEM."""
    B, S, D = x_ref.shape
    Dh = D // heads
    scale = 1.0 / (Dh ** 0.5)

    ln1g, ln1b = ln1g_ref[...], ln1b_ref[...]
    ln2g, ln2b = ln2g_ref[...], ln2b_ref[...]
    qkvw, qkvb = qkvw_ref[...], qkvb_ref[...]
    outb = outb_ref[...]
    fc1w, fc1b = fc1w_ref[...], fc1b_ref[...]
    fc2w, fc2b = fc2w_ref[...], fc2b_ref[...]

    for b in range(B):                                 # static unroll (B tiny)
        x = x_ref[b]                                   # (S, D) f32
        h = _layernorm(x, ln1g, ln1b)
        qkv = _mm(h, qkvw) + qkvb                      # (S, 3D)

        # Multi-head attention. The per-head concat is folded into the output
        # projection by accumulating attn_h @ out_w[h*Dh:(h+1)*Dh, :].
        acc = jnp.zeros((S, D), jnp.float32)
        for hh in range(heads):
            lo = hh * Dh
            q = qkv[:, lo:lo + Dh]
            k = qkv[:, D + lo:D + lo + Dh]
            v = qkv[:, 2 * D + lo:2 * D + lo + Dh]
            # q @ k^T via dot_general contracting last dims (no explicit transpose)
            s = jax.lax.dot_general(
                q.astype(jnp.bfloat16), k.astype(jnp.bfloat16),
                (((1,), (1,)), ((), ())),
                preferred_element_type=jnp.float32) * scale
            s = s - jnp.max(s, axis=-1, keepdims=True)
            p = jnp.exp(s)
            p = p * pl.reciprocal(jnp.sum(p, axis=-1, keepdims=True), approx=True)
            attn_h = _mm(p, v)                                     # (S, Dh)
            acc = acc + _mm(attn_h, outw_ref[lo:lo + Dh, :])       # (S, D)

        x1 = x + acc + outb                    # residual fused into epilogue
        h2 = _layernorm(x1, ln2g, ln2b)
        m = _mm(h2, fc1w) + fc1b
        m = m * jax.nn.sigmoid(1.702 * m)      # QuickGELU, kept in f32 on VPU/EUP
        y = _mm(m, fc2w) + fc2b
        o_ref[b] = x1 + y                      # second residual fused


def _head_kernel(x_ref, g_ref, b_ref, projw_ref, clsw_ref, clsb_ref, o_ref):
    """ln_post(CLS) -> visual projection (no bias) -> classifier (lane-padded)."""
    feat = _layernorm(x_ref[...], g_ref[...], b_ref[...])          # (B, D)
    feat = _mm(feat, projw_ref[...])                               # (B, out_dim)
    o_ref[...] = _mm(feat, clsw_ref[...]) + clsb_ref[...]          # (B, 128) dense lanes


# ------------------------------- model (glue) --------------------------------

def clip_finetuner_forward(params, x, *, heads, patch, num_classes):
    """x: (B, C, H, W) float32, NCHW like the PyTorch module."""
    B, C, H, W = x.shape
    gh, gw = H // patch, W // patch
    n_patch = gh * gw
    D = params["patch_w"].shape[1]
    S = n_patch + 1

    # conv1 (stride=patch, no bias) == patch extraction (XLA glue) + matmul (in kernel)
    patches = (x.reshape(B, C, gh, patch, gw, patch)
                 .transpose(0, 2, 4, 1, 3, 5)
                 .reshape(B * n_patch, C * patch * patch))

    cls_row = params["class_emb"] + params["pos_emb"][0:1]          # (1, D)
    pos_rest = params["pos_emb"][1:]                                # (Np, D)

    # fused: patch-embed matmul + class/pos embedding + ln_pre
    h = pl.pallas_call(
        functools.partial(_embed_kernel, batch=B, n_patch=n_patch),
        out_shape=jax.ShapeDtypeStruct((B, S, D), jnp.float32),
        in_specs=[_vmem_spec() for _ in range(6)],
        out_specs=_vmem_spec(),
    )(patches, params["patch_w"], cls_row, pos_rest,
      params["ln_pre_g"], params["ln_pre_b"])

    # fused transformer blocks: exactly one pallas_call per layer
    block_fn = functools.partial(_block_kernel, heads=heads)
    for blk in params["blocks"]:
        h = pl.pallas_call(
            block_fn,
            out_shape=jax.ShapeDtypeStruct((B, S, D), jnp.float32),
            in_specs=[_vmem_spec() for _ in range(13)],
            out_specs=_vmem_spec(),
        )(h, blk["ln1_g"], blk["ln1_b"], blk["qkv_w"], blk["qkv_b"],
          blk["out_w"], blk["out_b"], blk["ln2_g"], blk["ln2_b"],
          blk["fc1_w"], blk["fc1_b"], blk["fc2_w"], blk["fc2_b"])

    # fused head: ln_post + visual projection + classifier (128-lane padded output)
    cls_tok = h[:, n_patch, :]                   # CLS token is stored last internally
    logits_pad = pl.pallas_call(
        _head_kernel,
        out_shape=jax.ShapeDtypeStruct((B, params["cls_b_pad"].shape[1]), jnp.float32),
        in_specs=[_vmem_spec() for _ in range(6)],
        out_specs=_vmem_spec(),
    )(cls_tok, params["ln_post_g"], params["ln_post_b"], params["proj_w"],
      params["cls_w_pad"], params["cls_b_pad"])
    return logits_pad[:, :num_classes]


# ---------------------------- deterministic init -----------------------------

def init_params(key, *, width=32, heads=4, layers=2, patch=8, in_ch=3,
                out_dim=16, num_classes=5, grid_size=4, padded_classes=128):
    del heads  # static config, not a parameter

    def nrm(k, shape, scale=0.02):
        return scale * jax.random.normal(k, shape, dtype=jnp.float32)

    keys = iter(jax.random.split(key, 64))
    S = grid_size * grid_size + 1
    params = {
        "patch_w": nrm(next(keys), (in_ch * patch * patch, width)),
        "class_emb": nrm(next(keys), (1, width)),
        "pos_emb": nrm(next(keys), (S, width)),
        "ln_pre_g": jnp.ones((1, width), jnp.float32),
        "ln_pre_b": jnp.zeros((1, width), jnp.float32),
        "ln_post_g": jnp.ones((1, width), jnp.float32),
        "ln_post_b": jnp.zeros((1, width), jnp.float32),
        "proj_w": nrm(next(keys), (width, out_dim)),
        # classifier head stored lane-dense: (out_dim, 128) zero-padded past num_classes
        "cls_w_pad": jnp.zeros((out_dim, padded_classes), jnp.float32)
                        .at[:, :num_classes].set(nrm(next(keys), (out_dim, num_classes))),
        "cls_b_pad": jnp.zeros((1, padded_classes), jnp.float32),
        "blocks": [],
    }
    for _ in range(layers):
        params["blocks"].append({
            "ln1_g": jnp.ones((1, width), jnp.float32),
            "ln1_b": jnp.zeros((1, width), jnp.float32),
            "qkv_w": nrm(next(keys), (width, 3 * width)),
            "qkv_b": jnp.zeros((1, 3 * width), jnp.float32),
            "out_w": nrm(next(keys), (width, width)),
            "out_b": jnp.zeros((1, width), jnp.float32),
            "ln2_g": jnp.ones((1, width), jnp.float32),
            "ln2_b": jnp.zeros((1, width), jnp.float32),
            "fc1_w": nrm(next(keys), (width, 4 * width)),
            "fc1_b": jnp.zeros((1, 4 * width), jnp.float32),
            "fc2_w": nrm(next(keys), (4 * width, width)),
            "fc2_b": jnp.zeros((1, width), jnp.float32),
        })
    return params


if __name__ == "__main__":
    key = jax.random.PRNGKey(0)
    pkey, xkey = jax.random.split(key)
    # small ViT-B/32-style config: 32x32 image, patch 8 -> 16 patches + CLS, width 32
    params = init_params(pkey, width=32, heads=4, layers=2, patch=8,
                         in_ch=3, out_dim=16, num_classes=5, grid_size=4)
    x = jax.random.normal(xkey, (2, 3, 32, 32), dtype=jnp.float32)

    forward = jax.jit(functools.partial(clip_finetuner_forward,
                                        heads=4, patch=8, num_classes=5))
    logits = jax.block_until_ready(forward(params, x))
    assert logits.shape == (2, 5) and logits.dtype == jnp.float32
    print("KERNEL_OK")
</pallas_src>

<mosaic_0001>
module attributes {stable_mosaic.version = 11 : i64} {
  func.func @_embed_kernel(%arg0: memref<32x192xf32, #tpu.memory_space<vmem>>, %arg1: memref<192x32xf32, #tpu.memory_space<vmem>>, %arg2: memref<1x32xf32, #tpu.memory_space<vmem>>, %arg3: memref<16x32xf32, #tpu.memory_space<vmem>>, %arg4: memref<1x32xf32, #tpu.memory_space<vmem>>, %arg5: memref<1x32xf32, #tpu.memory_space<vmem>>, %arg6: memref<2x17x32xf32, #tpu.memory_space<vmem>>) attributes {dimension_semantics = [], scalar_prefetch = 0 : i64, scratch_operands = 0 : i64, tpu.core_type = #tpu.core_type<tc>} {
    %c0 = arith.constant 0 : index
    %c0_0 = arith.constant 0 : index
    %0 = vector.load %arg4[%c0, %c0_0] : memref<1x32xf32, #tpu.memory_space<vmem>>, vector<1x32xf32>
    %c0_1 = arith.constant 0 : index
    %c0_2 = arith.constant 0 : index
    %1 = vector.load %arg5[%c0_1, %c0_2] : memref<1x32xf32, #tpu.memory_space<vmem>>, vector<1x32xf32>
    %c0_3 = arith.constant 0 : index
    %c0_4 = arith.constant 0 : index
    %2 = vector.load %arg0[%c0_3, %c0_4] : memref<32x192xf32, #tpu.memory_space<vmem>>, vector<32x192xf32>
    %c0_5 = arith.constant 0 : index
    %c0_6 = arith.constant 0 : index
    %3 = vector.load %arg1[%c0_5, %c0_6] : memref<192x32xf32, #tpu.memory_space<vmem>>, vector<192x32xf32>
    %4 = arith.truncf %2 : vector<32x192xf32> to vector<32x192xbf16>
    %5 = arith.truncf %3 : vector<192x32xf32> to vector<192x32xbf16>
    %cst = arith.constant dense<0.000000e+00> : vector<32x32xf32>
    %6 = tpu.matmul %4, %5, %cst {dimension_numbers = #tpu.dot_dimension_numbers<[1], [0], [0], [1], [0, 0, 1, 1], [], []>} : vector<32x192xbf16>, vector<192x32xbf16>, vector<32x32xf32> -> vector<32x32xf32>
    %c0_7 = arith.constant 0 : index
    %c0_8 = arith.constant 0 : index
    %7 = vector.load %arg3[%c0_7, %c0_8] : memref<16x32xf32, #tpu.memory_space<vmem>>, vector<16x32xf32>
    %c0_9 = arith.constant 0 : index
    %c0_10 = arith.constant 0 : index
    %8 = vector.load %arg2[%c0_9, %c0_10] : memref<1x32xf32, #tpu.memory_space<vmem>>, vector<1x32xf32>
    %cst_11 = arith.constant dense<0.000000e+00> : vector<1xf32>
    %9 = vector.multi_reduction <add>, %8, %cst_11 [1] : vector<1x32xf32> to vector<1xf32>
    %10 = vector.shape_cast %9 : vector<1xf32> to vector<1x1xf32>
    %cst_12 = arith.constant 3.200000e+01 : f32
    %11 = vector.broadcast %cst_12 : f32 to vector<1x1xf32>
    %12 = arith.divf %10, %11 : vector<1x1xf32>
    %13 = vector.broadcast %12 : vector<1x1xf32> to vector<1x32xf32>
    %14 = arith.subf %8, %13 : vector<1x32xf32>
    %15 = arith.mulf %14, %14 : vector<1x32xf32>
    %cst_13 = arith.constant dense<0.000000e+00> : vector<1xf32>
    %16 = vector.multi_reduction <add>, %15, %cst_13 [1] : vector<1x32xf32> to vector<1xf32>
    %17 = vector.shape_cast %16 : vector<1xf32> to vector<1x1xf32>
    %cst_14 = arith.constant 3.200000e+01 : f32
    %18 = vector.broadcast %cst_14 : f32 to vector<1x1xf32>
    %19 = arith.divf %17, %18 : vector<1x1xf32>
    %cst_15 = arith.constant 9.99999974E-6 : f32
    %20 = vector.broadcast %cst_15 : f32 to vector<1x1xf32>
    %21 = arith.addf %19, %20 : vector<1x1xf32>
    %22 = math.rsqrt %21 : vector<1x1xf32>
    %23 = vector.broadcast %22 : vector<1x1xf32> to vector<1x32xf32>
    %24 = arith.mulf %14, %23 : vector<1x32xf32>
    %25 = arith.mulf %24, %0 : vector<1x32xf32>
    %26 = arith.addf %25, %1 : vector<1x32xf32>
    %27 = vector.extract_strided_slice %6 {offsets = [0, 0], sizes = [16, 32], strides = [1, 1]} : vector<32x32xf32> to vector<16x32xf32>
    %28 = arith.addf %27, %7 : vector<16x32xf32>
    %cst_16 = arith.constant dense<0.000000e+00> : vector<16xf32>
    %29 = vector.multi_reduction <add>, %28, %cst_16 [1] : vector<16x32xf32> to vector<16xf32>
    %30 = vector.shape_cast %29 : vector<16xf32> to vector<16x1xf32>
    %cst_17 = arith.constant 3.200000e+01 : f32
    %31 = vector.broadcast %cst_17 : f32 to vector<16x1xf32>
    %32 = arith.divf %30, %31 : vector<16x1xf32>
    %33 = vector.broadcast %32 : vector<16x1xf32> to vector<16x32xf32>
    %34 = arith.subf %28, %33 : vector<16x32xf32>
    %35 = arith.mulf %34, %34 : vector<16x32xf32>
    %cst_18 = arith.constant dense<0.000000e+00> : vector<16xf32>
    %36 = vector.multi_reduction <add>, %35, %cst_18 [1] : vector<16x32xf32> to vector<16xf32>
    %37 = vector.shape_cast %36 : vector<16xf32> to vector<16x1xf32>
    %cst_19 = arith.constant 3.200000e+01 : f32
    %38 = vector.broadcast %cst_19 : f32 to vector<16x1xf32>
    %39 = arith.divf %37, %38 : vector<16x1xf32>
    %cst_20 = arith.constant 9.99999974E-6 : f32
    %40 = vector.broadcast %cst_20 : f32 to vector<16x1xf32>
    %41 = arith.addf %39, %40 : vector<16x1xf32>
    %42 = math.rsqrt %41 : vector<16x1xf32>
    %43 = vector.broadcast %42 : vector<16x1xf32> to vector<16x32xf32>
    %44 = arith.mulf %34, %43 : vector<16x32xf32>
    %45 = vector.broadcast %0 : vector<1x32xf32> to vector<16x32xf32>
    %46 = arith.mulf %44, %45 : vector<16x32xf32>
    %47 = vector.broadcast %1 : vector<1x32xf32> to vector<16x32xf32>
    %48 = arith.addf %46, %47 : vector<16x32xf32>
    %c0_21 = arith.constant 0 : index
    %c0_22 = arith.constant 0 : index
    %c0_23 = arith.constant 0 : index
    %49 = vector.load %arg6[%c0_21, %c0_22, %c0_23] : memref<2x17x32xf32, #tpu.memory_space<vmem>>, vector<1x16x32xf32>
    %50 = vector.shape_cast %49 : vector<1x16x32xf32> to vector<16x32xf32>
    %51 = vector.shape_cast %48 : vector<16x32xf32> to vector<1x16x32xf32>
    tpu.vector_store %arg6[%c0_21, %c0_22, %c0_23], %51 {strides = array<i32>} : memref<2x17x32xf32, #tpu.memory_space<vmem>>, vector<1x16x32xf32>,
    %c0_24 = arith.constant 0 : index
    %c16 = arith.constant 16 : index
    %c0_25 = arith.constant 0 : index
    %52 = vector.load %arg6[%c0_24, %c16, %c0_25] : memref<2x17x32xf32, #tpu.memory_space<vmem>>, vector<1x1x32xf32>
    %53 = vector.shape_cast %52 : vector<1x1x32xf32> to vector<1x32xf32>
    %54 = vector.shape_cast %26 : vector<1x32xf32> to vector<1x1x32xf32>
    tpu.vector_store %arg6[%c0_24, %c16, %c0_25], %54 {strides = array<i32>} : memref<2x17x32xf32, #tpu.memory_space<vmem>>, vector<1x1x32xf32>,
    %55 = vector.extract_strided_slice %6 {offsets = [16, 0], sizes = [16, 32], strides = [1, 1]} : vector<32x32xf32> to vector<16x32xf32>
    %56 = arith.addf %55, %7 : vector<16x32xf32>
    %cst_26 = arith.constant dense<0.000000e+00> : vector<16xf32>
    %57 = vector.multi_reduction <add>, %56, %cst_26 [1] : vector<16x32xf32> to vector<16xf32>
    %58 = vector.shape_cast %57 : vector<16xf32> to vector<16x1xf32>
    %cst_27 = arith.constant 3.200000e+01 : f32
    %59 = vector.broadcast %cst_27 : f32 to vector<16x1xf32>
    %60 = arith.divf %58, %59 : vector<16x1xf32>
    %61 = vector.broadcast %60 : vector<16x1xf32> to vector<16x32xf32>
    %62 = arith.subf %56, %61 : vector<16x32xf32>
    %63 = arith.mulf %62, %62 : vector<16x32xf32>
    %cst_28 = arith.constant dense<0.000000e+00> : vector<16xf32>
    %64 = vector.multi_reduction <add>, %63, %cst_28 [1] : vector<16x32xf32> to vector<16xf32>
    %65 = vector.shape_cast %64 : vector<16xf32> to vector<16x1xf32>
    %cst_29 = arith.constant 3.200000e+01 : f32
    %66 = vector.broadcast %cst_29 : f32 to vector<16x1xf32>
    %67 = arith.divf %65, %66 : vector<16x1xf32>
    %cst_30 = arith.constant 9.99999974E-6 : f32
    %68 = vector.broadcast %cst_30 : f32 to vector<16x1xf32>
    %69 = arith.addf %67, %68 : vector<16x1xf32>
    %70 = math.rsqrt %69 : vector<16x1xf32>
    %71 = vector.broadcast %70 : vector<16x1xf32> to vector<16x32xf32>
    %72 = arith.mulf %62, %71 : vector<16x32xf32>
    %73 = vector.broadcast %0 : vector<1x32xf32> to vector<16x32xf32>
    %74 = arith.mulf %72, %73 : vector<16x32xf32>
    %75 = vector.broadcast %1 : vector<1x32xf32> to vector<16x32xf32>
    %76 = arith.addf %74, %75 : vector<16x32xf32>
    %c1 = arith.constant 1 : index
    %c0_31 = arith.constant 0 : index
    %c0_32 = arith.constant 0 : index
    %77 = vector.load %arg6[%c1, %c0_31, %c0_32] : memref<2x17x32xf32, #tpu.memory_space<vmem>>, vector<1x16x32xf32>
    %78 = vector.shape_cast %77 : vector<1x16x32xf32> to vector<16x32xf32>
    %79 = vector.shape_cast %76 : vector<16x32xf32> to vector<1x16x32xf32>
    tpu.vector_store %arg6[%c1, %c0_31, %c0_32], %79 {strides = array<i32>} : memref<2x17x32xf32, #tpu.memory_space<vmem>>, vector<1x16x32xf32>,
    %c1_33 = arith.constant 1 : index
    %c16_34 = arith.constant 16 : index
    %c0_35 = arith.constant 0 : index
    %80 = vector.load %arg6[%c1_33, %c16_34, %c0_35] : memref<2x17x32xf32, #tpu.memory_space<vmem>>, vector<1x1x32xf32>
    %81 = vector.shape_cast %80 : vector<1x1x32xf32> to vector<1x32xf32>
    %82 = vector.shape_cast %26 : vector<1x32xf32> to vector<1x1x32xf32>
    tpu.vector_store %arg6[%c1_33, %c16_34, %c0_35], %82 {strides = array<i32>} : memref<2x17x32xf32, #tpu.memory_space<vmem>>, vector<1x1x32xf32>,
    return
  }
}

module attributes {stable_mosaic.version = 11 : i64} {
  func.func @_head_kernel(%arg0: memref<2x32xf32, #tpu.memory_space<vmem>>, %arg1: memref<1x32xf32, #tpu.memory_space<vmem>>, %arg2: memref<1x32xf32, #tpu.memory_space<vmem>>, %arg3: memref<32x16xf32, #tpu.memory_space<vmem>>, %arg4: memref<16x128xf32, #tpu.memory_space<vmem>>, %arg5: memref<1x128xf32, #tpu.memory_space<vmem>>, %arg6: memref<2x128xf32, #tpu.memory_space<vmem>>) attributes {dimension_semantics = [], scalar_prefetch = 0 : i64, scratch_operands = 0 : i64, tpu.core_type = #tpu.core_type<tc>} {
    %c0 = arith.constant 0 : index
    %c0_0 = arith.constant 0 : index
    %0 = vector.load %arg0[%c0, %c0_0] : memref<2x32xf32, #tpu.memory_space<vmem>>, vector<2x32xf32>
    %c0_1 = arith.constant 0 : index
    %c0_2 = arith.constant 0 : index
    %1 = vector.load %arg1[%c0_1, %c0_2] : memref<1x32xf32, #tpu.memory_space<vmem>>, vector<1x32xf32>
    %c0_3 = arith.constant 0 : index
    %c0_4 = arith.constant 0 : index
    %2 = vector.load %arg2[%c0_3, %c0_4] : memref<1x32xf32, #tpu.memory_space<vmem>>, vector<1x32xf32>
    %cst = arith.constant dense<0.000000e+00> : vector<2xf32>
    %3 = vector.multi_reduction <add>, %0, %cst [1] : vector<2x32xf32> to vector<2xf32>
    %4 = vector.shape_cast %3 : vector<2xf32> to vector<2x1xf32>
    %cst_5 = arith.constant 3.200000e+01 : f32
    %5 = vector.broadcast %cst_5 : f32 to vector<2x1xf32>
    %6 = arith.divf %4, %5 : vector<2x1xf32>
    %7 = vector.broadcast %6 : vector<2x1xf32> to vector<2x32xf32>
    %8 = arith.subf %0, %7 : vector<2x32xf32>
    %9 = arith.mulf %8, %8 : vector<2x32xf32>
    %cst_6 = arith.constant dense<0.000000e+00> : vector<2xf32>
    %10 = vector.multi_reduction <add>, %9, %cst_6 [1] : vector<2x32xf32> to vector<2xf32>
    %11 = vector.shape_cast %10 : vector<2xf32> to vector<2x1xf32>
    %cst_7 = arith.constant 3.200000e+01 : f32
    %12 = vector.broadcast %cst_7 : f32 to vector<2x1xf32>
    %13 = arith.divf %11, %12 : vector<2x1xf32>
    %cst_8 = arith.constant 9.99999974E-6 : f32
    %14 = vector.broadcast %cst_8 : f32 to vector<2x1xf32>
    %15 = arith.addf %13, %14 : vector<2x1xf32>
    %16 = math.rsqrt %15 : vector<2x1xf32>
    %17 = vector.broadcast %16 : vector<2x1xf32> to vector<2x32xf32>
    %18 = arith.mulf %8, %17 : vector<2x32xf32>
    %19 = vector.broadcast %1 : vector<1x32xf32> to vector<2x32xf32>
    %20 = arith.mulf %18, %19 : vector<2x32xf32>
    %21 = vector.broadcast %2 : vector<1x32xf32> to vector<2x32xf32>
    %22 = arith.addf %20, %21 : vector<2x32xf32>
    %c0_9 = arith.constant 0 : index
    %c0_10 = arith.constant 0 : index
    %23 = vector.load %arg3[%c0_9, %c0_10] : memref<32x16xf32, #tpu.memory_space<vmem>>, vector<32x16xf32>
    %24 = arith.truncf %22 : vector<2x32xf32> to vector<2x32xbf16>
    %25 = arith.truncf %23 : vector<32x16xf32> to vector<32x16xbf16>
    %cst_11 = arith.constant dense<0.000000e+00> : vector<2x16xf32>
    %26 = tpu.matmul %24, %25, %cst_11 {dimension_numbers = #tpu.dot_dimension_numbers<[1], [0], [0], [1], [0, 0, 1, 1], [], []>} : vector<2x32xbf16>, vector<32x16xbf16>, vector<2x16xf32> -> vector<2x16xf32>
    %c0_12 = arith.constant 0 : index
    %c0_13 = arith.constant 0 : index
    %27 = vector.load %arg4[%c0_12, %c0_13] : memref<16x128xf32, #tpu.memory_space<vmem>>, vector<16x128xf32>
    %28 = arith.truncf %26 : vector<2x16xf32> to vector<2x16xbf16>
    %29 = arith.truncf %27 : vector<16x128xf32> to vector<16x128xbf16>
    %cst_14 = arith.constant dense<0.000000e+00> : vector<2x128xf32>
    %30 = tpu.matmul %28, %29, %cst_14 {dimension_numbers = #tpu.dot_dimension_numbers<[1], [0], [0], [1], [0, 0, 1, 1], [], []>} : vector<2x16xbf16>, vector<16x128xbf16>, vector<2x128xf32> -> vector<2x128xf32>
    %c0_15 = arith.constant 0 : index
    %c0_16 = arith.constant 0 : index
    %31 = vector.load %arg5[%c0_15, %c0_16] : memref<1x128xf32, #tpu.memory_space<vmem>>, vector<1x128xf32>
    %32 = vector.broadcast %31 : vector<1x128xf32> to vector<2x128xf32>
    %33 = arith.addf %30, %32 : vector<2x128xf32>
    %c0_17 = arith.constant 0 : index
    %c0_18 = arith.constant 0 : index
    %34 = vector.load %arg6[%c0_17, %c0_18] : memref<2x128xf32, #tpu.memory_space<vmem>>, vector<2x128xf32>
    tpu.vector_store %arg6[%c0_17, %c0_18], %33 {strides = array<i32>} : memref<2x128xf32, #tpu.memory_space<vmem>>, vector<2x128xf32>,
    return
  }
}

module attributes {stable_mosaic.version = 11 : i64} {
  func.func @_block_kernel(%arg0: memref<2x17x32xf32, #tpu.memory_space<vmem>>, %arg1: memref<1x32xf32, #tpu.memory_space<vmem>>, %arg2: memref<1x32xf32, #tpu.memory_space<vmem>>, %arg3: memref<32x96xf32, #tpu.memory_space<vmem>>, %arg4: memref<1x96xf32, #tpu.memory_space<vmem>>, %arg5: memref<32x32xf32, #tpu.memory_space<vmem>>, %arg6: memref<1x32xf32, #tpu.memory_space<vmem>>, %arg7: memref<1x32xf32, #tpu.memory_space<vmem>>, %arg8: memref<1x32xf32, #tpu.memory_space<vmem>>, %arg9: memref<32x128xf32, #tpu.memory_space<vmem>>, %arg10: memref<1x128xf32, #tpu.memory_space<vmem>>, %arg11: memref<128x32xf32, #tpu.memory_space<vmem>>, %arg12: memref<1x32xf32, #tpu.memory_space<vmem>>, %arg13: memref<2x17x32xf32, #tpu.memory_space<vmem>>) attributes {dimension_semantics = [], scalar_prefetch = 0 : i64, scratch_operands = 0 : i64, tpu.core_type = #tpu.core_type<tc>} {
    %c0 = arith.constant 0 : index
    %c0_0 = arith.constant 0 : index
    %0 = vector.load %arg1[%c0, %c0_0] : memref<1x32xf32, #tpu.memory_space<vmem>>, vector<1x32xf32>
    %c0_1 = arith.constant 0 : index
    %c0_2 = arith.constant 0 : index
    %1 = vector.load %arg2[%c0_1, %c0_2] : memref<1x32xf32, #tpu.memory_space<vmem>>, vector<1x32xf32>
    %c0_3 = arith.constant 0 : index
    %c0_4 = arith.constant 0 : index
    %2 = vector.load %arg7[%c0_3, %c0_4] : memref<1x32xf32, #tpu.memory_space<vmem>>, vector<1x32xf32>
    %c0_5 = arith.constant 0 : index
    %c0_6 = arith.constant 0 : index
    %3 = vector.load %arg8[%c0_5, %c0_6] : memref<1x32xf32, #tpu.memory_space<vmem>>, vector<1x32xf32>
    %c0_7 = arith.constant 0 : index
    %c0_8 = arith.constant 0 : index
    %4 = vector.load %arg3[%c0_7, %c0_8] : memref<32x96xf32, #tpu.memory_space<vmem>>, vector<32x96xf32>
    %c0_9 = arith.constant 0 : index
    %c0_10 = arith.constant 0 : index
    %5 = vector.load %arg4[%c0_9, %c0_10] : memref<1x96xf32, #tpu.memory_space<vmem>>, vector<1x96xf32>
    %c0_11 = arith.constant 0 : index
    %c0_12 = arith.constant 0 : index
    %6 = vector.load %arg6[%c0_11, %c0_12] : memref<1x32xf32, #tpu.memory_space<vmem>>, vector<1x32xf32>
    %c0_13 = arith.constant 0 : index
    %c0_14 = arith.constant 0 : index
    %7 = vector.load %arg9[%c0_13, %c0_14] : memref<32x128xf32, #tpu.memory_space<vmem>>, vector<32x128xf32>
    %c0_15 = arith.constant 0 : index
    %c0_16 = arith.constant 0 : index
    %8 = vector.load %arg10[%c0_15, %c0_16] : memref<1x128xf32, #tpu.memory_space<vmem>>, vector<1x128xf32>
    %c0_17 = arith.constant 0 : index
    %c0_18 = arith.constant 0 : index
    %9 = vector.load %arg11[%c0_17, %c0_18] : memref<128x32xf32, #tpu.memory_space<vmem>>, vector<128x32xf32>
    %c0_19 = arith.constant 0 : index
    %c0_20 = arith.constant 0 : index
    %10 = vector.load %arg12[%c0_19, %c0_20] : memref<1x32xf32, #tpu.memory_space<vmem>>, vector<1x32xf32>
    %c0_21 = arith.constant 0 : index
    %c0_22 = arith.constant 0 : index
    %c0_23 = arith.constant 0 : index
    %11 = vector.load %arg0[%c0_21, %c0_22, %c0_23] : memref<2x17x32xf32, #tpu.memory_space<vmem>>, vector<1x17x32xf32>
    %12 = vector.shape_cast %11 : vector<1x17x32xf32> to vector<17x32xf32>
    %cst = arith.constant dense<0.000000e+00> : vector<17xf32>
    %13 = vector.multi_reduction <add>, %12, %cst [1] : vector<17x32xf32> to vector<17xf32>
    %14 = vector.shape_cast %13 : vector<17xf32> to vector<17x1xf32>
    %cst_24 = arith.constant 3.200000e+01 : f32
    %15 = vector.broadcast %cst_24 : f32 to vector<17x1xf32>
    %16 = arith.divf %14, %15 : vector<17x1xf32>
    %17 = vector.broadcast %16 : vector<17x1xf32> to vector<17x32xf32>
    %18 = arith.subf %12, %17 : vector<17x32xf32>
    %19 = arith.mulf %18, %18 : vector<17x32xf32>
    %cst_25 = arith.constant dense<0.000000e+00> : vector<17xf32>
    %20 = vector.multi_reduction <add>, %19, %cst_25 [1] : vector<17x32xf32> to vector<17xf32>
    %21 = vector.shape_cast %20 : vector<17xf32> to vector<17x1xf32>
    %cst_26 = arith.constant 3.200000e+01 : f32
    %22 = vector.broadcast %cst_26 : f32 to vector<17x1xf32>
    %23 = arith.divf %21, %22 : vector<17x1xf32>
    %cst_27 = arith.constant 9.99999974E-6 : f32
    %24 = vector.broadcast %cst_27 : f32 to vector<17x1xf32>
    %25 = arith.addf %23, %24 : vector<17x1xf32>
    %26 = math.rsqrt %25 : vector<17x1xf32>
    %27 = vector.broadcast %26 : vector<17x1xf32> to vector<17x32xf32>
    %28 = arith.mulf %18, %27 : vector<17x32xf32>
    %29 = vector.broadcast %0 : vector<1x32xf32> to vector<17x32xf32>
    %30 = arith.mulf %28, %29 : vector<17x32xf32>
    %31 = vector.broadcast %1 : vector<1x32xf32> to vector<17x32xf32>
    %32 = arith.addf %30, %31 : vector<17x32xf32>
    %33 = arith.truncf %32 : vector<17x32xf32> to vector<17x32xbf16>
    %34 = arith.truncf %4 : vector<32x96xf32> to vector<32x96xbf16>
    %cst_28 = arith.constant dense<0.000000e+00> : vector<17x96xf32>
    %35 = tpu.matmul %33, %34, %cst_28 {dimension_numbers = #tpu.dot_dimension_numbers<[1], [0], [0], [1], [0, 0, 1, 1], [], []>} : vector<17x32xbf16>, vector<32x96xbf16>, vector<17x96xf32> -> vector<17x96xf32>
    %36 = vector.broadcast %5 : vector<1x96xf32> to vector<17x96xf32>
    %37 = arith.addf %35, %36 : vector<17x96xf32>
    %cst_29 = arith.constant 0.000000e+00 : f32
    %38 = vector.broadcast %cst_29 : f32 to vector<17x32xf32>
    %39 = vector.extract_strided_slice %37 {offsets = [0, 0], sizes = [17, 8], strides = [1, 1]} : vector<17x96xf32> to vector<17x8xf32>
    %40 = vector.extract_strided_slice %37 {offsets = [0, 32], sizes = [17, 8], strides = [1, 1]} : vector<17x96xf32> to vector<17x8xf32>
    %41 = vector.extract_strided_slice %37 {offsets = [0, 64], sizes = [17, 8], strides = [1, 1]} : vector<17x96xf32> to vector<17x8xf32>
    %42 = arith.truncf %39 : vector<17x8xf32> to vector<17x8xbf16>
    %43 = arith.truncf %40 : vector<17x8xf32> to vector<17x8xbf16>
    %cst_30 = arith.constant dense<0.000000e+00> : vector<17x17xf32>
    %44 = tpu.matmul %42, %43, %cst_30 {dimension_numbers = #tpu.dot_dimension_numbers<[1], [1], [0], [0], [0, 0, 1, 0], [], []>} : vector<17x8xbf16>, vector<17x8xbf16>, vector<17x17xf32> -> vector<17x17xf32>
    %cst_31 = arith.constant 0.353553385 : f32
    %45 = vector.broadcast %cst_31 : f32 to vector<17x17xf32>
    %46 = arith.mulf %44, %45 : vector<17x17xf32>
    %cst_32 = arith.constant dense<0xFF800000> : vector<17xf32>
    %47 = vector.multi_reduction <maximumf>, %46, %cst_32 [1] : vector<17x17xf32> to vector<17xf32>
    %48 = vector.shape_cast %47 : vector<17xf32> to vector<17x1xf32>
    %49 = vector.broadcast %48 : vector<17x1xf32> to vector<17x17xf32>
    %50 = arith.subf %46, %49 : vector<17x17xf32>
    %51 = math.exp %50 : vector<17x17xf32>
    %cst_33 = arith.constant dense<0.000000e+00> : vector<17xf32>
    %52 = vector.multi_reduction <add>, %51, %cst_33 [1] : vector<17x17xf32> to vector<17xf32>
    %53 = vector.shape_cast %52 : vector<17xf32> to vector<17x1xf32>
    %54 = tpu.reciprocal %53 {approx = true} : vector<17x1xf32> -> vector<17x1xf32>
    %55 = vector.broadcast %54 : vector<17x1xf32> to vector<17x17xf32>
    %56 = arith.mulf %51, %55 : vector<17x17xf32>
    %57 = arith.truncf %56 : vector<17x17xf32> to vector<17x17xbf16>
    %58 = arith.truncf %41 : vector<17x8xf32> to vector<17x8xbf16>
    %cst_34 = arith.constant dense<0.000000e+00> : vector<17x8xf32>
    %59 = tpu.matmul %57, %58, %cst_34 {dimension_numbers = #tpu.dot_dimension_numbers<[1], [0], [0], [1], [0, 0, 1, 1], [], []>} : vector<17x17xbf16>, vector<17x8xbf16>, vector<17x8xf32> -> vector<17x8xf32>
    %c0_35 = arith.constant 0 : index
    %c0_36 = arith.constant 0 : index
    %60 = vector.load %arg5[%c0_35, %c0_36] : memref<32x32xf32, #tpu.memory_space<vmem>>, vector<8x32xf32>
    %61 = arith.truncf %59 : vector<17x8xf32> to vector<17x8xbf16>
    %62 = arith.truncf %60 : vector<8x32xf32> to vector<8x32xbf16>
    %cst_37 = arith.constant dense<0.000000e+00> : vector<17x32xf32>
    %63 = tpu.matmul %61, %62, %cst_37 {dimension_numbers = #tpu.dot_dimension_numbers<[1], [0], [0], [1], [0, 0, 1, 1], [], []>} : vector<17x8xbf16>, vector<8x32xbf16>, vector<17x32xf32> -> vector<17x32xf32>
    %64 = arith.addf %38, %63 : vector<17x32xf32>
    %65 = vector.extract_strided_slice %37 {offsets = [0, 8], sizes = [17, 8], strides = [1, 1]} : vector<17x96xf32> to vector<17x8xf32>
    %66 = vector.extract_strided_slice %37 {offsets = [0, 40], sizes = [17, 8], strides = [1, 1]} : vector<17x96xf32> to vector<17x8xf32>
    %67 = vector.extract_strided_slice %37 {offsets = [0, 72], sizes = [17, 8], strides = [1, 1]} : vector<17x96xf32> to vector<17x8xf32>
    %68 = arith.truncf %65 : vector<17x8xf32> to vector<17x8xbf16>
    %69 = arith.truncf %66 : vector<17x8xf32> to vector<17x8xbf16>
    %cst_38 = arith.constant dense<0.000000e+00> : vector<17x17xf32>
    %70 = tpu.matmul %68, %69, %cst_38 {dimension_numbers = #tpu.dot_dimension_numbers<[1], [1], [0], [0], [0, 0, 1, 0], [], []>} : vector<17x8xbf16>, vector<17x8xbf16>, vector<17x17xf32> -> vector<17x17xf32>
    %cst_39 = arith.constant 0.353553385 : f32
    %71 = vector.broadcast %cst_39 : f32 to vector<17x17xf32>
    %72 = arith.mulf %70, %71 : vector<17x17xf32>
    %cst_40 = arith.constant dense<0xFF800000> : vector<17xf32>
    %73 = vector.multi_reduction <maximumf>, %72, %cst_40 [1] : vector<17x17xf32> to vector<17xf32>
    %74 = vector.shape_cast %73 : vector<17xf32> to vector<17x1xf32>
    %75 = vector.broadcast %74 : vector<17x1xf32> to vector<17x17xf32>
    %76 = arith.subf %72, %75 : vector<17x17xf32>
    %77 = math.exp %76 : vector<17x17xf32>
    %cst_41 = arith.constant dense<0.000000e+00> : vector<17xf32>
    %78 = vector.multi_reduction <add>, %77, %cst_41 [1] : vector<17x17xf32> to vector<17xf32>
    %79 = vector.shape_cast %78 : vector<17xf32> to vector<17x1xf32>
    %80 = tpu.reciprocal %79 {approx = true} : vector<17x1xf32> -> vector<17x1xf32>
    %81 = vector.broadcast %80 : vector<17x1xf32> to vector<17x17xf32>
    %82 = arith.mulf %77, %81 : vector<17x17xf32>
    %83 = arith.truncf %82 : vector<17x17xf32> to vector<17x17xbf16>
    %84 = arith.truncf %67 : vector<17x8xf32> to vector<17x8xbf16>
    %cst_42 = arith.constant dense<0.000000e+00> : vector<17x8xf32>
    %85 = tpu.matmul %83, %84, %cst_42 {dimension_numbers = #tpu.dot_dimension_numbers<[1], [0], [0], [1], [0, 0, 1, 1], [], []>} : vector<17x17xbf16>, vector<17x8xbf16>, vector<17x8xf32> -> vector<17x8xf32>
    %c8 = arith.constant 8 : index
    %c0_43 = arith.constant 0 : index
    %86 = vector.load %arg5[%c8, %c0_43] : memref<32x32xf32, #tpu.memory_space<vmem>>, vector<8x32xf32>
    %87 = arith.truncf %85 : vector<17x8xf32> to vector<17x8xbf16>
    %88 = arith.truncf %86 : vector<8x32xf32> to vector<8x32xbf16>
    %cst_44 = arith.constant dense<0.000000e+00> : vector<17x32xf32>
    %89 = tpu.matmul %87, %88, %cst_44 {dimension_numbers = #tpu.dot_dimension_numbers<[1], [0], [0], [1], [0, 0, 1, 1], [], []>} : vector<17x8xbf16>, vector<8x32xbf16>, vector<17x32xf32> -> vector<17x32xf32>
    %90 = arith.addf %64, %89 : vector<17x32xf32>
    %91 = vector.extract_strided_slice %37 {offsets = [0, 16], sizes = [17, 8], strides = [1, 1]} : vector<17x96xf32> to vector<17x8xf32>
    %92 = vector.extract_strided_slice %37 {offsets = [0, 48], sizes = [17, 8], strides = [1, 1]} : vector<17x96xf32> to vector<17x8xf32>
    %93 = vector.extract_strided_slice %37 {offsets = [0, 80], sizes = [17, 8], strides = [1, 1]} : vector<17x96xf32> to vector<17x8xf32>
    %94 = arith.truncf %91 : vector<17x8xf32> to vector<17x8xbf16>
    %95 = arith.truncf %92 : vector<17x8xf32> to vector<17x8xbf16>
    %cst_45 = arith.constant dense<0.000000e+00> : vector<17x17xf32>
    %96 = tpu.matmul %94, %95, %cst_45 {dimension_numbers = #tpu.dot_dimension_numbers<[1], [1], [0], [0], [0, 0, 1, 0], [], []>} : vector<17x8xbf16>, vector<17x8xbf16>, vector<17x17xf32> -> vector<17x17xf32>
    %cst_46 = arith.constant 0.353553385 : f32
    %97 = vector.broadcast %cst_46 : f32 to vector<17x17xf32>
    %98 = arith.mulf %96, %97 : vector<17x17xf32>
    %cst_47 = arith.constant dense<0xFF800000> : vector<17xf32>
    %99 = vector.multi_reduction <maximumf>, %98, %cst_47 [1] : vector<17x17xf32> to vector<17xf32>
    %100 = vector.shape_cast %99 : vector<17xf32> to vector<17x1xf32>
    %101 = vector.broadcast %100 : vector<17x1xf32> to vector<17x17xf32>
    %102 = arith.subf %98, %101 : vector<17x17xf32>
    %103 = math.exp %102 : vector<17x17xf32>
    %cst_48 = arith.constant dense<0.000000e+00> : vector<17xf32>
    %104 = vector.multi_reduction <add>, %103, %cst_48 [1] : vector<17x17xf32> to vector<17xf32>
    %105 = vector.shape_cast %104 : vector<17xf32> to vector<17x1xf32>
    %106 = tpu.reciprocal %105 {approx = true} : vector<17x1xf32> -> vector<17x1xf32>
    %107 = vector.broadcast %106 : vector<17x1xf32> to vector<17x17xf32>
    %108 = arith.mulf %103, %107 : vector<17x17xf32>
    %109 = arith.truncf %108 : vector<17x17xf32> to vector<17x17xbf16>
    %110 = arith.truncf %93 : vector<17x8xf32> to vector<17x8xbf16>
    %cst_49 = arith.constant dense<0.000000e+00> : vector<17x8xf32>
    %111 = tpu.matmul %109, %110, %cst_49 {dimension_numbers = #tpu.dot_dimension_numbers<[1], [0], [0], [1], [0, 0, 1, 1], [], []>} : vector<17x17xbf16>, vector<17x8xbf16>, vector<17x8xf32> -> vector<17x8xf32>
    %c16 = arith.constant 16 : index
    %c0_50 = arith.constant 0 : index
    %112 = vector.load %arg5[%c16, %c0_50] : memref<32x32xf32, #tpu.memory_space<vmem>>, vector<8x32xf32>
    %113 = arith.truncf %111 : vector<17x8xf32> to vector<17x8xbf16>
    %114 = arith.truncf %112 : vector<8x32xf32> to vector<8x32xbf16>
    %cst_51 = arith.constant dense<0.000000e+00> : vector<17x32xf32>
    %115 = tpu.matmul %113, %114, %cst_51 {dimension_numbers = #tpu.dot_dimension_numbers<[1], [0], [0], [1], [0, 0, 1, 1], [], []>} : vector<17x8xbf16>, vector<8x32xbf16>, vector<17x32xf32> -> vector<17x32xf32>
    %116 = arith.addf %90, %115 : vector<17x32xf32>
    %117 = vector.extract_strided_slice %37 {offsets = [0, 24], sizes = [17, 8], strides = [1, 1]} : vector<17x96xf32> to vector<17x8xf32>
    %118 = vector.extract_strided_slice %37 {offsets = [0, 56], sizes = [17, 8], strides = [1, 1]} : vector<17x96xf32> to vector<17x8xf32>
    %119 = vector.extract_strided_slice %37 {offsets = [0, 88], sizes = [17, 8], strides = [1, 1]} : vector<17x96xf32> to vector<17x8xf32>
    %120 = arith.truncf %117 : vector<17x8xf32> to vector<17x8xbf16>
    %121 = arith.truncf %118 : vector<17x8xf32> to vector<17x8xbf16>
    %cst_52 = arith.constant dense<0.000000e+00> : vector<17x17xf32>
    %122 = tpu.matmul %120, %121, %cst_52 {dimension_numbers = #tpu.dot_dimension_numbers<[1], [1], [0], [0], [0, 0, 1, 0], [], []>} : vector<17x8xbf16>, vector<17x8xbf16>, vector<17x17xf32> -> vector<17x17xf32>
    %cst_53 = arith.constant 0.353553385 : f32
    %123 = vector.broadcast %cst_53 : f32 to vector<17x17xf32>
    %124 = arith.mulf %122, %123 : vector<17x17xf32>
    %cst_54 = arith.constant dense<0xFF800000> : vector<17xf32>
    %125 = vector.multi_reduction <maximumf>, %124, %cst_54 [1] : vector<17x17xf32> to vector<17xf32>
    %126 = vector.shape_cast %125 : vector<17xf32> to vector<17x1xf32>
    %127 = vector.broadcast %126 : vector<17x1xf32> to vector<17x17xf32>
    %128 = arith.subf %124, %127 : vector<17x17xf32>
    %129 = math.exp %128 : vector<17x17xf32>
    %cst_55 = arith.constant dense<0.000000e+00> : vector<17xf32>
    %130 = vector.multi_reduction <add>, %129, %cst_55 [1] : vector<17x17xf32> to vector<17xf32>
    %131 = vector.shape_cast %130 : vector<17xf32> to vector<17x1xf32>
    %132 = tpu.reciprocal %131 {approx = true} : vector<17x1xf32> -> vector<17x1xf32>
    %133 = vector.broadcast %132 : vector<17x1xf32> to vector<17x17xf32>
    %134 = arith.mulf %129, %133 : vector<17x17xf32>
    %135 = arith.truncf %134 : vector<17x17xf32> to vector<17x17xbf16>
    %136 = arith.truncf %119 : vector<17x8xf32> to vector<17x8xbf16>
    %cst_56 = arith.constant dense<0.000000e+00> : vector<17x8xf32>
    %137 = tpu.matmul %135, %136, %cst_56 {dimension_numbers = #tpu.dot_dimension_numbers<[1], [0], [0], [1], [0, 0, 1, 1], [], []>} : vector<17x17xbf16>, vector<17x8xbf16>, vector<17x8xf32> -> vector<17x8xf32>
    %c24 = arith.constant 24 : index
    %c0_57 = arith.constant 0 : index
    %138 = vector.load %arg5[%c24, %c0_57] : memref<32x32xf32, #tpu.memory_space<vmem>>, vector<8x32xf32>
    %139 = arith.truncf %137 : vector<17x8xf32> to vector<17x8xbf16>
    %140 = arith.truncf %138 : vector<8x32xf32> to vector<8x32xbf16>
    %cst_58 = arith.constant dense<0.000000e+00> : vector<17x32xf32>
    %141 = tpu.matmul %139, %140, %cst_58 {dimension_numbers = #tpu.dot_dimension_numbers<[1], [0], [0], [1], [0, 0, 1, 1], [], []>} : vector<17x8xbf16>, vector<8x32xbf16>, vector<17x32xf32> -> vector<17x32xf32>
    %142 = arith.addf %116, %141 : vector<17x32xf32>
    %143 = arith.addf %12, %142 : vector<17x32xf32>
    %144 = vector.broadcast %6 : vector<1x32xf32> to vector<17x32xf32>
    %145 = arith.addf %143, %144 : vector<17x32xf32>
    %cst_59 = arith.constant dense<0.000000e+00> : vector<17xf32>
    %146 = vector.multi_reduction <add>, %145, %cst_59 [1] : vector<17x32xf32> to vector<17xf32>
    %147 = vector.shape_cast %146 : vector<17xf32> to vector<17x1xf32>
    %cst_60 = arith.constant 3.200000e+01 : f32
    %148 = vector.broadcast %cst_60 : f32 to vector<17x1xf32>
    %149 = arith.divf %147, %148 : vector<17x1xf32>
    %150 = vector.broadcast %149 : vector<17x1xf32> to vector<17x32xf32>
    %151 = arith.subf %145, %150 : vector<17x32xf32>
    %152 = arith.mulf %151, %151 : vector<17x32xf32>
    %cst_61 = arith.constant dense<0.000000e+00> : vector<17xf32>
    %153 = vector.multi_reduction <add>, %152, %cst_61 [1] : vector<17x32xf32> to vector<17xf32>
    %154 = vector.shape_cast %153 : vector<17xf32> to vector<17x1xf32>
    %cst_62 = arith.constant 3.200000e+01 : f32
    %155 = vector.broadcast %cst_62 : f32 to vector<17x1xf32>
    %156 = arith.divf %154, %155 : vector<17x1xf32>
    %cst_63 = arith.constant 9.99999974E-6 : f32
    %157 = vector.broadcast %cst_63 : f32 to vector<17x1xf32>
    %158 = arith.addf %156, %157 : vector<17x1xf32>
    %159 = math.rsqrt %158 : vector<17x1xf32>
    %160 = vector.broadcast %159 : vector<17x1xf32> to vector<17x32xf32>
    %161 = arith.mulf %151, %160 : vector<17x32xf32>
    %162 = vector.broadcast %2 : vector<1x32xf32> to vector<17x32xf32>
    %163 = arith.mulf %161, %162 : vector<17x32xf32>
    %164 = vector.broadcast %3 : vector<1x32xf32> to vector<17x32xf32>
    %165 = arith.addf %163, %164 : vector<17x32xf32>
    %166 = arith.truncf %165 : vector<17x32xf32> to vector<17x32xbf16>
    %167 = arith.truncf %7 : vector<32x128xf32> to vector<32x128xbf16>
    %cst_64 = arith.constant dense<0.000000e+00> : vector<17x128xf32>
    %168 = tpu.matmul %166, %167, %cst_64 {dimension_numbers = #tpu.dot_dimension_numbers<[1], [0], [0], [1], [0, 0, 1, 1], [], []>} : vector<17x32xbf16>, vector<32x128xbf16>, vector<17x128xf32> -> vector<17x128xf32>
    %169 = vector.broadcast %8 : vector<1x128xf32> to vector<17x128xf32>
    %170 = arith.addf %168, %169 : vector<17x128xf32>
    %cst_65 = arith.constant 1.702000e+00 : f32
    %171 = vector.broadcast %cst_65 : f32 to vector<17x128xf32>
    %172 = arith.mulf %171, %170 : vector<17x128xf32>
    %173 = arith.negf %172 : vector<17x128xf32>
    %174 = math.exp %173 : vector<17x128xf32>
    %cst_66 = arith.constant 1.000000e+00 : f32
    %175 = vector.broadcast %cst_66 : f32 to vector<17x128xf32>
    %176 = arith.addf %175, %174 : vector<17x128xf32>
    %177 = arith.divf %175, %176 : vector<17x128xf32>
    %178 = arith.mulf %170, %177 : vector<17x128xf32>
    %179 = arith.truncf %178 : vector<17x128xf32> to vector<17x128xbf16>
    %180 = arith.truncf %9 : vector<128x32xf32> to vector<128x32xbf16>
    %cst_67 = arith.constant dense<0.000000e+00> : vector<17x32xf32>
    %181 = tpu.matmul %179, %180, %cst_67 {dimension_numbers = #tpu.dot_dimension_numbers<[1], [0], [0], [1], [0, 0, 1, 1], [], []>} : vector<17x128xbf16>, vector<128x32xbf16>, vector<17x32xf32> -> vector<17x32xf32>
    %182 = vector.broadcast %10 : vector<1x32xf32> to vector<17x32xf32>
    %183 = arith.addf %181, %182 : vector<17x32xf32>
    %184 = arith.addf %145, %183 : vector<17x32xf32>
    %c0_68 = arith.constant 0 : index
    %c0_69 = arith.constant 0 : index
    %c0_70 = arith.constant 0 : index
    %185 = vector.load %arg13[%c0_68, %c0_69, %c0_70] : memref<2x17x32xf32, #tpu.memory_space<vmem>>, vector<1x17x32xf32>
    %186 = vector.shape_cast %185 : vector<1x17x32xf32> to vector<17x32xf32>
    %187 = vector.shape_cast %184 : vector<17x32xf32> to vector<1x17x32xf32>
    tpu.vector_store %arg13[%c0_68, %c0_69, %c0_70], %187 {strides = array<i32>} : memref<2x17x32xf32, #tpu.memory_space<vmem>>, vector<1x17x32xf32>,
    %c1 = arith.constant 1 : index
    %c0_71 = arith.constant 0 : index
    %c0_72 = arith.constant 0 : index
    %188 = vector.load %arg0[%c1, %c0_71, %c0_72] : memref<2x17x32xf32, #tpu.memory_space<vmem>>, vector<1x17x32xf32>
    %189 = vector.shape_cast %188 : vector<1x17x32xf32> to vector<17x32xf32>
    %cst_73 = arith.constant dense<0.000000e+00> : vector<17xf32>
    %190 = vector.multi_reduction <add>, %189, %cst_73 [1] : vector<17x32xf32> to vector<17xf32>
    %191 = vector.shape_cast %190 : vector<17xf32> to vector<17x1xf32>
    %cst_74 = arith.constant 3.200000e+01 : f32
    %192 = vector.broadcast %cst_74 : f32 to vector<17x1xf32>
    %193 = arith.divf %191, %192 : vector<17x1xf32>
    %194 = vector.broadcast %193 : vector<17x1xf32> to vector<17x32xf32>
    %195 = arith.subf %189, %194 : vector<17x32xf32>
    %196 = arith.mulf %195, %195 : vector<17x32xf32>
    %cst_75 = arith.constant dense<0.000000e+00> : vector<17xf32>
    %197 = vector.multi_reduction <add>, %196, %cst_75 [1] : vector<17x32xf32> to vector<17xf32>
    %198 = vector.shape_cast %197 : vector<17xf32> to vector<17x1xf32>
    %cst_76 = arith.constant 3.200000e+01 : f32
    %199 = vector.broadcast %cst_76 : f32 to vector<17x1xf32>
    %200 = arith.divf %198, %199 : vector<17x1xf32>
    %cst_77 = arith.constant 9.99999974E-6 : f32
    %201 = vector.broadcast %cst_77 : f32 to vector<17x1xf32>
    %202 = arith.addf %200, %201 : vector<17x1xf32>
    %203 = math.rsqrt %202 : vector<17x1xf32>
    %204 = vector.broadcast %203 : vector<17x1xf32> to vector<17x32xf32>
    %205 = arith.mulf %195, %204 : vector<17x32xf32>
    %206 = vector.broadcast %0 : vector<1x32xf32> to vector<17x32xf32>
    %207 = arith.mulf %205, %206 : vector<17x32xf32>
    %208 = vector.broadcast %1 : vector<1x32xf32> to vector<17x32xf32>
    %209 = arith.addf %207, %208 : vector<17x32xf32>
    %210 = arith.truncf %209 : vector<17x32xf32> to vector<17x32xbf16>
    %211 = arith.truncf %4 : vector<32x96xf32> to vector<32x96xbf16>
    %cst_78 = arith.constant dense<0.000000e+00> : vector<17x96xf32>
    %212 = tpu.matmul %210, %211, %cst_78 {dimension_numbers = #tpu.dot_dimension_numbers<[1], [0], [0], [1], [0, 0, 1, 1], [], []>} : vector<17x32xbf16>, vector<32x96xbf16>, vector<17x96xf32> -> vector<17x96xf32>
    %213 = vector.broadcast %5 : vector<1x96xf32> to vector<17x96xf32>
    %214 = arith.addf %212, %213 : vector<17x96xf32>
    %cst_79 = arith.constant 0.000000e+00 : f32
    %215 = vector.broadcast %cst_79 : f32 to vector<17x32xf32>
    %216 = vector.extract_strided_slice %214 {offsets = [0, 0], sizes = [17, 8], strides = [1, 1]} : vector<17x96xf32> to vector<17x8xf32>
    %217 = vector.extract_strided_slice %214 {offsets = [0, 32], sizes = [17, 8], strides = [1, 1]} : vector<17x96xf32> to vector<17x8xf32>
    %218 = vector.extract_strided_slice %214 {offsets = [0, 64], sizes = [17, 8], strides = [1, 1]} : vector<17x96xf32> to vector<17x8xf32>
    %219 = arith.truncf %216 : vector<17x8xf32> to vector<17x8xbf16>
    %220 = arith.truncf %217 : vector<17x8xf32> to vector<17x8xbf16>
    %cst_80 = arith.constant dense<0.000000e+00> : vector<17x17xf32>
    %221 = tpu.matmul %219, %220, %cst_80 {dimension_numbers = #tpu.dot_dimension_numbers<[1], [1], [0], [0], [0, 0, 1, 0], [], []>} : vector<17x8xbf16>, vector<17x8xbf16>, vector<17x17xf32> -> vector<17x17xf32>
    %cst_81 = arith.constant 0.353553385 : f32
    %222 = vector.broadcast %cst_81 : f32 to vector<17x17xf32>
    %223 = arith.mulf %221, %222 : vector<17x17xf32>
    %cst_82 = arith.constant dense<0xFF800000> : vector<17xf32>
    %224 = vector.multi_reduction <maximumf>, %223, %cst_82 [1] : vector<17x17xf32> to vector<17xf32>
    %225 = vector.shape_cast %224 : vector<17xf32> to vector<17x1xf32>
    %226 = vector.broadcast %225 : vector<17x1xf32> to vector<17x17xf32>
    %227 = arith.subf %223, %226 : vector<17x17xf32>
    %228 = math.exp %227 : vector<17x17xf32>
    %cst_83 = arith.constant dense<0.000000e+00> : vector<17xf32>
    %229 = vector.multi_reduction <add>, %228, %cst_83 [1] : vector<17x17xf32> to vector<17xf32>
    %230 = vector.shape_cast %229 : vector<17xf32> to vector<17x1xf32>
    %231 = tpu.reciprocal %230 {approx = true} : vector<17x1xf32> -> vector<17x1xf32>
    %232 = vector.broadcast %231 : vector<17x1xf32> to vector<17x17xf32>
    %233 = arith.mulf %228, %232 : vector<17x17xf32>
    %234 = arith.truncf %233 : vector<17x17xf32> to vector<17x17xbf16>
    %235 = arith.truncf %218 : vector<17x8xf32> to vector<17x8xbf16>
    %cst_84 = arith.constant dense<0.000000e+00> : vector<17x8xf32>
    %236 = tpu.matmul %234, %235, %cst_84 {dimension_numbers = #tpu.dot_dimension_numbers<[1], [0], [0], [1], [0, 0, 1, 1], [], []>} : vector<17x17xbf16>, vector<17x8xbf16>, vector<17x8xf32> -> vector<17x8xf32>
    %c0_85 = arith.constant 0 : index
    %c0_86 = arith.constant 0 : index
    %237 = vector.load %arg5[%c0_85, %c0_86] : memref<32x32xf32, #tpu.memory_space<vmem>>, vector<8x32xf32>
    %238 = arith.truncf %236 : vector<17x8xf32> to vector<17x8xbf16>
    %239 = arith.truncf %237 : vector<8x32xf32> to vector<8x32xbf16>
    %cst_87 = arith.constant dense<0.000000e+00> : vector<17x32xf32>
    %240 = tpu.matmul %238, %239, %cst_87 {dimension_numbers = #tpu.dot_dimension_numbers<[1], [0], [0], [1], [0, 0, 1, 1], [], []>} : vector<17x8xbf16>, vector<8x32xbf16>, vector<17x32xf32> -> vector<17x32xf32>
    %241 = arith.addf %215, %240 : vector<17x32xf32>
    %242 = vector.extract_strided_slice %214 {offsets = [0, 8], sizes = [17, 8], strides = [1, 1]} : vector<17x96xf32> to vector<17x8xf32>
    %243 = vector.extract_strided_slice %214 {offsets = [0, 40], sizes = [17, 8], strides = [1, 1]} : vector<17x96xf32> to vector<17x8xf32>
    %244 = vector.extract_strided_slice %214 {offsets = [0, 72], sizes = [17, 8], strides = [1, 1]} : vector<17x96xf32> to vector<17x8xf32>
    %245 = arith.truncf %242 : vector<17x8xf32> to vector<17x8xbf16>
    %246 = arith.truncf %243 : vector<17x8xf32> to vector<17x8xbf16>
    %cst_88 = arith.constant dense<0.000000e+00> : vector<17x17xf32>
    %247 = tpu.matmul %245, %246, %cst_88 {dimension_numbers = #tpu.dot_dimension_numbers<[1], [1], [0], [0], [0, 0, 1, 0], [], []>} : vector<17x8xbf16>, vector<17x8xbf16>, vector<17x17xf32> -> vector<17x17xf32>
    %cst_89 = arith.constant 0.353553385 : f32
    %248 = vector.broadcast %cst_89 : f32 to vector<17x17xf32>
    %249 = arith.mulf %247, %248 : vector<17x17xf32>
    %cst_90 = arith.constant dense<0xFF800000> : vector<17xf32>
    %250 = vector.multi_reduction <maximumf>, %249, %cst_90 [1] : vector<17x17xf32> to vector<17xf32>
    %251 = vector.shape_cast %250 : vector<17xf32> to vector<17x1xf32>
    %252 = vector.broadcast %251 : vector<17x1xf32> to vector<17x17xf32>
    %253 = arith.subf %249, %252 : vector<17x17xf32>
    %254 = math.exp %253 : vector<17x17xf32>
    %cst_91 = arith.constant dense<0.000000e+00> : vector<17xf32>
    %255 = vector.multi_reduction <add>, %254, %cst_91 [1] : vector<17x17xf32> to vector<17xf32>
    %256 = vector.shape_cast %255 : vector<17xf32> to vector<17x1xf32>
    %257 = tpu.reciprocal %256 {approx = true} : vector<17x1xf32> -> vector<17x1xf32>
    %258 = vector.broadcast %257 : vector<17x1xf32> to vector<17x17xf32>
    %259 = arith.mulf %254, %258 : vector<17x17xf32>
    %260 = arith.truncf %259 : vector<17x17xf32> to vector<17x17xbf16>
    %261 = arith.truncf %244 : vector<17x8xf32> to vector<17x8xbf16>
    %cst_92 = arith.constant dense<0.000000e+00> : vector<17x8xf32>
    %262 = tpu.matmul %260, %261, %cst_92 {dimension_numbers = #tpu.dot_dimension_numbers<[1], [0], [0], [1], [0, 0, 1, 1], [], []>} : vector<17x17xbf16>, vector<17x8xbf16>, vector<17x8xf32> -> vector<17x8xf32>
    %c8_93 = arith.constant 8 : index
    %c0_94 = arith.constant 0 : index
    %263 = vector.load %arg5[%c8_93, %c0_94] : memref<32x32xf32, #tpu.memory_space<vmem>>, vector<8x32xf32>
    %264 = arith.truncf %262 : vector<17x8xf32> to vector<17x8xbf16>
    %265 = arith.truncf %263 : vector<8x32xf32> to vector<8x32xbf16>
    %cst_95 = arith.constant dense<0.000000e+00> : vector<17x32xf32>
    %266 = tpu.matmul %264, %265, %cst_95 {dimension_numbers = #tpu.dot_dimension_numbers<[1], [0], [0], [1], [0, 0, 1, 1], [], []>} : vector<17x8xbf16>, vector<8x32xbf16>, vector<17x32xf32> -> vector<17x32xf32>
    %267 = arith.addf %241, %266 : vector<17x32xf32>
    %268 = vector.extract_strided_slice %214 {offsets = [0, 16], sizes = [17, 8], strides = [1, 1]} : vector<17x96xf32> to vector<17x8xf32>
    %269 = vector.extract_strided_slice %214 {offsets = [0, 48], sizes = [17, 8], strides = [1, 1]} : vector<17x96xf32> to vector<17x8xf32>
    %270 = vector.extract_strided_slice %214 {offsets = [0, 80], sizes = [17, 8], strides = [1, 1]} : vector<17x96xf32> to vector<17x8xf32>
    %271 = arith.truncf %268 : vector<17x8xf32> to vector<17x8xbf16>
    %272 = arith.truncf %269 : vector<17x8xf32> to vector<17x8xbf16>
    %cst_96 = arith.constant dense<0.000000e+00> : vector<17x17xf32>
    %273 = tpu.matmul %271, %272, %cst_96 {dimension_numbers = #tpu.dot_dimension_numbers<[1], [1], [0], [0], [0, 0, 1, 0], [], []>} : vector<17x8xbf16>, vector<17x8xbf16>, vector<17x17xf32> -> vector<17x17xf32>
    %cst_97 = arith.constant 0.353553385 : f32
    %274 = vector.broadcast %cst_97 : f32 to vector<17x17xf32>
    %275 = arith.mulf %273, %274 : vector<17x17xf32>
    %cst_98 = arith.constant dense<0xFF800000> : vector<17xf32>
    %276 = vector.multi_reduction <maximumf>, %275, %cst_98 [1] : vector<17x17xf32> to vector<17xf32>
    %277 = vector.shape_cast %276 : vector<17xf32> to vector<17x1xf32>
    %278 = vector.broadcast %277 : vector<17x1xf32> to vector<17x17xf32>
    %279 = arith.subf %275, %278 : vector<17x17xf32>
    %280 = math.exp %279 : vector<17x17xf32>
    %cst_99 = arith.constant dense<0.000000e+00> : vector<17xf32>
    %281 = vector.multi_reduction <add>, %280, %cst_99 [1] : vector<17x17xf32> to vector<17xf32>
    %282 = vector.shape_cast %281 : vector<17xf32> to vector<17x1xf32>
    %283 = tpu.reciprocal %282 {approx = true} : vector<17x1xf32> -> vector<17x1xf32>
    %284 = vector.broadcast %283 : vector<17x1xf32> to vector<17x17xf32>
    %285 = arith.mulf %280, %284 : vector<17x17xf32>
    %286 = arith.truncf %285 : vector<17x17xf32> to vector<17x17xbf16>
    %287 = arith.truncf %270 : vector<17x8xf32> to vector<17x8xbf16>
    %cst_100 = arith.constant dense<0.000000e+00> : vector<17x8xf32>
    %288 = tpu.matmul %286, %287, %cst_100 {dimension_numbers = #tpu.dot_dimension_numbers<[1], [0], [0], [1], [0, 0, 1, 1], [], []>} : vector<17x17xbf16>, vector<17x8xbf16>, vector<17x8xf32> -> vector<17x8xf32>
    %c16_101 = arith.constant 16 : index
    %c0_102 = arith.constant 0 : index
    %289 = vector.load %arg5[%c16_101, %c0_102] : memref<32x32xf32, #tpu.memory_space<vmem>>, vector<8x32xf32>
    %290 = arith.truncf %288 : vector<17x8xf32> to vector<17x8xbf16>
    %291 = arith.truncf %289 : vector<8x32xf32> to vector<8x32xbf16>
    %cst_103 = arith.constant dense<0.000000e+00> : vector<17x32xf32>
    %292 = tpu.matmul %290, %291, %cst_103 {dimension_numbers = #tpu.dot_dimension_numbers<[1], [0], [0], [1], [0, 0, 1, 1], [], []>} : vector<17x8xbf16>, vector<8x32xbf16>, vector<17x32xf32> -> vector<17x32xf32>
    %293 = arith.addf %267, %292 : vector<17x32xf32>
    %294 = vector.extract_strided_slice %214 {offsets = [0, 24], sizes = [17, 8], strides = [1, 1]} : vector<17x96xf32> to vector<17x8xf32>
    %295 = vector.extract_strided_slice %214 {offsets = [0, 56], sizes = [17, 8], strides = [1, 1]} : vector<17x96xf32> to vector<17x8xf32>
    %296 = vector.extract_strided_slice %214 {offsets = [0, 88], sizes = [17, 8], strides = [1, 1]} : vector<17x96xf32> to vector<17x8xf32>
    %297 = arith.truncf %294 : vector<17x8xf32> to vector<17x8xbf16>
    %298 = arith.truncf %295 : vector<17x8xf32> to vector<17x8xbf16>
    %cst_104 = arith.constant dense<0.000000e+00> : vector<17x17xf32>
    %299 = tpu.matmul %297, %298, %cst_104 {dimension_numbers = #tpu.dot_dimension_numbers<[1], [1], [0], [0], [0, 0, 1, 0], [], []>} : vector<17x8xbf16>, vector<17x8xbf16>, vector<17x17xf32> -> vector<17x17xf32>
    %cst_105 = arith.constant 0.353553385 : f32
    %300 = vector.broadcast %cst_105 : f32 to vector<17x17xf32>
    %301 = arith.mulf %299, %300 : vector<17x17xf32>
    %cst_106 = arith.constant dense<0xFF800000> : vector<17xf32>
    %302 = vector.multi_reduction <maximumf>, %301, %cst_106 [1] : vector<17x17xf32> to vector<17xf32>
    %303 = vector.shape_cast %302 : vector<17xf32> to vector<17x1xf32>
    %304 = vector.broadcast %303 : vector<17x1xf32> to vector<17x17xf32>
    %305 = arith.subf %301, %304 : vector<17x17xf32>
    %306 = math.exp %305 : vector<17x17xf32>
    %cst_107 = arith.constant dense<0.000000e+00> : vector<17xf32>
    %307 = vector.multi_reduction <add>, %306, %cst_107 [1] : vector<17x17xf32> to vector<17xf32>
    %308 = vector.shape_cast %307 : vector<17xf32> to vector<17x1xf32>
    %309 = tpu.reciprocal %308 {approx = true} : vector<17x1xf32> -> vector<17x1xf32>
    %310 = vector.broadcast %309 : vector<17x1xf32> to vector<17x17xf32>
    %311 = arith.mulf %306, %310 : vector<17x17xf32>
    %312 = arith.truncf %311 : vector<17x17xf32> to vector<17x17xbf16>
    %313 = arith.truncf %296 : vector<17x8xf32> to vector<17x8xbf16>
    %cst_108 = arith.constant dense<0.000000e+00> : vector<17x8xf32>
    %314 = tpu.matmul %312, %313, %cst_108 {dimension_numbers = #tpu.dot_dimension_numbers<[1], [0], [0], [1], [0, 0, 1, 1], [], []>} : vector<17x17xbf16>, vector<17x8xbf16>, vector<17x8xf32> -> vector<17x8xf32>
    %c24_109 = arith.constant 24 : index
    %c0_110 = arith.constant 0 : index
    %315 = vector.load %arg5[%c24_109, %c0_110] : memref<32x32xf32, #tpu.memory_space<vmem>>, vector<8x32xf32>
    %316 = arith.truncf %314 : vector<17x8xf32> to vector<17x8xbf16>
    %317 = arith.truncf %315 : vector<8x32xf32> to vector<8x32xbf16>
    %cst_111 = arith.constant dense<0.000000e+00> : vector<17x32xf32>
    %318 = tpu.matmul %316, %317, %cst_111 {dimension_numbers = #tpu.dot_dimension_numbers<[1], [0], [0], [1], [0, 0, 1, 1], [], []>} : vector<17x8xbf16>, vector<8x32xbf16>, vector<17x32xf32> -> vector<17x32xf32>
    %319 = arith.addf %293, %318 : vector<17x32xf32>
    %320 = arith.addf %189, %319 : vector<17x32xf32>
    %321 = vector.broadcast %6 : vector<1x32xf32> to vector<17x32xf32>
    %322 = arith.addf %320, %321 : vector<17x32xf32>
    %cst_112 = arith.constant dense<0.000000e+00> : vector<17xf32>
    %323 = vector.multi_reduction <add>, %322, %cst_112 [1] : vector<17x32xf32> to vector<17xf32>
    %324 = vector.shape_cast %323 : vector<17xf32> to vector<17x1xf32>
    %cst_113 = arith.constant 3.200000e+01 : f32
    %325 = vector.broadcast %cst_113 : f32 to vector<17x1xf32>
    %326 = arith.divf %324, %325 : vector<17x1xf32>
    %327 = vector.broadcast %326 : vector<17x1xf32> to vector<17x32xf32>
    %328 = arith.subf %322, %327 : vector<17x32xf32>
    %329 = arith.mulf %328, %328 : vector<17x32xf32>
    %cst_114 = arith.constant dense<0.000000e+00> : vector<17xf32>
    %330 = vector.multi_reduction <add>, %329, %cst_114 [1] : vector<17x32xf32> to vector<17xf32>
    %331 = vector.shape_cast %330 : vector<17xf32> to vector<17x1xf32>
    %cst_115 = arith.constant 3.200000e+01 : f32
    %332 = vector.broadcast %cst_115 : f32 to vector<17x1xf32>
    %333 = arith.divf %331, %332 : vector<17x1xf32>
    %cst_116 = arith.constant 9.99999974E-6 : f32
    %334 = vector.broadcast %cst_116 : f32 to vector<17x1xf32>
    %335 = arith.addf %333, %334 : vector<17x1xf32>
    %336 = math.rsqrt %335 : vector<17x1xf32>
    %337 = vector.broadcast %336 : vector<17x1xf32> to vector<17x32xf32>
    %338 = arith.mulf %328, %337 : vector<17x32xf32>
    %339 = vector.broadcast %2 : vector<1x32xf32> to vector<17x32xf32>
    %340 = arith.mulf %338, %339 : vector<17x32xf32>
    %341 = vector.broadcast %3 : vector<1x32xf32> to vector<17x32xf32>
    %342 = arith.addf %340, %341 : vector<17x32xf32>
    %343 = arith.truncf %342 : vector<17x32xf32> to vector<17x32xbf16>
    %344 = arith.truncf %7 : vector<32x128xf32> to vector<32x128xbf16>
    %cst_117 = arith.constant dense<0.000000e+00> : vector<17x128xf32>
    %345 = tpu.matmul %343, %344, %cst_117 {dimension_numbers = #tpu.dot_dimension_numbers<[1], [0], [0], [1], [0, 0, 1, 1], [], []>} : vector<17x32xbf16>, vector<32x128xbf16>, vector<17x128xf32> -> vector<17x128xf32>
    %346 = vector.broadcast %8 : vector<1x128xf32> to vector<17x128xf32>
    %347 = arith.addf %345, %346 : vector<17x128xf32>
    %cst_118 = arith.constant 1.702000e+00 : f32
    %348 = vector.broadcast %cst_118 : f32 to vector<17x128xf32>
    %349 = arith.mulf %348, %347 : vector<17x128xf32>
    %350 = arith.negf %349 : vector<17x128xf32>
    %351 = math.exp %350 : vector<17x128xf32>
    %cst_119 = arith.constant 1.000000e+00 : f32
    %352 = vector.broadcast %cst_119 : f32 to vector<17x128xf32>
    %353 = arith.addf %352, %351 : vector<17x128xf32>
    %354 = arith.divf %352, %353 : vector<17x128xf32>
    %355 = arith.mulf %347, %354 : vector<17x128xf32>
    %356 = arith.truncf %355 : vector<17x128xf32> to vector<17x128xbf16>
    %357 = arith.truncf %9 : vector<128x32xf32> to vector<128x32xbf16>
    %cst_120 = arith.constant dense<0.000000e+00> : vector<17x32xf32>
    %358 = tpu.matmul %356, %357, %cst_120 {dimension_numbers = #tpu.dot_dimension_numbers<[1], [0], [0], [1], [0, 0, 1, 1], [], []>} : vector<17x128xbf16>, vector<128x32xbf16>, vector<17x32xf32> -> vector<17x32xf32>
    %359 = vector.broadcast %10 : vector<1x32xf32> to vector<17x32xf32>
    %360 = arith.addf %358, %359 : vector<17x32xf32>
    %361 = arith.addf %322, %360 : vector<17x32xf32>
    %c1_121 = arith.constant 1 : index
    %c0_122 = arith.constant 0 : index
    %c0_123 = arith.constant 0 : index
    %362 = vector.load %arg13[%c1_121, %c0_122, %c0_123] : memref<2x17x32xf32, #tpu.memory_space<vmem>>, vector<1x17x32xf32>
    %363 = vector.shape_cast %362 : vector<1x17x32xf32> to vector<17x32xf32>
    %364 = vector.shape_cast %361 : vector<17x32xf32> to vector<1x17x32xf32>
    tpu.vector_store %arg13[%c1_121, %c0_122, %c0_123], %364 {strides = array<i32>} : memref<2x17x32xf32, #tpu.memory_space<vmem>>, vector<1x17x32xf32>,
    return
  }
}

</mosaic_0001>

<bundles_post_ra>
// kernel: clip_finetuner_forward.7
= control target key start
LH: loop header
LB: loop body
LE: loop exit
PB: predicated region body
PF: predicated region fallthrough
CT: control target
= control target key end

     0   :  { %vm28_vm0 = vcmask 254976   ;;  %s300_s0 = inlined_call_operand.vmem [shape: f32[2,32], index: 0, kind: input, shape index: {}]   ;;  %s301_s1 = inlined_call_operand.vmem [shape: f32[1,32], index: 1, kind: input, shape index: {}]   ;;  %s302_s2 = inlined_call_operand.vmem [shape: f32[1,32], index: 2, kind: input, shape index: {}]   ;;  %s303_s3 = inlined_call_operand.vmem [shape: f32[32,16], index: 3, kind: input, shape index: {}]   ;;  %s304_s4 = inlined_call_operand.vmem [shape: f32[16,128], index: 4, kind: input, shape index: {}]   ;;  %s305_s5 = inlined_call_operand.vmem [shape: f32[1,128], index: 5, kind: input, shape index: {}]   ;;  %s306_s6 = inlined_call_operand.hbm [shape: f32[2,128], index: 6, kind: output, shape index: {}]  }
   0x1   :  { %v25_v0 = vld [vmem:[%s300_s0] sm:$0x3] }
   0x2   :  { %11 = vsyncpa [#allocation3], 0  ;;  %v29_v1 = vsel %vm28_vm0, %v25_v0, 0.0  ;;  %v59_v7 = vld [vmem:[%s303_s3 + $0x10] sm:$0xff]  ;;  %v60_v8 = vld [vmem:[%s303_s3 + $0x18] sm:$0xff]  ;;  %v229_v10 = vmov 0.0  }
   0x3   :  { %30 = vadd.xlane.f32.xlu0 %v29_v1  ;;  %v57_v9 = vld [vmem:[%s303_s3] sm:$0xff]  ;;  %188 = vmatprep.subr.bf16.mxu0 %v229_v10  ;;  %v63_v11 = vpack.c.bf16 %v60_v8, %v59_v7  ;;  %v58_v12 = vld [vmem:[%s303_s3 + $0x8] sm:$0xff]  ;;  %vm230_vm1 = vmmov 0   ;;  %vm64_vm2 = vcmask 261120   ;;  %vm119_vm3 = vcmask 130048   ;;  %s231_s13 = smov [#allocation2]  }
   0x4   :  { %192 = vmatprep.mubr.msk.bf16.mxu0 %vm230_vm1, %v229_v10  ;;  %196 = vmatprep.subr.bf16.mxu1 %v229_v10  ;;  %v62_v13 = vpack.c.bf16 %v58_v12, %v57_v9  ;;  %v178_v18 = vld [vmem:[%s301_s1] ss:$0 sm:$0xff]  ;;  %v109_v25 = vld [vmem:[%s304_s4 + $0x8] sm:$0xff]  ;;  %s170_s14 = sshll.u32 %s231_s13, 4  ;;  %s171_s14 = int_to_ptr.vmem [resolvable:$true] %s170_s14 }
   0x5   :  { %198 = vmatprep.mubr.msk.bf16.mxu1 %vm230_vm1, %v229_v10  ;;  %189 = vmatpush3.bf16.msra.mxu0 %v63_v11  ;;  %v179_v20 = vld [vmem:[%s302_s2] ss:$0 sm:$0xff]  ;;  %p212_p1 = scmp.lt.s32.totalorder %s171_s14, %s171_s14 }
   0x6   :  { %190 = vmatprep.subr.bf16.mxu0 %v229_v10  ;;  %v108_v24 = vld [vmem:[%s304_s4] sm:$0xff]  ;;  %s207_s4 = scalar_lea.vmem %s171_s14, 32 }
   0x7   :  { %v111_v26 = vpack.c.bf16 %v109_v25, %v108_v24  ;;  %v181_v32 = vld [vmem:[%s305_s5] ss:$0 sm:$0xff]  ;;  %p208_p0 = scmp.ne.s32.totalorder %s171_s14, %s207_s4  ;;  %p213_p2 = scmp.lt.s32.totalorder %s207_s4, %s207_s4 }
   0x9   :  { %191 = vmatpush3.bf16.msra.mxu0 %v62_v13  ;;  %197 = vmatpush3.bf16.msra.mxu1 %v111_v26  ;;  %p214_p3 = por %p213_p2, %p212_p1 }
   0xb   :  { %p215_p4 = pnand %p214_p3, %p208_p0 }
  0x8c   :  { %v31_v2 = vpop.xlane.xlu0 %30 }
  0x8d   :  { %v33_v3 = vmul.f32 0.03125, %v31_v2 }
  0x8f   :  { %v34_v4 = vsub.f32 %v25_v0, %v33_v3 }
  0x91   :  { %v35_v5 = vmul.f32 %v34_v4, %v34_v4 }
  0x93   :  { %v36_v6 = vsel %vm28_vm0, %v35_v5, 0.0 }
  0x94   :  { %37 = vadd.xlane.f32.xlu0 %v36_v6 }
 0x11d   :  { %v38_v14 = vpop.xlane.xlu0 %37 }
 0x11e   :  { %v39_v15 = vmul.f32 0.03125, %v38_v14 }
 0x120   :  { %v40_v16 = vadd.f32 1e-05, %v39_v15 }
 0x122   :  { %205 = vrsqrt.f32 %v40_v16 }
 0x12f   :  { %v206_v17 = vpop.eup %205 }
 0x130   :  { %v42_v19 = vmul.f32 %v206_v17, %v34_v4 }
 0x132   :  { %v49_v21 = vmul.f32 %v178_v18, %v42_v19 }
 0x134   :  { %v56_v22 = vadd.f32 %v179_v20, %v49_v21 }
 0x136   :  { %v61_v23 = vpack.c.bf16 %v56_v22, %v56_v22 }
 0x138   :  { %193 = vmatmul.mubr.msk.bf16.vlgmr.msra.gmra.mxu0 %vm64_vm2, %v61_v23 }
 0x1f8   :  { %v102_v27 = vpop.f32.mrf.mxu0 }
 0x1f9   :  { %v110_v28 = vpack.c.bf16 %v102_v27, %v102_v27 }
 0x1fa   :  { %v194_v29 = vpop.f32.mrf.mxu0 }
 0x1fb   :  { %199 = vmatmul.mubr.msk.bf16.vlgmr.msra.gmra.mxu1 %vm119_vm3, %v110_v28 }
 0x1fc   :  { %v105_v30 = vpop.f32.mrf.mxu0 }
 0x1fe   :  { %v195_v31 = vpop.f32.mrf.mxu0 }
 0x2bb   :  { %v157_v33 = vpop.f32.mrf.mxu1 }
 0x2bc   :  { %v158_v34 = vadd.f32 %v181_v32, %v157_v33 }
 0x2bd   :  { %v200_v35 = vpop.f32.mrf.mxu1 }
 0x2be   :  { %163 = vst [vmem:[#allocation2] sm:$0x3] %v158_v34 }
 0x2bf   :  { %v160_v36 = vpop.f32.mrf.mxu1 }
 0x2c0   :  { %218 = shalt.err (!%p215_p4)
}
 0x2c1   :  { %173 = dma.vmem_to_hbm [thread:$0]  %s171_s14, 32, %s306_s6, [#allocation3]   ;;  %v201_v37 = vpop.f32.mrf.mxu1 }
 0x2c2   :  { %227 = dma.done.wait [#allocation3], 32  }
 0x2c3   :  { %228 = vsyncadd [#allocation3], 4294967264 }
 0x2c4   :  { %177 = vsyncpa [#allocation3], 1 }

// kernel: clip_finetuner_forward.4
= control target key start
LH: loop header
LB: loop body
LE: loop exit
PB: predicated region body
PF: predicated region fallthrough
CT: control target
= control target key end

     0   :  { %v278_v0 = vmov 0   ;;  %vm133_vm0 = vcmask 253952   ;;  %vm74_vm1 = vcmask 523264   ;;  %vm152_vm2 = vcmask 261120   ;;  %s492_s1 = inlined_call_operand.vmem [shape: f32[192,32], index: 1, kind: input, shape index: {}]   ;;  %s493_s0 = inlined_call_operand.vmem [shape: f32[32,192], index: 0, kind: input, shape index: {}]   ;;  %s494_s2 = inlined_call_operand.vmem [shape: f32[1,32], index: 2, kind: input, shape index: {}]   ;;  %s495_s3 = inlined_call_operand.vmem [shape: f32[16,32], index: 3, kind: input, shape index: {}]   ;;  %s496_s4 = inlined_call_operand.vmem [shape: f32[1,32], index: 4, kind: input, shape index: {}]   ;;  %s497_s5 = inlined_call_operand.vmem [shape: f32[1,32], index: 5, kind: input, shape index: {}]   ;;  %s498_s6 = inlined_call_operand.vmem [shape: f32[2,17,32], index: 6, kind: output, shape index: {}]  }
   0x1   :  { %81 = vmatprep.subr.bf16.mxu0 %v278_v0  ;;  %243 = vmatprep.subr.bf16.mxu1 %v278_v0  ;;  %v48_v1 = vld [vmem:[%s492_s1 + $0x70] sm:$0xff]  ;;  %v49_v2 = vld [vmem:[%s492_s1 + $0x78] sm:$0xff]  ;;  %v46_v3 = vld [vmem:[%s492_s1 + $0x60] sm:$0xff] }
   0x2   :  { %v69_v4 = vpack.c.bf16 %v49_v2, %v48_v1  ;;  %v47_v5 = vld [vmem:[%s492_s1 + $0x68] sm:$0xff]  ;;  %v44_v7 = vld [vmem:[%s492_s1 + $0x50] sm:$0xff]  ;;  %v45_v8 = vld [vmem:[%s492_s1 + $0x58] sm:$0xff] }
   0x3   :  { %v68_v6 = vpack.c.bf16 %v47_v5, %v46_v3  ;;  %v67_v9 = vpack.c.bf16 %v45_v8, %v44_v7  ;;  %v42_v10 = vld [vmem:[%s492_s1 + $0x40] sm:$0xff]  ;;  %v43_v11 = vld [vmem:[%s492_s1 + $0x48] sm:$0xff]  ;;  %v29_v13 = vld [vmem:[%s493_s0 + $0x18] sm:$0xff] }
   0x4   :  { %82 = vmatpush1.bf16.msra.mxu0 %v69_v4  ;;  %255 = vmatpush1.bf16.msra.mxu1 %v69_v4  ;;  %v27_v12 = vld [vmem:[%s493_s0 + $0x8] sm:$0xff]  ;;  %v33_v16 = vld [vmem:[%s493_s0 + $0x38] sm:$0xff]  ;;  %v359_v18 = vld [vmem:[%s494_s2] sm:$0x1]  ;;  %v66_v19 = vpack.c.bf16 %v43_v11, %v42_v10 }
   0x5   :  { %83 = vmatprep.subr.bf16.mxu0 %v278_v0  ;;  %244 = vmatprep.subr.bf16.mxu1 %v278_v0  ;;  %v31_v14 = vld [vmem:[%s493_s0 + $0x28] sm:$0xff]  ;;  %v59_v15 = vpack.c.bf16 %v29_v13, %v27_v12  ;;  %v134_v20 = vsel %vm133_vm0, %v359_v18, 0.0  ;;  %v40_v21 = vld [vmem:[%s492_s1 + $0x30] sm:$0xff]  ;;  %v41_v22 = vld [vmem:[%s492_s1 + $0x38] sm:$0xff] }
   0x6   :  { %v61_v17 = vpack.c.bf16 %v33_v16, %v31_v14  ;;  %135 = vadd.xlane.f32.xlu0 %v134_v20  ;;  %v65_v23 = vpack.c.bf16 %v41_v22, %v40_v21  ;;  %v38_v24 = vld [vmem:[%s492_s1 + $0x20] sm:$0xff]  ;;  %v39_v25 = vld [vmem:[%s492_s1 + $0x28] sm:$0xff]  ;;  %v36_v27 = vld [vmem:[%s492_s1 + $0x10] sm:$0xff] }
   0x7   :  { %238 = vmatprep.mubr.msk.bf16.mxu0 %vm74_vm1, %v59_v15  ;;  %v64_v26 = vpack.c.bf16 %v39_v25, %v38_v24  ;;  %v37_v28 = vld [vmem:[%s492_s1 + $0x18] sm:$0xff]  ;;  %v34_v30 = vld [vmem:[%s492_s1] sm:$0xff]  ;;  %v35_v31 = vld [vmem:[%s492_s1 + $0x8] sm:$0xff] }
   0x8   :  { %84 = vmatpush1.bf16.msra.mxu0 %v68_v6  ;;  %256 = vmatpush1.bf16.msra.mxu1 %v68_v6  ;;  %v63_v29 = vpack.c.bf16 %v37_v28, %v36_v27  ;;  %v62_v32 = vpack.c.bf16 %v35_v31, %v34_v30  ;;  %v56_v33 = vld [vmem:[%s492_s1 + $0xb0] sm:$0xff]  ;;  %v57_v34 = vld [vmem:[%s492_s1 + $0xb8] sm:$0xff]  ;;  %v54_v36 = vld [vmem:[%s492_s1 + $0xa0] sm:$0xff] }
   0x9   :  { %85 = vmatprep.subr.bf16.mxu0 %v278_v0  ;;  %245 = vmatprep.subr.bf16.mxu1 %v278_v0  ;;  %v73_v35 = vpack.c.bf16 %v57_v34, %v56_v33  ;;  %v55_v37 = vld [vmem:[%s492_s1 + $0xa8] sm:$0xff]  ;;  %v52_v39 = vld [vmem:[%s492_s1 + $0x90] sm:$0xff]  ;;  %v53_v40 = vld [vmem:[%s492_s1 + $0x98] sm:$0xff] }
   0xa   :  { %239 = vmatprep.mubr.msk.bf16.mxu1 %vm74_vm1, %v61_v17  ;;  %v72_v38 = vpack.c.bf16 %v55_v37, %v54_v36  ;;  %v71_v41 = vpack.c.bf16 %v53_v40, %v52_v39  ;;  %v50_v42 = vld [vmem:[%s492_s1 + $0x80] sm:$0xff]  ;;  %v51_v43 = vld [vmem:[%s492_s1 + $0x88] sm:$0xff]  ;;  %v28_v46 = vld [vmem:[%s493_s0 + $0x10] sm:$0xff] }
   0xb   :  { %v26_v44 = vld [vmem:[%s493_s0] sm:$0xff]  ;;  %v70_v45 = vpack.c.bf16 %v51_v43, %v50_v42  ;;  %v32_v48 = vld [vmem:[%s493_s0 + $0x30] sm:$0xff]  ;;  %v131_v59 = vld [vmem:[%s495_s3 + $0x8] sm:$0xff]  ;;  %v180_v43 = vlaneseq }
   0xc   :  { %86 = vmatpush1.bf16.msra.mxu0 %v67_v9  ;;  %257 = vmatpush1.bf16.msra.mxu1 %v67_v9  ;;  %v30_v47 = vld [vmem:[%s493_s0 + $0x20] sm:$0xff]  ;;  %v58_v49 = vpack.c.bf16 %v28_v46, %v26_v44 }
   0xd   :  { %87 = vmatprep.subr.bf16.mxu0 %v278_v0  ;;  %246 = vmatprep.subr.bf16.mxu1 %v278_v0  ;;  %v60_v50 = vpack.c.bf16 %v32_v48, %v30_v47  ;;  %v130_v51 = vld [vmem:[%s495_s3] sm:$0xff]  ;;  %v181_v48 = vshrl.u32 %v180_v43, 7 }
   0xe   :  { %v24_v34 = vld [vmem:[%s496_s4] sm:$0x1] }
   0xf   :  { %v25_v36 = vld [vmem:[%s497_s5] sm:$0x1] }
  0x10   :  { %88 = vmatpush1.bf16.msra.mxu0 %v66_v19  ;;  %258 = vmatpush1.bf16.msra.mxu1 %v66_v19 }
  0x11   :  { %89 = vmatprep.subr.bf16.mxu0 %v278_v0  ;;  %247 = vmatprep.subr.bf16.mxu1 %v278_v0 }
  0x14   :  { %90 = vmatpush1.bf16.msra.mxu0 %v65_v23  ;;  %259 = vmatpush1.bf16.msra.mxu1 %v65_v23 }
  0x15   :  { %91 = vmatprep.subr.bf16.mxu0 %v278_v0  ;;  %248 = vmatprep.subr.bf16.mxu1 %v278_v0 }
  0x18   :  { %92 = vmatpush1.bf16.msra.mxu0 %v64_v26  ;;  %260 = vmatpush1.bf16.msra.mxu1 %v64_v26 }
  0x19   :  { %93 = vmatprep.subr.bf16.mxu0 %v278_v0  ;;  %249 = vmatprep.subr.bf16.mxu1 %v278_v0 }
  0x1c   :  { %94 = vmatpush1.bf16.msra.mxu0 %v63_v29  ;;  %261 = vmatpush1.bf16.msra.mxu1 %v63_v29 }
  0x1d   :  { %95 = vmatprep.subr.bf16.mxu0 %v278_v0  ;;  %250 = vmatprep.subr.bf16.mxu1 %v278_v0 }
  0x20   :  { %96 = vmatpush1.bf16.msra.mxu0 %v62_v32  ;;  %262 = vmatpush1.bf16.msra.mxu1 %v62_v32 }
  0x21   :  { %105 = vmatprep.subr.bf16.mxu0 %v278_v0  ;;  %251 = vmatprep.subr.bf16.mxu1 %v278_v0 }
  0x24   :  { %106 = vmatpush2.bf16.msra.mxu0 %v73_v35  ;;  %263 = vmatpush2.bf16.msra.mxu1 %v73_v35 }
  0x25   :  { %107 = vmatprep.subr.bf16.mxu0 %v278_v0  ;;  %252 = vmatprep.subr.bf16.mxu1 %v278_v0 }
  0x28   :  { %108 = vmatpush2.bf16.msra.mxu0 %v72_v38  ;;  %264 = vmatpush2.bf16.msra.mxu1 %v72_v38 }
  0x29   :  { %109 = vmatprep.subr.bf16.mxu0 %v278_v0  ;;  %253 = vmatprep.subr.bf16.mxu1 %v278_v0 }
  0x2c   :  { %110 = vmatpush2.bf16.msra.mxu0 %v71_v41  ;;  %265 = vmatpush2.bf16.msra.mxu1 %v71_v41 }
  0x2d   :  { %111 = vmatprep.subr.bf16.mxu0 %v278_v0  ;;  %254 = vmatprep.subr.bf16.mxu1 %v278_v0 }
  0x30   :  { %112 = vmatpush2.bf16.msra.mxu0 %v70_v45  ;;  %266 = vmatpush2.bf16.msra.mxu1 %v70_v45 }
  0x33   :  { %114 = vmatmul.mubr.bf16.vlgmr.msra.gmra.mxu0 %v58_v49  ;;  %122 = vmatmul.mubr.bf16.vlgmr.msra.gmra.mxu1 %v60_v50 }
  0x8f   :  { %v136_v52 = vpop.xlane.xlu0 %135 }
  0x90   :  { %v138_v56 = vmul.f32 0.03125, %v136_v52 }
  0x92   :  { %v139_v1 = vsub.f32 %v359_v18, %v138_v56 }
  0x94   :  { %v140_v7 = vmul.f32 %v139_v1, %v139_v1 }
  0x96   :  { %v141_v9 = vsel %vm133_vm0, %v140_v7, 0.0 }
  0xf3   :  { %v115_v53 = vpop.f32.mrf.mxu0  ;;  %v123_v54 = vpop.f32.mrf.mxu1 }
  0xf4   :  { %v150_v55 = vadd.f32 %v130_v51, %v115_v53  ;;  %v198_v4 = vadd.f32 %v130_v51, %v123_v54  ;;  %v182_v53 = vsub.s32 0, %v181_v48 }
  0xf5   :  { %v117_v57 = vpop.f32.mrf.mxu0  ;;  %v125_v58 = vpop.f32.mrf.mxu1 }
  0xf6   :  { %v153_v60 = vsel %vm152_vm2, %v150_v55, 0.0  ;;  %v200_v8 = vsel %vm152_vm2, %v198_v4, 0.0  ;;  %v183_v54 = vrot.slane %v24_v34, %v182_v53  ;;  %v191_v56 = vrot.slane %v25_v36, %v182_v53 }
  0xf7   :  { %v126_v61 = vpop.f32.mrf.mxu1  ;;  %154 = vadd.xlane.f32.xlu0 %v153_v60  ;;  %v118_v62 = vpop.f32.mrf.mxu0 }
  0xf8   :  { %v199_v63 = vadd.f32 %v131_v59, %v126_v61  ;;  %v151_v0 = vadd.f32 %v131_v59, %v118_v62 }
  0xf9   :  { %v120_v2 = vpop.f32.mrf.mxu0  ;;  %v128_v3 = vpop.f32.mrf.mxu1 }
  0xfa   :  { %v203_v5 = vsel %vm152_vm2, %v199_v63, 0.0  ;;  %v156_v6 = vsel %vm152_vm2, %v151_v0, 0.0 }
  0xfb   :  { %204 = vadd.xlane.f32.xlu0 %v203_v5  ;;  %157 = vadd.xlane.f32.xlu1 %v156_v6 }
  0xff   :  { %201 = vadd.xlane.f32.xlu1 %v200_v8 }
 0x103   :  { %142 = vadd.xlane.f32.xlu1 %v141_v9 }
 0x180   :  { %v155_v10 = vpop.xlane.xlu0 %154 }
 0x181   :  { %v159_v11 = vmul.f32 0.03125, %v155_v10 }
 0x183   :  { %v161_v12 = vsub.f32 %v150_v55, %v159_v11 }
 0x184   :  { %v205_v13 = vpop.xlane.xlu0 %204  ;;  %v158_v14 = vpop.xlane.xlu1 %157 }
 0x185   :  { %v207_v15 = vmul.f32 0.03125, %v205_v13  ;;  %v160_v16 = vmul.f32 0.03125, %v158_v14  ;;  %v163_v17 = vmul.f32 %v161_v12, %v161_v12 }
 0x187   :  { %v453_v18 = vsub.f32 %v199_v63, %v207_v15  ;;  %v162_v19 = vsub.f32 %v151_v0, %v160_v16  ;;  %v165_v20 = vsel %vm152_vm2, %v163_v17, 0.0 }
 0x188   :  { %166 = vadd.xlane.f32.xlu0 %v165_v20  ;;  %v202_v21 = vpop.xlane.xlu1 %201 }
 0x189   :  { %v206_v22 = vmul.f32 0.03125, %v202_v21  ;;  %v164_v23 = vmul.f32 %v162_v19, %v162_v19  ;;  %v211_v26 = vmul.f32 %v453_v18, %v453_v18 }
 0x18b   :  { %v208_v24 = vsub.f32 %v198_v4, %v206_v22  ;;  %v168_v25 = vsel %vm152_vm2, %v164_v23, 0.0  ;;  %v215_v31 = vsel %vm152_vm2, %v211_v26, 0.0 }
 0x18c   :  { %169 = vadd.xlane.f32.xlu1 %v168_v25  ;;  %v143_v27 = vpop.xlane.xlu1 %142 }
 0x18d   :  { %v144_v28 = vmul.f32 0.03125, %v143_v27  ;;  %v210_v29 = vmul.f32 %v208_v24, %v208_v24 }
 0x18f   :  { %v145_v30 = vadd.f32 1e-05, %v144_v28  ;;  %v212_v32 = vsel %vm152_vm2, %v210_v29, 0.0 }
 0x190   :  { %216 = vadd.xlane.f32.xlu1 %v215_v31  ;;  %213 = vadd.xlane.f32.xlu0 %v212_v32 }
 0x191   :  { %268 = vrsqrt.f32 %v145_v30 }
 0x19e   :  { %v269_v33 = vpop.eup %268 }
 0x19f   :  { %v147_v35 = vmul.f32 %v269_v33, %v139_v1 }
 0x1a1   :  { %v148_v37 = vmul.f32 %v147_v35, %v24_v34 }
 0x1a3   :  { %v149_v38 = vadd.f32 %v148_v37, %v25_v36 }
 0x1a5   :  { %197 = vst.msk [vmem:[%s498_s6 + $0x10] sm:$0x1] %vm133_vm0, %v149_v38  ;;  %242 = vst.msk [vmem:[%s498_s6 + $0x28] sm:$0x1] %vm133_vm0, %v149_v38 }
 0x211   :  { %v167_v39 = vpop.xlane.xlu0 %166 }
 0x212   :  { %v171_v40 = vmul.f32 0.03125, %v167_v39 }
 0x214   :  { %v173_v41 = vadd.f32 1e-05, %v171_v40 }
 0x215   :  { %v170_v42 = vpop.xlane.xlu1 %169 }
 0x216   :  { %270 = vrsqrt.f32 %v173_v41  ;;  %v172_v44 = vmul.f32 0.03125, %v170_v42 }
 0x218   :  { %v174_v45 = vadd.f32 1e-05, %v172_v44 }
 0x219   :  { %v214_v46 = vpop.xlane.xlu0 %213  ;;  %v217_v47 = vpop.xlane.xlu1 %216 }
 0x21a   :  { %272 = vrsqrt.f32 %v174_v45  ;;  %v218_v49 = vmul.f32 0.03125, %v214_v46  ;;  %v219_v50 = vmul.f32 0.03125, %v217_v47 }
 0x21c   :  { %v220_v51 = vadd.f32 1e-05, %v218_v49  ;;  %v221_v52 = vadd.f32 1e-05, %v219_v50 }
 0x21e   :  { %274 = vrsqrt.f32 %v220_v51 }
 0x21f   :  { %276 = vrsqrt.f32 %v221_v52 }
 0x223   :  { %v271_v55 = vpop.eup %270 }
 0x224   :  { %v177_v57 = vmul.f32 %v271_v55, %v161_v12 }
 0x226   :  { %v185_v58 = vmul.f32 %v183_v54, %v177_v57 }
 0x227   :  { %v273_v59 = vpop.eup %272 }
 0x228   :  { %v193_v60 = vadd.f32 %v191_v56, %v185_v58  ;;  %v178_v61 = vmul.f32 %v273_v59, %v162_v19 }
 0x22a   :  { %195 = vst.msk [vmem:[%s498_s6] sm:$0xff] %vm152_vm2, %v193_v60  ;;  %v186_v62 = vmul.f32 %v183_v54, %v178_v61 }
 0x22b   :  { %v275_v63 = vpop.eup %274 }
 0x22c   :  { %v277_v0 = vpop.eup %276  ;;  %v194_v1 = vadd.f32 %v191_v56, %v186_v62  ;;  %v224_v2 = vmul.f32 %v275_v63, %v208_v24 }
 0x22d   :  { %v225_v3 = vmul.f32 %v277_v0, %v453_v18 }
 0x22e   :  { %196 = vst.msk [vmem:[%s498_s6 + $0x8] sm:$0xff] %vm152_vm2, %v194_v1  ;;  %v226_v4 = vmul.f32 %v224_v2, %v183_v54 }
 0x22f   :  { %v227_v5 = vmul.f32 %v225_v3, %v183_v54 }
 0x230   :  { %v228_v6 = vadd.f32 %v226_v4, %v191_v56 }
 0x231   :  { %v229_v7 = vadd.f32 %v227_v5, %v191_v56 }
 0x232   :  { %240 = vst.msk [vmem:[%s498_s6 + $0x18] sm:$0xff] %vm152_vm2, %v228_v6 }
 0x233   :  { %241 = vst.msk [vmem:[%s498_s6 + $0x20] sm:$0xff] %vm152_vm2, %v229_v7 }

// kernel: clip_finetuner_forward.5
= control target key start
LH: loop header
LB: loop body
LE: loop exit
PB: predicated region body
PF: predicated region fallthrough
CT: control target
= control target key end

     0   :  { %vm80_vm0 = vcmask 261120   ;;  %vm87_vm1 = vcmask 253952   ;;  %s3217_s27 = smov 96   ;;  %vm212_vm2 = vcmask 64512   ;;  %s3218_s28 = smov 120   ;;  %vm276_vm3 = vcmask 138240   ;;  %s3963_s0 = inlined_call_operand.vmem [shape: f32[2,17,32], index: 0, kind: input, shape index: {}]   ;;  %s3964_s3 = inlined_call_operand.vmem [shape: f32[32,96], index: 3, kind: input, shape index: {}]   ;;  %s3965_s1 = inlined_call_operand.vmem [shape: f32[1,32], index: 1, kind: input, shape index: {}]   ;;  %s3966_s2 = inlined_call_operand.vmem [shape: f32[1,32], index: 2, kind: input, shape index: {}]   ;;  %s3967_s4 = inlined_call_operand.vmem [shape: f32[1,96], index: 4, kind: input, shape index: {}]   ;;  %s3968_s5 = inlined_call_operand.vmem [shape: f32[32,32], index: 5, kind: input, shape index: {}]   ;;  %s3969_s6 = inlined_call_operand.vmem [shape: f32[1,32], index: 6, kind: input, shape index: {}]   ;;  %s3970_s9 = inlined_call_operand.vmem [shape: f32[32,128], index: 9, kind: input, shape index: {}]   ;;  %s3971_s7 = inlined_call_operand.vmem [shape: f32[1,32], index: 7, kind: input, shape index: {}]   ;;  %s3972_s8 = inlined_call_operand.vmem [shape: f32[1,32], index: 8, kind: input, shape index: {}]   ;;  %s3973_s11 = inlined_call_operand.vmem [shape: f32[128,32], index: 11, kind: input, shape index: {}]   ;;  %s3974_s10 = inlined_call_operand.vmem [shape: f32[1,128], index: 10, kind: input, shape index: {}]   ;;  %s3975_s12 = inlined_call_operand.vmem [shape: f32[1,32], index: 12, kind: input, shape index: {}]   ;;  %s3976_s13 = inlined_call_operand.vmem [shape: f32[2,17,32], index: 13, kind: output, shape index: {}]  }
   0x1   :  { %v3302_v0 = vld [vmem:[%s3963_s0] sm:$0xff]  ;;  %v3307_v1 = vld [vmem:[%s3963_s0 + $0x10] sm:$0x1]  ;;  %v3312_v2 = vld [vmem:[%s3963_s0 + $0x8] sm:$0xff]  ;;  %s3219_s29 = smov 88   ;;  %vm283_vm4 = vcmask 131072  }
   0x2   :  { %v81_v3 = vsel %vm80_vm0, %v3302_v0, 0.0  ;;  %v88_v4 = vsel %vm87_vm1, %v3307_v1, 0.0  ;;  %v84_v5 = vsel %vm80_vm0, %v3312_v2, 0.0  ;;  %v51_v21 = vld [vmem:[%s3964_s3 + $0x10] sm:$0xff]  ;;  %v52_v22 = vld [vmem:[%s3964_s3 + $0x18] sm:$0xff]  ;;  %v49_v23 = vld [vmem:[%s3964_s3] sm:$0xff] }
   0x3   :  { %82 = vadd.xlane.f32.xlu0 %v81_v3  ;;  %89 = vadd.xlane.f32.xlu1 %v88_v4  ;;  %v3335_v24 = vpack.c.bf16 %v52_v22, %v51_v21  ;;  %v50_v25 = vld [vmem:[%s3964_s3 + $0x8] sm:$0xff]  ;;  %v2579_v38 = vld [vmem:[%s3965_s1] ss:$0 sm:$0xff]  ;;  %s3220_s30 = smov 56   ;;  %s3221_s14 = smov 80   ;;  %vm324_vm5 = vcmask 1040384  }
   0x4   :  { %v3340_v26 = vpack.c.bf16 %v50_v25, %v49_v23  ;;  %v2580_v44 = vld [vmem:[%s3966_s2] ss:$0 sm:$0xff]  ;;  %s3222_s15 = smov 112   ;;  %vm560_vm6 = vcmask 1043456   ;;  %s3224_s18 = smov 64  }
   0x5   :  { %2779 = vmatprep.subr.bf16.mxu0 %v3335_v24  ;;  %v2581_v52 = vld [vmem:[%s3967_s4] ss:$0 sm:$0xff]  ;;  %s3225_s19 = smov 72   ;;  %s3226_s20 = smov 104  }
   0x6   :  { %2780 = vmatpush3.bf16.msra.mxu0 %v3335_v24  ;;  %s3227_s22 = smov 48   ;;  %s3977_s25 = smov 40  }
   0x7   :  { %85 = vadd.xlane.f32.xlu0 %v84_v5  ;;  %2781 = vmatprep.subr.bf16.mxu0 %v3340_v26 }
   0xa   :  { %2782 = vmatpush3.bf16.msra.mxu0 %v3340_v26 }
  0x8c   :  { %v83_v6 = vpop.xlane.xlu0 %82  ;;  %v90_v7 = vpop.xlane.xlu1 %89 }
  0x8d   :  { %v92_v8 = vmul.f32 0.03125, %v83_v6  ;;  %v94_v9 = vmul.f32 0.03125, %v90_v7 }
  0x8f   :  { %v95_v10 = vsub.f32 %v3302_v0, %v92_v8  ;;  %v97_v11 = vsub.f32 %v3307_v1, %v94_v9 }
  0x90   :  { %v86_v12 = vpop.xlane.xlu0 %85 }
  0x91   :  { %v93_v13 = vmul.f32 0.03125, %v86_v12  ;;  %v98_v14 = vmul.f32 %v95_v10, %v95_v10  ;;  %v100_v15 = vmul.f32 %v97_v11, %v97_v11 }
  0x93   :  { %v96_v16 = vsub.f32 %v3312_v2, %v93_v13  ;;  %v101_v17 = vsel %vm80_vm0, %v98_v14, 0.0  ;;  %v107_v18 = vsel %vm87_vm1, %v100_v15, 0.0 }
  0x94   :  { %102 = vadd.xlane.f32.xlu1 %v101_v17 }
  0x95   :  { %v99_v19 = vmul.f32 %v96_v16, %v96_v16 }
  0x97   :  { %v104_v20 = vsel %vm80_vm0, %v99_v19, 0.0 }
  0x98   :  { %108 = vadd.xlane.f32.xlu1 %v107_v18  ;;  %105 = vadd.xlane.f32.xlu0 %v104_v20 }
 0x11d   :  { %v103_v27 = vpop.xlane.xlu1 %102 }
 0x11e   :  { %v110_v28 = vmul.f32 0.03125, %v103_v27 }
 0x120   :  { %v113_v29 = vadd.f32 1e-05, %v110_v28 }
 0x121   :  { %v109_v30 = vpop.xlane.xlu1 %108  ;;  %v106_v31 = vpop.xlane.xlu0 %105 }
 0x122   :  { %3063 = vrsqrt.f32 %v113_v29  ;;  %v112_v32 = vmul.f32 0.03125, %v109_v30  ;;  %v111_v33 = vmul.f32 0.03125, %v106_v31 }
 0x124   :  { %v115_v34 = vadd.f32 1e-05, %v112_v32  ;;  %v114_v35 = vadd.f32 1e-05, %v111_v33 }
 0x126   :  { %3065 = vrsqrt.f32 %v115_v34 }
 0x127   :  { %3067 = vrsqrt.f32 %v114_v35 }
 0x12f   :  { %v3064_v36 = vpop.eup %3063 }
 0x130   :  { %v119_v37 = vmul.f32 %v3064_v36, %v95_v10 }
 0x132   :  { %v128_v43 = vmul.f32 %v2579_v38, %v119_v37 }
 0x133   :  { %v3066_v39 = vpop.eup %3065 }
 0x134   :  { %v3068_v40 = vpop.eup %3067  ;;  %v121_v41 = vmul.f32 %v3066_v39, %v97_v11  ;;  %v137_v48 = vadd.f32 %v2580_v44, %v128_v43 }
 0x135   :  { %v120_v42 = vmul.f32 %v3068_v40, %v96_v16 }
 0x136   :  { %v130_v45 = vmul.f32 %v2579_v38, %v121_v41 }
 0x137   :  { %v129_v46 = vmul.f32 %v2579_v38, %v120_v42 }
 0x138   :  { %v139_v47 = vadd.f32 %v2580_v44, %v130_v45 }
 0x139   :  { %v138_v49 = vadd.f32 %v2580_v44, %v129_v46 }
 0x13a   :  { %v141_v50 = vpack.c.bf16 %v139_v47, %v139_v47 }
 0x13b   :  { %v140_v51 = vpack.c.bf16 %v138_v49, %v137_v48 }
 0x13d   :  { %2783 = vmatprep.mubr.msk.bf16.mxu0 %vm80_vm0, %v140_v51  ;;  %v3223_v51 = vmov 0  }
 0x13e   :  { %2784 = vmatmul.mubr.msk.bf16.vlgmr.msra.gmra.mxu0 %vm80_vm0, %v141_v50 }
 0x1fe   :  { %v2785_v53 = vpop.f32.mrf.mxu0 }
 0x1ff   :  { %v199_v54 = vadd.f32 %v2785_v53, %v2581_v52 }
 0x200   :  { %v190_v55 = vpop.f32.mrf.mxu0 }
 0x201   :  { %v3357_v56 = vpack.c.bf16 %v199_v54, %v199_v54  ;;  %v191_v59 = vadd.f32 %v2581_v52, %v190_v55  ;;  %v550_v55 = vld [vmem:[%s3968_s5 + $0x8] sm:$0xff] }
 0x202   :  { %v2786_v57 = vpop.f32.mrf.mxu0 }
 0x203   :  { %210 = vrot.lane.b32.xlu0 %v3357_v56, %s3217_s27 }
 0x204   :  { %v193_v58 = vpop.f32.mrf.mxu0 }
 0x205   :  { %v194_v60 = vadd.f32 %v2581_v52, %v193_v58  ;;  %v3408_v52 = vsel %vm324_vm5, 65535, %v3223_v51  ;;  %v553_v58 = vpack.c.bf16 %v550_v55, %v550_v55 }
 0x207   :  { %v3361_v61 = vpack.c.bf16 %v194_v60, %v191_v59 }
 0x209   :  { %382 = vrot.lane.b32.xlu0 %v3361_v61, %s3218_s28  ;;  %208 = vrot.lane.b32.xlu1 %v3361_v61, %s3217_s27 }
 0x20a   :  { %2791 = vmatprep.mubr.msk.bf16.mxu1 %vm212_vm2, %v3361_v61 }
 0x20d   :  { %388 = vrot.lane.b32.xlu1 %v3357_v56, %s3219_s29 }
 0x211   :  { %386 = vrot.lane.b32.xlu1 %v3361_v61, %s3219_s29 }
 0x215   :  { %384 = vrot.lane.b32.xlu1 %v3357_v56, %s3218_s28 }
 0x275   :  { %v211_v62 = vpop.permute.xlu0 %210 }
 0x276   :  { %3027 = vmatprep.subr.msk.bf16.mxu1 %vm212_vm2, %v211_v62  ;;  %v223_v63 = vsel %vm212_vm2, %v211_v62, 0 }
 0x277   :  { %2788 = vmatpush3.bf16.xpose.msra.mxu1 %v223_v63 }
 0x27b   :  { %v209_v3 = vpop.permute.xlu1 %208  ;;  %v383_v6 = vpop.permute.xlu0 %382 }
 0x27c   :  { %3028 = vmatprep.subr.msk.bf16.mxu1 %vm212_vm2, %v209_v3  ;;  %v220_v4 = vsel %vm212_vm2, %v209_v3, 0 }
 0x27f   :  { %2790 = vmatpush3.bf16.xpose.msra.mxu1 %v220_v4  ;;  %v389_v5 = vpop.permute.xlu1 %388 }
 0x280   :  { %3029 = vmatprep.subr.msk.bf16.mxu1 %vm212_vm2, %v389_v5  ;;  %v400_v7 = vsel %vm212_vm2, %v389_v5, 0 }
 0x283   :  { %v387_v8 = vpop.permute.xlu1 %386 }
 0x284   :  { %v397_v9 = vsel %vm212_vm2, %v387_v8, 0 }
 0x286   :  { %2792 = vmatmul.mubr.msk.bf16.vlgmr.msra.gmra.mxu1 %vm212_vm2, %v3357_v56 }
 0x287   :  { %2804 = vmatpush3.bf16.xpose.msra.mxu1 %v400_v7  ;;  %2807 = vmatprep.mubr.msk.bf16.mxu1 %vm212_vm2, %v383_v6  ;;  %v385_v10 = vpop.permute.xlu1 %384  ;;  %v562_v7 = vsel %vm560_vm6, %v553_v58, 0 }
 0x288   :  { %3030 = vmatprep.subr.msk.bf16.mxu1 %vm212_vm2, %v387_v8 }
 0x28f   :  { %2806 = vmatpush3.bf16.xpose.msra.mxu1 %v397_v9 }
 0x296   :  { %2808 = vmatmul.mubr.msk.bf16.vlgmr.msra.gmra.mxu1 %vm212_vm2, %v385_v10 }
 0x346   :  { %v2793_v11 = vpop.f32.mrf.mxu1 }
 0x347   :  { %v275_v43 = vmul.f32 0.35355338, %v2793_v11 }
 0x348   :  { %v259_v12 = vpop.f32.mrf.mxu1 }
 0x349   :  { %v273_v42 = vmul.f32 0.35355338, %v259_v12  ;;  %v284_v46 = vsel %vm283_vm4, %v275_v43, -inf }
 0x34a   :  { %v2794_v13 = vpop.f32.mrf.mxu1 }
 0x34b   :  { %v277_v44 = vsel %vm276_vm3, %v273_v42, -inf }
 0x34c   :  { %v262_v14 = vpop.f32.mrf.mxu1 }
 0x34d   :  { %v274_v45 = vmul.f32 0.35355338, %v262_v14 }
 0x34f   :  { %v280_v47 = vsel %vm276_vm3, %v274_v45, -inf }
 0x356   :  { %v2809_v15 = vpop.f32.mrf.mxu1 }
 0x357   :  { %v452_v19 = vmul.f32 0.35355338, %v2809_v15 }
 0x358   :  { %v436_v16 = vpop.f32.mrf.mxu1 }
 0x359   :  { %v450_v17 = vmul.f32 0.35355338, %v436_v16  ;;  %v459_v23 = vsel %vm283_vm4, %v452_v19, -inf }
 0x35a   :  { %v2810_v18 = vpop.f32.mrf.mxu1 }
 0x35b   :  { %v453_v20 = vsel %vm276_vm3, %v450_v17, -inf }
 0x35c   :  { %454 = vmax.xlane.f32.xlu0 %v453_v20  ;;  %v439_v21 = vpop.f32.mrf.mxu1 }
 0x35d   :  { %v451_v22 = vmul.f32 0.35355338, %v439_v21 }
 0x35f   :  { %v456_v25 = vsel %vm276_vm3, %v451_v22, -inf }
 0x360   :  { %460 = vmax.xlane.f32.xlu0 %v459_v23  ;;  %457 = vmax.xlane.f32.xlu1 %v456_v25 }
 0x3e5   :  { %v455_v27 = vpop.xlane.xlu0 %454 }
 0x3e6   :  { %v462_v28 = vsub.f32 %v450_v17, %v455_v27 }
 0x3e8   :  { %v465_v29 = vmul.f32 1.442695, %v462_v28 }
 0x3e9   :  { %v461_v30 = vpop.xlane.xlu0 %460  ;;  %v458_v31 = vpop.xlane.xlu1 %457 }
 0x3ea   :  { %3069 = vpow2.f32 %v465_v29  ;;  %v464_v32 = vsub.f32 %v452_v19, %v461_v30  ;;  %v463_v33 = vsub.f32 %v451_v22, %v458_v31 }
 0x3ec   :  { %v469_v34 = vmul.f32 1.442695, %v464_v32  ;;  %v467_v35 = vmul.f32 1.442695, %v463_v33 }
 0x3ee   :  { %3071 = vpow2.f32 %v469_v34 }
 0x3ef   :  { %3073 = vpow2.f32 %v467_v35 }
 0x3f7   :  { %v3070_v36 = vpop.eup %3069 }
 0x3f8   :  { %v471_v37 = vsel %vm276_vm3, %v3070_v36, 0.0 }
 0x3f9   :  { %472 = vadd.xlane.f32.xlu0 %v471_v37 }
 0x3fb   :  { %v3072_v38 = vpop.eup %3071 }
 0x3fc   :  { %v3074_v39 = vpop.eup %3073  ;;  %v477_v40 = vsel %vm283_vm4, %v3072_v38, 0.0 }
 0x3fd   :  { %478 = vadd.xlane.f32.xlu1 %v477_v40  ;;  %v474_v41 = vsel %vm276_vm3, %v3074_v39, 0.0 }
 0x3fe   :  { %475 = vadd.xlane.f32.xlu0 %v474_v41 }
 0x40e   :  { %488 = vrot.lane.b32.xlu1 %v3361_v61, %s3220_s30 }
 0x412   :  { %675 = vrot.lane.b32.xlu1 %v3357_v56, %s3221_s14 }
 0x414   :  { %490 = vrot.lane.b32.xlu0 %v3357_v56, %s3220_s30 }
 0x416   :  { %673 = vrot.lane.b32.xlu1 %v3361_v61, %s3221_s14 }
 0x418   :  { %669 = vrot.lane.b32.xlu0 %v3361_v61, %s3222_s15 }
 0x41a   :  { %671 = vrot.lane.b32.xlu1 %v3357_v56, %s3222_s15 }
 0x437   :  { %278 = vmax.xlane.f32.xlu0 %v277_v44 }
 0x43b   :  { %285 = vmax.xlane.f32.xlu0 %v284_v46 }
 0x43e   :  { %281 = vmax.xlane.f32.xlu1 %v280_v47 }
 0x482   :  { %v473_v48 = vpop.xlane.xlu0 %472 }
 0x483   :  { %3075 = vrcp.f32 %v473_v48 }
 0x486   :  { %v479_v49 = vpop.xlane.xlu1 %478 }
 0x487   :  { %v476_v50 = vpop.xlane.xlu0 %475  ;;  %3077 = vrcp.f32 %v479_v49 }
 0x488   :  { %3079 = vrcp.f32 %v476_v50 }
 0x48a   :  { %v489_v57 = vpop.permute.xlu1 %488 }
 0x48b   :  { %v491_v53 = vpop.permute.xlu0 %490 }
 0x48c   :  { %v500_v54 = vand.u32 %v491_v53, %v3408_v52 }
 0x48e   :  { %2811 = vmatprep.subr.bf16.mxu1 %v500_v54  ;;  %v676_v8 = vpop.permute.xlu1 %675 }
 0x48f   :  { %2812 = vmatpush3.bf16.msra.mxu1 %v500_v54  ;;  %v670_v9 = vpop.permute.xlu0 %669 }
 0x490   :  { %2813 = vmatprep.subr.bf16.mxu1 %v489_v57  ;;  %v3076_v59 = vpop.eup %3075 }
 0x491   :  { %v483_v3 = vmul.f32 %v3076_v59, %v3070_v36  ;;  %v378_v59 = vld [vmem:[%s3968_s5] sm:$0xff] }
 0x492   :  { %v674_v10 = vpop.permute.xlu1 %673 }
 0x493   :  { %2814 = vmatpush3.bf16.msra.mxu1 %v489_v57 }
 0x494   :  { %v3078_v60 = vpop.eup %3077  ;;  %3031 = vmatprep.subr.msk.bf16.mxu1 %vm560_vm6, %v553_v58 }
 0x495   :  { %v3080_v62 = vpop.eup %3079  ;;  %v485_v63 = vmul.f32 %v3078_v60, %v3072_v38  ;;  %v687_v38 = vsel %vm212_vm2, %v676_v8, 0  ;;  %v381_v60 = vpack.c.bf16 %v378_v59, %v378_v59 }
 0x496   :  { %v484_v4 = vmul.f32 %v3080_v62, %v3074_v39  ;;  %v3419_v13 = vpop.permute.xlu1 %671 }
 0x497   :  { %v487_v5 = vpack.c.bf16 %v485_v63, %v485_v63  ;;  %v619_v62 = vsel %vm560_vm6, %v381_v60, 0 }
 0x498   :  { %v486_v6 = vpack.c.bf16 %v484_v4, %v483_v3 }
 0x49a   :  { %2815 = vmatprep.mubr.msk.bf16.mxu1 %vm276_vm3, %v486_v6 }
 0x49b   :  { %2816 = vmatmul.mubr.msk.bf16.vlgmr.msra.gmra.mxu1 %vm276_vm3, %v487_v5 }
 0x49c   :  { %2820 = vmatpush3.bf16.msra.mxu1 %v562_v7 }
 0x49d   :  { %3033 = vmatprep.subr.msk.bf16.mxu1 %vm212_vm2, %v676_v8 }
 0x4c0   :  { %v279_v11 = vpop.xlane.xlu0 %278 }
 0x4c1   :  { %v287_v12 = vsub.f32 %v273_v42, %v279_v11  ;;  %v684_v42 = vsel %vm212_vm2, %v674_v10, 0 }
 0x4c3   :  { %v290_v14 = vmul.f32 1.442695, %v287_v12 }
 0x4c4   :  { %v286_v15 = vpop.xlane.xlu0 %285 }
 0x4c5   :  { %3081 = vpow2.f32 %v290_v14  ;;  %v289_v16 = vsub.f32 %v275_v43, %v286_v15 }
 0x4c7   :  { %v294_v17 = vmul.f32 1.442695, %v289_v16  ;;  %v282_v18 = vpop.xlane.xlu1 %281 }
 0x4c8   :  { %v288_v19 = vsub.f32 %v274_v45, %v282_v18 }
 0x4c9   :  { %3083 = vpow2.f32 %v294_v17 }
 0x4ca   :  { %v292_v20 = vmul.f32 1.442695, %v288_v19 }
 0x4cc   :  { %3085 = vpow2.f32 %v292_v20 }
 0x4d2   :  { %v3082_v21 = vpop.eup %3081 }
 0x4d3   :  { %v296_v22 = vsel %vm276_vm3, %v3082_v21, 0.0 }
 0x4d4   :  { %297 = vadd.xlane.f32.xlu0 %v296_v22 }
 0x4d6   :  { %v3084_v23 = vpop.eup %3083 }
 0x4d7   :  { %v302_v25 = vsel %vm283_vm4, %v3084_v23, 0.0 }
 0x4d8   :  { %303 = vadd.xlane.f32.xlu1 %v302_v25 }
 0x4d9   :  { %v3086_v27 = vpop.eup %3085 }
 0x4da   :  { %v299_v28 = vsel %vm276_vm3, %v3086_v27, 0.0 }
 0x4db   :  { %300 = vadd.xlane.f32.xlu0 %v299_v28 }
 0x4e9   :  { %313 = vrot.lane.b32.xlu1 %v3361_v61, %s3224_s18 }
 0x4ed   :  { %907 = vrot.lane.b32.xlu1 %v3357_v56, %s3225_s19 }
 0x4f1   :  { %905 = vrot.lane.b32.xlu1 %v3361_v61, %s3225_s19  ;;  %315 = vrot.lane.b32.xlu0 %v3357_v56, %s3224_s18 }
 0x4f5   :  { %903 = vrot.lane.b32.xlu1 %v3357_v56, %s3226_s20  ;;  %901 = vrot.lane.b32.xlu0 %v3361_v61, %s3226_s20 }
 0x55b   :  { %v2817_v29 = vpop.f32.mrf.mxu1 }
 0x55c   :  { %v552_v36 = vpack.c.bf16 %v2817_v29, %v2817_v29 }
 0x55d   :  { %v536_v30 = vpop.f32.mrf.mxu1  ;;  %v298_v32 = vpop.xlane.xlu0 %297 }
 0x55f   :  { %v2818_v31 = vpop.f32.mrf.mxu1 }
 0x561   :  { %v539_v33 = vpop.f32.mrf.mxu1  ;;  %v304_v34 = vpop.xlane.xlu1 %303 }
 0x562   :  { %v551_v35 = vpack.c.bf16 %v539_v33, %v536_v30  ;;  %3087 = vrcp.f32 %v304_v34 }
 0x563   :  { %3089 = vrcp.f32 %v298_v32 }
 0x564   :  { %2821 = vmatprep.mubr.msk.bf16.mxu1 %vm212_vm2, %v551_v35  ;;  %v301_v37 = vpop.xlane.xlu0 %300 }
 0x565   :  { %2822 = vmatmul.mubr.msk.bf16.vlgmr.msra.gmra.mxu1 %vm212_vm2, %v552_v36  ;;  %3091 = vrcp.f32 %v301_v37  ;;  %v314_v39 = vpop.permute.xlu1 %313 }
 0x566   :  { %2832 = vmatpush3.bf16.xpose.msra.mxu1 %v687_v38  ;;  %2835 = vmatprep.mubr.msk.bf16.mxu1 %vm212_vm2, %v670_v9 }
 0x567   :  { %3034 = vmatprep.subr.msk.bf16.mxu1 %vm212_vm2, %v674_v10 }
 0x568   :  { %v316_v40 = vpop.permute.xlu0 %315 }
 0x569   :  { %v328_v41 = vand.u32 %v3408_v52, %v316_v40  ;;  %v908_v43 = vpop.permute.xlu1 %907 }
 0x56a   :  { %v919_v50 = vsel %vm212_vm2, %v908_v43, 0 }
 0x56b   :  { %2795 = vmatprep.subr.bf16.mxu0 %v328_v41 }
 0x56c   :  { %2796 = vmatpush3.bf16.msra.mxu0 %v328_v41  ;;  %v902_v51 = vpop.permute.xlu0 %901 }
 0x56d   :  { %2797 = vmatprep.subr.bf16.mxu0 %v314_v39  ;;  %v906_v54 = vpop.permute.xlu1 %905 }
 0x56e   :  { %2834 = vmatpush3.bf16.xpose.msra.mxu1 %v684_v42  ;;  %v916_v57 = vsel %vm212_vm2, %v906_v54, 0 }
 0x56f   :  { %v3088_v44 = vpop.eup %3087  ;;  %3036 = vmatprep.subr.msk.bf16.mxu1 %vm212_vm2, %v908_v43 }
 0x570   :  { %v3090_v45 = vpop.eup %3089  ;;  %2798 = vmatpush3.bf16.msra.mxu0 %v314_v39  ;;  %v310_v47 = vmul.f32 %v3088_v44, %v3084_v23 }
 0x571   :  { %v308_v48 = vmul.f32 %v3090_v45, %v3082_v21  ;;  %v904_v58 = vpop.permute.xlu1 %903  ;;  %3032 = vmatprep.subr.msk.bf16.mxu0 %vm560_vm6, %v381_v60 }
 0x572   :  { %v3092_v46 = vpop.eup %3091  ;;  %v312_v55 = vpack.c.bf16 %v310_v47, %v310_v47 }
 0x573   :  { %v309_v49 = vmul.f32 %v3092_v46, %v3086_v27 }
 0x575   :  { %2836 = vmatmul.mubr.msk.bf16.vlgmr.msra.gmra.mxu1 %vm212_vm2, %v3419_v13  ;;  %v311_v53 = vpack.c.bf16 %v309_v49, %v308_v48 }
 0x576   :  { %2854 = vmatpush3.bf16.xpose.msra.mxu1 %v919_v50  ;;  %2857 = vmatprep.mubr.msk.bf16.mxu1 %vm212_vm2, %v902_v51 }
 0x577   :  { %3037 = vmatprep.subr.msk.bf16.mxu1 %vm212_vm2, %v906_v54  ;;  %2799 = vmatprep.mubr.msk.bf16.mxu0 %vm276_vm3, %v311_v53 }
 0x578   :  { %2800 = vmatmul.mubr.msk.bf16.vlgmr.msra.gmra.mxu0 %vm276_vm3, %v312_v55 }
 0x579   :  { %2826 = vmatpush3.bf16.msra.mxu0 %v619_v62 }
 0x57e   :  { %2856 = vmatpush3.bf16.xpose.msra.mxu1 %v916_v57 }
 0x585   :  { %2858 = vmatmul.mubr.msk.bf16.vlgmr.msra.gmra.mxu1 %vm212_vm2, %v904_v58 }
 0x625   :  { %v3458_v63 = vpop.f32.mrf.mxu1 }
 0x627   :  { %v3460_v3 = vpop.f32.mrf.mxu1 }
 0x629   :  { %v2824_v4 = vpop.f32.mrf.mxu1 }
 0x62b   :  { %v3462_v5 = vpop.f32.mrf.mxu1 }
 0x635   :  { %v2837_v6 = vpop.f32.mrf.mxu1 }
 0x636   :  { %v739_v11 = vmul.f32 0.35355338, %v2837_v6 }
 0x637   :  { %v723_v7 = vpop.f32.mrf.mxu1 }
 0x638   :  { %v737_v8 = vmul.f32 0.35355338, %v723_v7  ;;  %v2801_v9 = vpop.f32.mrf.mxu0  ;;  %v746_v18 = vsel %vm283_vm4, %v739_v11, -inf }
 0x639   :  { %v2838_v10 = vpop.f32.mrf.mxu1  ;;  %v380_v21 = vpack.c.bf16 %v2801_v9, %v2801_v9 }
 0x63a   :  { %v740_v12 = vsel %vm276_vm3, %v737_v8, -inf  ;;  %v364_v13 = vpop.f32.mrf.mxu0 }
 0x63b   :  { %v726_v14 = vpop.f32.mrf.mxu1  ;;  %741 = vmax.xlane.f32.xlu0 %v740_v12 }
 0x63c   :  { %v738_v15 = vmul.f32 0.35355338, %v726_v14  ;;  %v2802_v16 = vpop.f32.mrf.mxu0 }
 0x63e   :  { %v743_v17 = vsel %vm276_vm3, %v738_v15, -inf  ;;  %v367_v19 = vpop.f32.mrf.mxu0 }
 0x63f   :  { %744 = vmax.xlane.f32.xlu1 %v743_v17  ;;  %747 = vmax.xlane.f32.xlu0 %v746_v18  ;;  %v379_v20 = vpack.c.bf16 %v367_v19, %v364_v13 }
 0x641   :  { %2827 = vmatprep.mubr.msk.bf16.mxu0 %vm212_vm2, %v379_v20 }
 0x642   :  { %2828 = vmatmul.mubr.msk.bf16.vlgmr.msra.gmra.mxu0 %vm212_vm2, %v380_v21 }
 0x645   :  { %v2859_v22 = vpop.f32.mrf.mxu1 }
 0x646   :  { %v971_v49 = vmul.f32 0.35355338, %v2859_v22 }
 0x647   :  { %v955_v23 = vpop.f32.mrf.mxu1 }
 0x648   :  { %v969_v46 = vmul.f32 0.35355338, %v955_v23  ;;  %v978_v51 = vsel %vm283_vm4, %v971_v49, -inf }
 0x649   :  { %v2860_v25 = vpop.f32.mrf.mxu1 }
 0x64a   :  { %v972_v48 = vsel %vm276_vm3, %v969_v46, -inf }
 0x64b   :  { %v958_v45 = vpop.f32.mrf.mxu1 }
 0x64c   :  { %v970_v47 = vmul.f32 0.35355338, %v958_v45 }
 0x64e   :  { %v975_v50 = vsel %vm276_vm3, %v970_v47, -inf }
 0x6c4   :  { %v742_v27 = vpop.xlane.xlu0 %741 }
 0x6c5   :  { %v749_v28 = vsub.f32 %v737_v8, %v742_v27 }
 0x6c7   :  { %v752_v29 = vmul.f32 1.442695, %v749_v28  ;;  %v837_v28 = vld [vmem:[%s3968_s5 + $0x10] sm:$0xff] }
 0x6c8   :  { %v748_v30 = vpop.xlane.xlu0 %747  ;;  %v745_v31 = vpop.xlane.xlu1 %744 }
 0x6c9   :  { %3093 = vpow2.f32 %v752_v29  ;;  %v751_v32 = vsub.f32 %v739_v11, %v748_v30  ;;  %v750_v33 = vsub.f32 %v738_v15, %v745_v31  ;;  %v840_v29 = vpack.c.bf16 %v837_v28, %v837_v28  ;;  %v2620_v28 = vld [vmem:[%s3963_s0 + $0x28] sm:$0x1] }
 0x6cb   :  { %v756_v34 = vmul.f32 1.442695, %v751_v32  ;;  %v754_v35 = vmul.f32 1.442695, %v750_v33  ;;  %v848_v30 = vsel %vm560_vm6, %v840_v29, 0 }
 0x6cd   :  { %3095 = vpow2.f32 %v756_v34 }
 0x6ce   :  { %3097 = vpow2.f32 %v754_v35 }
 0x6d6   :  { %v3094_v36 = vpop.eup %3093 }
 0x6d7   :  { %v758_v37 = vsel %vm276_vm3, %v3094_v36, 0.0 }
 0x6d8   :  { %759 = vadd.xlane.f32.xlu0 %v758_v37 }
 0x6da   :  { %v3096_v38 = vpop.eup %3095 }
 0x6db   :  { %v3098_v39 = vpop.eup %3097  ;;  %v764_v40 = vsel %vm283_vm4, %v3096_v38, 0.0 }
 0x6dc   :  { %765 = vadd.xlane.f32.xlu1 %v764_v40  ;;  %v761_v41 = vsel %vm276_vm3, %v3098_v39, 0.0 }
 0x6dd   :  { %762 = vadd.xlane.f32.xlu0 %v761_v41 }
 0x6ed   :  { %775 = vrot.lane.b32.xlu1 %v3361_v61, %s3227_s22 }
 0x6f3   :  { %777 = vrot.lane.b32.xlu0 %v3357_v56, %s3227_s22 }
 0x702   :  { %v3476_v42 = vpop.f32.mrf.mxu0 }
 0x704   :  { %v3478_v43 = vpop.f32.mrf.mxu0 }
 0x706   :  { %v2830_v44 = vpop.f32.mrf.mxu0 }
 0x708   :  { %v658_v31 = vpop.f32.mrf.mxu0 }
 0x711   :  { %973 = vmax.xlane.f32.xlu1 %v972_v48 }
 0x712   :  { %976 = vmax.xlane.f32.xlu0 %v975_v50 }
 0x716   :  { %979 = vmax.xlane.f32.xlu0 %v978_v51 }
 0x761   :  { %v760_v53 = vpop.xlane.xlu0 %759 }
 0x762   :  { %3099 = vrcp.f32 %v760_v53  ;;  %v1069_v53 = vld [vmem:[%s3968_s5 + $0x18] sm:$0xff] }
 0x765   :  { %v766_v54 = vpop.xlane.xlu1 %765 }
 0x766   :  { %v763_v55 = vpop.xlane.xlu0 %762  ;;  %3101 = vrcp.f32 %v766_v54  ;;  %v1072_v54 = vpack.c.bf16 %v1069_v53, %v1069_v53 }
 0x767   :  { %3103 = vrcp.f32 %v763_v55 }
 0x768   :  { %v1080_v55 = vsel %vm560_vm6, %v1072_v54, 0 }
 0x769   :  { %v776_v59 = vpop.permute.xlu1 %775 }
 0x76a   :  { %v778_v57 = vpop.permute.xlu0 %777 }
 0x76b   :  { %v787_v58 = vand.u32 %v778_v57, %v3408_v52  ;;  %v664_v57 = vadd.f32 %v3476_v42, %v3458_v63 }
 0x76d   :  { %2839 = vmatprep.subr.bf16.mxu0 %v787_v58 }
 0x76e   :  { %2840 = vmatpush3.bf16.msra.mxu0 %v787_v58 }
 0x76f   :  { %2841 = vmatprep.subr.bf16.mxu0 %v776_v59  ;;  %v3100_v60 = vpop.eup %3099 }
 0x770   :  { %v770_v7 = vmul.f32 %v3100_v60, %v3094_v36 }
 0x772   :  { %2842 = vmatpush3.bf16.msra.mxu0 %v776_v59  ;;  %v656_v59 = vadd.f32 %v3478_v43, %v3460_v3 }
 0x773   :  { %v3102_v62 = vpop.eup %3101  ;;  %3035 = vmatprep.subr.msk.bf16.mxu0 %vm560_vm6, %v840_v29 }
 0x774   :  { %v3104_v4 = vpop.eup %3103  ;;  %v772_v6 = vmul.f32 %v3102_v62, %v3096_v38 }
 0x775   :  { %v771_v8 = vmul.f32 %v3104_v4, %v3098_v39 }
 0x776   :  { %v774_v9 = vpack.c.bf16 %v772_v6, %v772_v6 }
 0x777   :  { %v773_v10 = vpack.c.bf16 %v771_v8, %v770_v7 }
 0x779   :  { %2843 = vmatprep.mubr.msk.bf16.mxu0 %vm276_vm3, %v773_v10 }
 0x77a   :  { %2844 = vmatmul.mubr.msk.bf16.vlgmr.msra.gmra.mxu0 %vm276_vm3, %v774_v9 }
 0x77b   :  { %2848 = vmatpush3.bf16.msra.mxu0 %v848_v30 }
 0x79a   :  { %v974_v12 = vpop.xlane.xlu1 %973 }
 0x79b   :  { %v977_v11 = vpop.xlane.xlu0 %976  ;;  %v981_v15 = vsub.f32 %v969_v46, %v974_v12 }
 0x79c   :  { %v982_v13 = vsub.f32 %v970_v47, %v977_v11 }
 0x79d   :  { %v984_v18 = vmul.f32 1.442695, %v981_v15 }
 0x79e   :  { %v986_v14 = vmul.f32 1.442695, %v982_v13 }
 0x79f   :  { %v980_v16 = vpop.xlane.xlu0 %979 }
 0x7a0   :  { %3105 = vpow2.f32 %v986_v14  ;;  %v983_v17 = vsub.f32 %v971_v49, %v980_v16  ;;  %v659_v14 = vadd.f32 %v658_v31, %v3462_v5 }
 0x7a2   :  { %v988_v19 = vmul.f32 1.442695, %v983_v17 }
 0x7a4   :  { %3107 = vpow2.f32 %v988_v19 }
 0x7a5   :  { %3109 = vpow2.f32 %v984_v18  ;;  %v2608_v18 = vld [vmem:[%s3969_s6] ss:$0 sm:$0xff] }
 0x7ad   :  { %v3106_v20 = vpop.eup %3105 }
 0x7ae   :  { %v993_v21 = vsel %vm276_vm3, %v3106_v20, 0.0 }
 0x7af   :  { %994 = vadd.xlane.f32.xlu0 %v993_v21 }
 0x7b1   :  { %v3108_v22 = vpop.eup %3107 }
 0x7b2   :  { %v996_v23 = vsel %vm283_vm4, %v3108_v22, 0.0  ;;  %v3110_v25 = vpop.eup %3109 }
 0x7b3   :  { %997 = vadd.xlane.f32.xlu1 %v996_v23  ;;  %v990_v27 = vsel %vm276_vm3, %v3110_v25, 0.0 }
 0x7b7   :  { %991 = vadd.xlane.f32.xlu1 %v990_v27 }
 0x7c5   :  { %1009 = vrot.lane.b32.xlu0 %v3357_v56, %s3977_s25 }
 0x7c8   :  { %1007 = vrot.lane.b32.xlu1 %v3361_v61, %s3977_s25 }
 0x838   :  { %v995_v32 = vpop.xlane.xlu0 %994 }
 0x83a   :  { %v2845_v33 = vpop.f32.mrf.mxu0 }
 0x83b   :  { %v839_v44 = vpack.c.bf16 %v2845_v33, %v2845_v33 }
 0x83c   :  { %v1010_v34 = vpop.permute.xlu0 %1009  ;;  %v823_v35 = vpop.f32.mrf.mxu0 }
 0x83d   :  { %v1019_v36 = vand.u32 %v1010_v34, %v3408_v52  ;;  %v998_v37 = vpop.xlane.xlu1 %997 }
 0x83e   :  { %v2846_v38 = vpop.f32.mrf.mxu0  ;;  %3111 = vrcp.f32 %v998_v37 }
 0x83f   :  { %2861 = vmatprep.subr.bf16.mxu0 %v1019_v36  ;;  %3113 = vrcp.f32 %v995_v32 }
 0x840   :  { %v826_v39 = vpop.f32.mrf.mxu0 }
 0x841   :  { %v838_v40 = vpack.c.bf16 %v826_v39, %v823_v35  ;;  %v992_v41 = vpop.xlane.xlu1 %991 }
 0x842   :  { %3115 = vrcp.f32 %v992_v41 }
 0x843   :  { %2849 = vmatprep.mubr.msk.bf16.mxu0 %vm212_vm2, %v838_v40 }
 0x844   :  { %2850 = vmatmul.mubr.msk.bf16.vlgmr.msra.gmra.mxu0 %vm212_vm2, %v839_v44 }
 0x845   :  { %2862 = vmatpush3.bf16.msra.mxu0 %v1019_v36  ;;  %v1008_v56 = vpop.permute.xlu1 %1007 }
 0x846   :  { %2863 = vmatprep.subr.bf16.mxu0 %v1008_v56 }
 0x849   :  { %2864 = vmatpush3.bf16.msra.mxu0 %v1008_v56 }
 0x84a   :  { %3038 = vmatprep.subr.msk.bf16.mxu0 %vm560_vm6, %v1072_v54 }
 0x84b   :  { %v3112_v61 = vpop.eup %3111 }
 0x84c   :  { %v3114_v45 = vpop.eup %3113  ;;  %v1004_v47 = vmul.f32 %v3112_v61, %v3108_v22  ;;  %v2618_v22 = vld [vmem:[%s3963_s0 + $0x18] sm:$0xff] }
 0x84d   :  { %v1003_v49 = vmul.f32 %v3114_v45, %v3106_v20  ;;  %v1364_v27 = vsel %vm80_vm0, %v2618_v22, 0.0 }
 0x84e   :  { %v1006_v51 = vpack.c.bf16 %v1004_v47, %v1004_v47 }
 0x84f   :  { %v3116_v46 = vpop.eup %3115 }
 0x850   :  { %v1002_v48 = vmul.f32 %v3116_v46, %v3110_v25 }
 0x852   :  { %v1005_v50 = vpack.c.bf16 %v1003_v49, %v1002_v48 }
 0x854   :  { %2865 = vmatprep.mubr.msk.bf16.mxu0 %vm276_vm3, %v1005_v50 }
 0x855   :  { %2866 = vmatmul.mubr.msk.bf16.vlgmr.msra.gmra.mxu0 %vm276_vm3, %v1006_v51 }
 0x856   :  { %2870 = vmatpush3.bf16.msra.mxu0 %v1080_v55 }
 0x904   :  { %v2851_v58 = vpop.f32.mrf.mxu0 }
 0x905   :  { %v900_v60 = vadd.f32 %v2851_v58, %v664_v57 }
 0x906   :  { %v884_v62 = vpop.f32.mrf.mxu0 }
 0x907   :  { %v898_v4 = vadd.f32 %v884_v62, %v656_v59 }
 0x908   :  { %v2852_v6 = vpop.f32.mrf.mxu0 }
 0x90a   :  { %v887_v7 = vpop.f32.mrf.mxu0 }
 0x90b   :  { %v899_v15 = vadd.f32 %v887_v7, %v659_v14 }
 0x915   :  { %v2867_v8 = vpop.f32.mrf.mxu0 }
 0x916   :  { %v1071_v13 = vpack.c.bf16 %v2867_v8, %v2867_v8  ;;  %v57_v8 = vld [vmem:[%s3970_s9 + $0x10] sm:$0xff] }
 0x917   :  { %v1055_v9 = vpop.f32.mrf.mxu0 }
 0x919   :  { %v2868_v10 = vpop.f32.mrf.mxu0 }
 0x91b   :  { %v1058_v11 = vpop.f32.mrf.mxu0 }
 0x91c   :  { %v1070_v12 = vpack.c.bf16 %v1058_v11, %v1055_v9  ;;  %v58_v9 = vld [vmem:[%s3970_s9 + $0x18] sm:$0xff]  ;;  %v55_v11 = vld [vmem:[%s3970_s9] sm:$0xff] }
 0x91d   :  { %v3584_v10 = vpack.c.bf16 %v58_v9, %v57_v8  ;;  %v73_v8 = vld [vmem:[%s3973_s11 + $0x68] sm:$0xff] }
 0x91e   :  { %2871 = vmatprep.mubr.msk.bf16.mxu0 %vm212_vm2, %v1070_v12  ;;  %v56_v12 = vld [vmem:[%s3970_s9 + $0x8] sm:$0xff] }
 0x91f   :  { %2872 = vmatmul.mubr.msk.bf16.vlgmr.msra.gmra.mxu0 %vm212_vm2, %v1071_v13  ;;  %2875 = vmatprep.subr.bf16.mxu1 %v3584_v10  ;;  %v3594_v13 = vpack.c.bf16 %v56_v12, %v55_v11  ;;  %v70_v11 = vld [vmem:[%s3973_s11 + $0x50] sm:$0xff]  ;;  %v71_v12 = vld [vmem:[%s3973_s11 + $0x58] sm:$0xff] }
 0x920   :  { %2876 = vmatpush3.bf16.msra.mxu1 %v3584_v10 }
 0x921   :  { %2877 = vmatprep.subr.bf16.mxu1 %v3594_v13 }
 0x924   :  { %2878 = vmatpush3.bf16.msra.mxu1 %v3594_v13 }
 0x925   :  { %2903 = vmatprep.subr.bf16.mxu1 %v3335_v24 }
 0x9df   :  { %v2873_v63 = vpop.f32.mrf.mxu0 }
 0x9e0   :  { %v1132_v16 = vadd.f32 %v2873_v63, %v900_v60 }
 0x9e1   :  { %v1116_v42 = vpop.f32.mrf.mxu0 }
 0x9e2   :  { %v1130_v3 = vadd.f32 %v1116_v42, %v898_v4  ;;  %v1135_v5 = vadd.f32 %v1132_v16, %v3307_v1  ;;  %v1370_v1 = vsel %vm87_vm1, %v2620_v28, 0.0 }
 0x9e3   :  { %v2874_v43 = vpop.f32.mrf.mxu0 }
 0x9e4   :  { %v1133_v17 = vadd.f32 %v1130_v3, %v3302_v0  ;;  %v3534_v29 = vadd.f32 %v2608_v18, %v1135_v5 }
 0x9e5   :  { %v1119_v19 = vpop.f32.mrf.mxu0 }
 0x9e6   :  { %v3519_v20 = vadd.f32 %v2608_v18, %v1133_v17  ;;  %v1131_v21 = vadd.f32 %v1119_v19, %v899_v15  ;;  %v1151_v31 = vsel %vm87_vm1, %v3534_v29, 0.0 }
 0x9e8   :  { %v1134_v23 = vadd.f32 %v1131_v21, %v3312_v2  ;;  %v1145_v25 = vsel %vm80_vm0, %v3519_v20, 0.0  ;;  %v2619_v2 = vld [vmem:[%s3963_s0 + $0x20] sm:$0xff] }
 0x9e9   :  { %1146 = vadd.xlane.f32.xlu1 %v1145_v25  ;;  %v1367_v32 = vsel %vm80_vm0, %v2619_v2, 0.0 }
 0x9ea   :  { %v3528_v0 = vadd.f32 %v2608_v18, %v1134_v23 }
 0x9ec   :  { %v1148_v30 = vsel %vm80_vm0, %v3528_v0, 0.0 }
 0x9ed   :  { %1149 = vadd.xlane.f32.xlu0 %v1148_v30  ;;  %1365 = vadd.xlane.f32.xlu1 %v1364_v27 }
 0x9f1   :  { %1152 = vadd.xlane.f32.xlu0 %v1151_v31  ;;  %1371 = vadd.xlane.f32.xlu1 %v1370_v1  ;;  %v2609_v31 = vld [vmem:[%s3971_s7] ss:$0 sm:$0xff] }
 0x9f5   :  { %1368 = vadd.xlane.f32.xlu0 %v1367_v32 }
 0xa72   :  { %v1147_v33 = vpop.xlane.xlu1 %1146 }
 0xa73   :  { %v1154_v34 = vmul.f32 0.03125, %v1147_v33 }
 0xa75   :  { %v3546_v35 = vsub.f32 %v3519_v20, %v1154_v34 }
 0xa76   :  { %v1150_v36 = vpop.xlane.xlu0 %1149  ;;  %v1366_v37 = vpop.xlane.xlu1 %1365 }
 0xa77   :  { %v1155_v38 = vmul.f32 0.03125, %v1150_v36  ;;  %v1373_v39 = vmul.f32 0.03125, %v1366_v37  ;;  %v1160_v40 = vmul.f32 %v3546_v35, %v3546_v35  ;;  %v2610_v36 = vld [vmem:[%s3972_s8] ss:$0 sm:$0xff] }
 0xa79   :  { %v3551_v41 = vsub.f32 %v3528_v0, %v1155_v38  ;;  %v3553_v44 = vsub.f32 %v2618_v22, %v1373_v39  ;;  %v1163_v56 = vsel %vm80_vm0, %v1160_v40, 0.0 }
 0xa7a   :  { %1164 = vadd.xlane.f32.xlu0 %v1163_v56  ;;  %v1153_v61 = vpop.xlane.xlu0 %1152  ;;  %v1372_v45 = vpop.xlane.xlu1 %1371 }
 0xa7b   :  { %v1156_v46 = vmul.f32 0.03125, %v1153_v61  ;;  %v1375_v47 = vmul.f32 0.03125, %v1372_v45  ;;  %v1161_v48 = vmul.f32 %v3551_v41, %v3551_v41  ;;  %v1379_v49 = vmul.f32 %v3553_v44, %v3553_v44 }
 0xa7d   :  { %v3561_v50 = vsub.f32 %v3534_v29, %v1156_v46  ;;  %v3563_v51 = vsub.f32 %v2620_v28, %v1375_v47  ;;  %v1166_v53 = vsel %vm80_vm0, %v1161_v48, 0.0  ;;  %v1382_v57 = vsel %vm80_vm0, %v1379_v49, 0.0 }
 0xa7e   :  { %1167 = vadd.xlane.f32.xlu1 %v1166_v53  ;;  %v1369_v54 = vpop.xlane.xlu0 %1368 }
 0xa7f   :  { %v1374_v55 = vmul.f32 0.03125, %v1369_v54  ;;  %v1162_v58 = vmul.f32 %v3561_v50, %v3561_v50  ;;  %v1381_v59 = vmul.f32 %v3563_v51, %v3563_v51  ;;  %v3207_v54 = vld [vmem:[%s3965_s1] ss:$0 sm:$0xff] }
 0xa81   :  { %v3571_v60 = vsub.f32 %v2619_v2, %v1374_v55  ;;  %v1169_v62 = vsel %vm87_vm1, %v1162_v58, 0.0  ;;  %v1388_v4 = vsel %vm87_vm1, %v1381_v59, 0.0 }
 0xa82   :  { %1383 = vadd.xlane.f32.xlu1 %v1382_v57  ;;  %1170 = vadd.xlane.f32.xlu0 %v1169_v62 }
 0xa83   :  { %v1380_v6 = vmul.f32 %v3571_v60, %v3571_v60 }
 0xa85   :  { %v1385_v7 = vsel %vm80_vm0, %v1380_v6, 0.0  ;;  %v74_v6 = vld [vmem:[%s3973_s11 + $0x70] sm:$0xff] }
 0xa86   :  { %1389 = vadd.xlane.f32.xlu1 %v1388_v4  ;;  %1386 = vadd.xlane.f32.xlu0 %v1385_v7  ;;  %v75_v7 = vld [vmem:[%s3973_s11 + $0x78] sm:$0xff] }
 0xb03   :  { %v1165_v63 = vpop.xlane.xlu0 %1164 }
 0xb04   :  { %v1172_v42 = vmul.f32 0.03125, %v1165_v63  ;;  %v3650_v63 = vpack.c.bf16 %v71_v12, %v70_v11 }
 0xb06   :  { %v1175_v14 = vadd.f32 1e-05, %v1172_v42  ;;  %v68_v42 = vld [vmem:[%s3973_s11 + $0x40] sm:$0xff] }
 0xb07   :  { %v1168_v3 = vpop.xlane.xlu1 %1167 }
 0xb08   :  { %3117 = vrsqrt.f32 %v1175_v14  ;;  %v1173_v43 = vmul.f32 0.03125, %v1168_v3  ;;  %v69_v14 = vld [vmem:[%s3973_s11 + $0x48] sm:$0xff] }
 0xb09   :  { %v3660_v3 = vpack.c.bf16 %v69_v14, %v68_v42 }
 0xb0a   :  { %v1176_v15 = vadd.f32 1e-05, %v1173_v43  ;;  %v66_v43 = vld [vmem:[%s3973_s11 + $0x30] sm:$0xff] }
 0xb0b   :  { %v1384_v16 = vpop.xlane.xlu1 %1383  ;;  %v1171_v17 = vpop.xlane.xlu0 %1170 }
 0xb0c   :  { %3119 = vrsqrt.f32 %v1176_v15  ;;  %v1391_v18 = vmul.f32 0.03125, %v1384_v16  ;;  %v1174_v19 = vmul.f32 0.03125, %v1171_v17  ;;  %v67_v15 = vld [vmem:[%s3973_s11 + $0x38] sm:$0xff]  ;;  %v64_v17 = vld [vmem:[%s3973_s11 + $0x20] sm:$0xff] }
 0xb0d   :  { %v3670_v16 = vpack.c.bf16 %v67_v15, %v66_v43 }
 0xb0e   :  { %v1394_v21 = vadd.f32 1e-05, %v1391_v18  ;;  %v1177_v22 = vadd.f32 1e-05, %v1174_v19  ;;  %v65_v18 = vld [vmem:[%s3973_s11 + $0x28] sm:$0xff] }
 0xb0f   :  { %v1390_v5 = vpop.xlane.xlu1 %1389  ;;  %v1387_v23 = vpop.xlane.xlu0 %1386  ;;  %v3680_v19 = vpack.c.bf16 %v65_v18, %v64_v17 }
 0xb10   :  { %3121 = vrsqrt.f32 %v1394_v21  ;;  %v1393_v25 = vmul.f32 0.03125, %v1390_v5  ;;  %v1392_v27 = vmul.f32 0.03125, %v1387_v23  ;;  %v62_v21 = vld [vmem:[%s3973_s11 + $0x10] sm:$0xff]  ;;  %v60_v23 = vld [vmem:[%s3973_s11] sm:$0xff] }
 0xb11   :  { %3123 = vrsqrt.f32 %v1177_v22  ;;  %v63_v22 = vld [vmem:[%s3973_s11 + $0x18] sm:$0xff] }
 0xb12   :  { %v1396_v28 = vadd.f32 1e-05, %v1393_v25  ;;  %v1395_v30 = vadd.f32 1e-05, %v1392_v27  ;;  %v3690_v5 = vpack.c.bf16 %v63_v22, %v62_v21  ;;  %v61_v25 = vld [vmem:[%s3973_s11 + $0x8] sm:$0xff] }
 0xb13   :  { %v3700_v27 = vpack.c.bf16 %v61_v25, %v60_v23  ;;  %v3743_v23 = vld [vmem:[%s3975_s12] ss:$0 sm:$0xff] }
 0xb14   :  { %3125 = vrsqrt.f32 %v1396_v28  ;;  %v2611_v28 = vld [vmem:[%s3974_s10] ss:$0 sm:$0xff] }
 0xb15   :  { %v3118_v1 = vpop.eup %3117  ;;  %3127 = vrsqrt.f32 %v1395_v30 }
 0xb16   :  { %v1181_v2 = vmul.f32 %v3118_v1, %v3546_v35 }
 0xb18   :  { %v1190_v34 = vmul.f32 %v2609_v31, %v1181_v2 }
 0xb19   :  { %v3120_v32 = vpop.eup %3119 }
 0xb1a   :  { %v1182_v33 = vmul.f32 %v3120_v32, %v3551_v41  ;;  %v1199_v40 = vadd.f32 %v2610_v36, %v1190_v34 }
 0xb1c   :  { %v1191_v37 = vmul.f32 %v2609_v31, %v1182_v33 }
 0xb1d   :  { %v3122_v38 = vpop.eup %3121 }
 0xb1e   :  { %v3124_v39 = vpop.eup %3123  ;;  %v1200_v56 = vadd.f32 %v2610_v36, %v1191_v37  ;;  %v1400_v35 = vmul.f32 %v3122_v38, %v3553_v44  ;;  %v3208_v44 = vld [vmem:[%s3966_s2] ss:$0 sm:$0xff] }
 0xb1f   :  { %v1183_v61 = vmul.f32 %v3124_v39, %v3561_v50 }
 0xb20   :  { %v1202_v45 = vpack.c.bf16 %v1200_v56, %v1199_v40  ;;  %v1403_v55 = vmul.f32 %v3207_v54, %v1400_v35 }
 0xb21   :  { %v3126_v46 = vpop.eup %3125  ;;  %v1192_v47 = vmul.f32 %v2609_v31, %v1183_v61  ;;  %v3209_v61 = vld [vmem:[%s3967_s4] ss:$0 sm:$0xff] }
 0xb22   :  { %v3128_v48 = vpop.eup %3127  ;;  %v1402_v41 = vmul.f32 %v3126_v46, %v3563_v51  ;;  %2879 = vmatprep.mubr.msk.bf16.mxu1 %vm80_vm0, %v1202_v45  ;;  %v1406_v51 = vadd.f32 %v3208_v44, %v1403_v55 }
 0xb23   :  { %v1201_v49 = vadd.f32 %v2610_v36, %v1192_v47  ;;  %v1401_v53 = vmul.f32 %v3128_v48, %v3571_v60 }
 0xb24   :  { %v1405_v58 = vmul.f32 %v3207_v54, %v1402_v41 }
 0xb25   :  { %v1203_v57 = vpack.c.bf16 %v1201_v49, %v1201_v49  ;;  %v1404_v50 = vmul.f32 %v3207_v54, %v1401_v53 }
 0xb26   :  { %v1408_v62 = vadd.f32 %v3208_v44, %v1405_v58 }
 0xb27   :  { %2880 = vmatmul.mubr.msk.bf16.vlgmr.msra.gmra.mxu1 %vm80_vm0, %v1203_v57  ;;  %v1407_v59 = vadd.f32 %v3208_v44, %v1404_v50 }
 0xb28   :  { %2904 = vmatpush3.bf16.msra.mxu1 %v3335_v24  ;;  %v1410_v4 = vpack.c.bf16 %v1408_v62, %v1408_v62  ;;  %v3630_v24 = vpack.c.bf16 %v75_v7, %v74_v6 }
 0xb29   :  { %2905 = vmatprep.subr.bf16.mxu1 %v3340_v26  ;;  %v1409_v60 = vpack.c.bf16 %v1407_v59, %v1406_v51 }
 0xb2a   :  { %2883 = vmatprep.subr.bf16.mxu0 %v3630_v24 }
 0xb2b   :  { %2907 = vmatprep.mubr.msk.bf16.mxu1 %vm80_vm0, %v1409_v60  ;;  %2884 = vmatpush3.bf16.msra.mxu0 %v3630_v24 }
 0xb2c   :  { %2906 = vmatpush3.bf16.msra.mxu1 %v3340_v26  ;;  %v72_v26 = vld [vmem:[%s3973_s11 + $0x60] sm:$0xff] }
 0xb2d   :  { %v3640_v9 = vpack.c.bf16 %v73_v8, %v72_v26 }
 0xb2f   :  { %2908 = vmatmul.mubr.msk.bf16.vlgmr.msra.gmra.mxu1 %vm80_vm0, %v1410_v4  ;;  %2885 = vmatprep.subr.bf16.mxu0 %v3640_v9 }
 0xb30   :  { %2886 = vmatpush3.bf16.msra.mxu0 %v3640_v9 }
 0xb31   :  { %2887 = vmatprep.subr.bf16.mxu0 %v3650_v63 }
 0xb34   :  { %2888 = vmatpush3.bf16.msra.mxu0 %v3650_v63 }
 0xb35   :  { %2889 = vmatprep.subr.bf16.mxu0 %v3660_v3 }
 0xb38   :  { %2890 = vmatpush3.bf16.msra.mxu0 %v3660_v3 }
 0xb39   :  { %2891 = vmatprep.subr.bf16.mxu0 %v3670_v16 }
 0xb3c   :  { %2892 = vmatpush3.bf16.msra.mxu0 %v3670_v16 }
 0xb3d   :  { %2893 = vmatprep.subr.bf16.mxu0 %v3680_v19 }
 0xb40   :  { %2894 = vmatpush3.bf16.msra.mxu0 %v3680_v19 }
 0xb41   :  { %2895 = vmatprep.subr.bf16.mxu0 %v3690_v5 }
 0xb44   :  { %2896 = vmatpush3.bf16.msra.mxu0 %v3690_v5 }
 0xb45   :  { %2897 = vmatprep.subr.bf16.mxu0 %v3700_v27 }
 0xb48   :  { %2898 = vmatpush3.bf16.msra.mxu0 %v3700_v27 }
 0xbe7   :  { %v2881_v30 = vpop.f32.mrf.mxu1 }
 0xbe8   :  { %v1261_v1 = vadd.f32 %v2881_v30, %v2611_v28 }
 0xbe9   :  { %v1252_v2 = vpop.f32.mrf.mxu1 }
 0xbea   :  { %v2616_v31 = vmul.f32 -1.702, %v1261_v1  ;;  %v1253_v32 = vadd.f32 %v2611_v28, %v1252_v2 }
 0xbeb   :  { %v2882_v33 = vpop.f32.mrf.mxu1 }
 0xbec   :  { %v1276_v34 = vmul.f32 1.442695, %v2616_v31  ;;  %v2614_v36 = vmul.f32 -1.702, %v1253_v32 }
 0xbed   :  { %v1255_v37 = vpop.f32.mrf.mxu1 }
 0xbee   :  { %3129 = vpow2.f32 %v1276_v34  ;;  %v1272_v38 = vmul.f32 1.442695, %v2614_v36  ;;  %v1256_v39 = vadd.f32 %v2611_v28, %v1255_v37 }
 0xbef   :  { %v2909_v40 = vpop.f32.mrf.mxu1 }
 0xbf0   :  { %3131 = vpow2.f32 %v1272_v38  ;;  %v2615_v56 = vmul.f32 -1.702, %v1256_v39  ;;  %v1460_v35 = vadd.f32 %v3209_v61, %v2909_v40 }
 0xbf1   :  { %v1451_v45 = vpop.f32.mrf.mxu1 }
 0xbf2   :  { %v1274_v46 = vmul.f32 1.442695, %v2615_v56  ;;  %v3710_v47 = vpack.c.bf16 %v1460_v35, %v1460_v35  ;;  %v1452_v49 = vadd.f32 %v3209_v61, %v1451_v45 }
 0xbf3   :  { %v2910_v48 = vpop.f32.mrf.mxu1 }
 0xbf4   :  { %3133 = vpow2.f32 %v1274_v46  ;;  %1471 = vrot.lane.b32.xlu0 %v3710_v47, %s3217_s27 }
 0xbf5   :  { %v1454_v41 = vpop.f32.mrf.mxu1 }
 0xbf6   :  { %v1455_v53 = vadd.f32 %v3209_v61, %v1454_v41 }
 0xbf8   :  { %v3714_v54 = vpack.c.bf16 %v1455_v53, %v1452_v49 }
 0xbfa   :  { %1637 = vrot.lane.b32.xlu0 %v3714_v54, %s3218_s28  ;;  %1469 = vrot.lane.b32.xlu1 %v3714_v54, %s3217_s27 }
 0xbfb   :  { %v3130_v55 = vpop.eup %3129  ;;  %2915 = vmatprep.mubr.msk.bf16.mxu1 %vm212_vm2, %v3714_v54 }
 0xbfc   :  { %v1280_v50 = vadd.f32 1.0, %v3130_v55 }
 0xbfd   :  { %v3132_v57 = vpop.eup %3131 }
 0xbfe   :  { %v1278_v58 = vadd.f32 1.0, %v3132_v57  ;;  %1643 = vrot.lane.b32.xlu1 %v3710_v47, %s3219_s29  ;;  %3135 = vrcp.f32 %v1280_v50 }
 0xc00   :  { %3137 = vrcp.f32 %v1278_v58 }
 0xc01   :  { %v3134_v44 = vpop.eup %3133 }
 0xc02   :  { %v1279_v51 = vadd.f32 1.0, %v3134_v44  ;;  %1641 = vrot.lane.b32.xlu1 %v3714_v54, %s3219_s29 }
 0xc04   :  { %3139 = vrcp.f32 %v1279_v51 }
 0xc06   :  { %1639 = vrot.lane.b32.xlu1 %v3710_v47, %s3218_s28 }
 0xc0b   :  { %v3136_v59 = vpop.eup %3135 }
 0xc0c   :  { %v1289_v4 = vmul.f32 %v3136_v59, %v1261_v1 }
 0xc0d   :  { %v3138_v60 = vpop.eup %3137 }
 0xc0e   :  { %v1287_v6 = vmul.f32 %v3138_v60, %v1253_v32  ;;  %v1291_v8 = vpack.c.bf16 %v1289_v4, %v1289_v4 }
 0xc11   :  { %v3140_v62 = vpop.eup %3139 }
 0xc12   :  { %v1288_v7 = vmul.f32 %v3140_v62, %v1256_v39 }
 0xc14   :  { %v1290_v26 = vpack.c.bf16 %v1288_v7, %v1287_v6 }
 0xc16   :  { %2899 = vmatprep.mubr.bf16.mxu0 %v1290_v26 }
 0xc17   :  { %2900 = vmatmul.mubr.bf16.vlgmr.msra.gmra.mxu0 %v1291_v8 }
 0xc66   :  { %v1472_v11 = vpop.permute.xlu0 %1471 }
 0xc67   :  { %v1483_v12 = vsel %vm212_vm2, %v1472_v11, 0  ;;  %3039 = vmatprep.subr.msk.bf16.mxu1 %vm212_vm2, %v1472_v11 }
 0xc68   :  { %2912 = vmatpush3.bf16.xpose.msra.mxu1 %v1483_v12 }
 0xc6c   :  { %v1638_v42 = vpop.permute.xlu0 %1637  ;;  %v1470_v14 = vpop.permute.xlu1 %1469 }
 0xc6d   :  { %3040 = vmatprep.subr.msk.bf16.mxu1 %vm212_vm2, %v1470_v14  ;;  %2931 = vmatprep.mubr.msk.bf16.mxu0 %vm212_vm2, %v1638_v42  ;;  %v1480_v43 = vsel %vm212_vm2, %v1470_v14, 0 }
 0xc70   :  { %2914 = vmatpush3.bf16.xpose.msra.mxu1 %v1480_v43  ;;  %v1644_v15 = vpop.permute.xlu1 %1643 }
 0xc71   :  { %v1655_v17 = vsel %vm212_vm2, %v1644_v15, 0  ;;  %3041 = vmatprep.subr.msk.bf16.mxu0 %vm212_vm2, %v1644_v15 }
 0xc72   :  { %2928 = vmatpush3.bf16.xpose.msra.mxu0 %v1655_v17 }
 0xc74   :  { %v1642_v18 = vpop.permute.xlu1 %1641 }
 0xc75   :  { %3042 = vmatprep.subr.msk.bf16.mxu0 %vm212_vm2, %v1642_v18  ;;  %v1652_v21 = vsel %vm212_vm2, %v1642_v18, 0 }
 0xc77   :  { %2916 = vmatmul.mubr.msk.bf16.vlgmr.msra.gmra.mxu1 %vm212_vm2, %v3710_v47 }
 0xc78   :  { %v1640_v22 = vpop.permute.xlu1 %1639 }
 0xc7a   :  { %2930 = vmatpush3.bf16.xpose.msra.mxu0 %v1652_v21 }
 0xc81   :  { %2932 = vmatmul.mubr.msk.bf16.vlgmr.msra.gmra.mxu0 %vm212_vm2, %v1640_v22 }
 0xcd7   :  { %v2901_v25 = vpop.f32.mrf.mxu0 }
 0xcd8   :  { %v1349_v28 = vadd.f32 %v2901_v25, %v3743_v23 }
 0xcd9   :  { %v1340_v30 = vpop.f32.mrf.mxu0 }
 0xcda   :  { %v1356_v1 = vadd.f32 %v1349_v28, %v3534_v29  ;;  %v1341_v2 = vadd.f32 %v3743_v23, %v1340_v30 }
 0xcdb   :  { %v2902_v31 = vpop.f32.mrf.mxu0 }
 0xcdc   :  { %1359 = vst.msk [vmem:[%s3976_s13 + $0x10] sm:$0x1] %vm87_vm1, %v1356_v1  ;;  %v1354_v32 = vadd.f32 %v1341_v2, %v3519_v20 }
 0xcdd   :  { %v1343_v33 = vpop.f32.mrf.mxu0 }
 0xcde   :  { %1357 = vst.msk [vmem:[%s3976_s13] sm:$0xff] %vm80_vm0, %v1354_v32  ;;  %v1344_v34 = vadd.f32 %v3743_v23, %v1343_v33 }
 0xce0   :  { %v1355_v29 = vadd.f32 %v1344_v34, %v3528_v0 }
 0xce2   :  { %1358 = vst.msk [vmem:[%s3976_s13 + $0x8] sm:$0xff] %vm80_vm0, %v1355_v29 }
 0xd37   :  { %v2917_v36 = vpop.f32.mrf.mxu1 }
 0xd38   :  { %v1535_v20 = vmul.f32 0.35355338, %v2917_v36 }
 0xd39   :  { %v1519_v37 = vpop.f32.mrf.mxu1 }
 0xd3a   :  { %v1533_v38 = vmul.f32 0.35355338, %v1519_v37  ;;  %v1542_v35 = vsel %vm283_vm4, %v1535_v20, -inf }
 0xd3b   :  { %v2918_v39 = vpop.f32.mrf.mxu1 }
 0xd3c   :  { %v1536_v40 = vsel %vm276_vm3, %v1533_v38, -inf }
 0xd3d   :  { %1537 = vmax.xlane.f32.xlu0 %v1536_v40  ;;  %v1522_v56 = vpop.f32.mrf.mxu1 }
 0xd3e   :  { %v1534_v61 = vmul.f32 0.35355338, %v1522_v56 }
 0xd40   :  { %v1539_v45 = vsel %vm276_vm3, %v1534_v61, -inf }
 0xd41   :  { %v2933_v0 = vpop.f32.mrf.mxu0  ;;  %1543 = vmax.xlane.f32.xlu0 %v1542_v35  ;;  %1540 = vmax.xlane.f32.xlu1 %v1539_v45 }
 0xd42   :  { %v1707_v46 = vmul.f32 0.35355338, %v2933_v0 }
 0xd43   :  { %v1691_v48 = vpop.f32.mrf.mxu0 }
 0xd44   :  { %v1705_v41 = vmul.f32 0.35355338, %v1691_v48  ;;  %v1714_v49 = vsel %vm283_vm4, %v1707_v46, -inf }
 0xd45   :  { %v2934_v53 = vpop.f32.mrf.mxu0  ;;  %1715 = vmax.xlane.f32.xlu1 %v1714_v49 }
 0xd46   :  { %v1708_v55 = vsel %vm276_vm3, %v1705_v41, -inf }
 0xd47   :  { %v1694_v57 = vpop.f32.mrf.mxu0  ;;  %1709 = vmax.xlane.f32.xlu0 %v1708_v55 }
 0xd48   :  { %v1706_v50 = vmul.f32 0.35355338, %v1694_v57 }
 0xd4a   :  { %v1711_v58 = vsel %vm276_vm3, %v1706_v50, -inf }
 0xd4b   :  { %1712 = vmax.xlane.f32.xlu0 %v1711_v58 }
 0xdc6   :  { %v1538_v44 = vpop.xlane.xlu0 %1537 }
 0xdc7   :  { %v1545_v51 = vsub.f32 %v1533_v38, %v1538_v44 }
 0xdc9   :  { %v1548_v4 = vmul.f32 1.442695, %v1545_v51 }
 0xdca   :  { %v1544_v59 = vpop.xlane.xlu0 %1543  ;;  %v1541_v60 = vpop.xlane.xlu1 %1540 }
 0xdcb   :  { %v1547_v62 = vsub.f32 %v1535_v20, %v1544_v59  ;;  %v1546_v8 = vsub.f32 %v1534_v61, %v1541_v60 }
 0xdcd   :  { %v1552_v6 = vmul.f32 1.442695, %v1547_v62  ;;  %v1550_v43 = vmul.f32 1.442695, %v1546_v8 }
 0xdce   :  { %v1716_v7 = vpop.xlane.xlu1 %1715 }
 0xdcf   :  { %3141 = vpow2.f32 %v1552_v6  ;;  %v1719_v26 = vsub.f32 %v1707_v46, %v1716_v7 }
 0xdd0   :  { %v1710_v11 = vpop.xlane.xlu0 %1709  ;;  %3143 = vpow2.f32 %v1548_v4  ;;  %v1805_v4 = vld [vmem:[%s3968_s5 + $0x8] sm:$0xff] }
 0xdd1   :  { %v1724_v12 = vmul.f32 1.442695, %v1719_v26  ;;  %v1717_v42 = vsub.f32 %v1705_v41, %v1710_v11  ;;  %v1808_v7 = vpack.c.bf16 %v1805_v4, %v1805_v4 }
 0xdd3   :  { %3145 = vpow2.f32 %v1724_v12  ;;  %v1720_v14 = vmul.f32 1.442695, %v1717_v42  ;;  %v1816_v11 = vsel %vm560_vm6, %v1808_v7, 0  ;;  %v1633_v42 = vld [vmem:[%s3968_s5] sm:$0xff] }
 0xdd4   :  { %v1713_v15 = vpop.xlane.xlu0 %1712 }
 0xdd5   :  { %3147 = vpow2.f32 %v1720_v14  ;;  %v1718_v17 = vsub.f32 %v1706_v50, %v1713_v15  ;;  %v1636_v14 = vpack.c.bf16 %v1633_v42, %v1633_v42 }
 0xdd6   :  { %3149 = vpow2.f32 %v1550_v43 }
 0xdd7   :  { %v1722_v18 = vmul.f32 1.442695, %v1718_v17  ;;  %3044 = vmatprep.subr.msk.bf16.mxu0 %vm560_vm6, %v1636_v14  ;;  %v1873_v43 = vsel %vm560_vm6, %v1636_v14, 0 }
 0xdd8   :  { %2950 = vmatpush3.bf16.msra.mxu0 %v1873_v43 }
 0xdd9   :  { %3151 = vpow2.f32 %v1722_v18 }
 0xddc   :  { %v3142_v21 = vpop.eup %3141 }
 0xddd   :  { %v1560_v22 = vsel %vm283_vm4, %v3142_v21, 0.0  ;;  %v3144_v25 = vpop.eup %3143 }
 0xdde   :  { %1561 = vadd.xlane.f32.xlu0 %v1560_v22  ;;  %v1554_v30 = vsel %vm276_vm3, %v3144_v25, 0.0 }
 0xde0   :  { %v3770_v28 = vpop.eup %3145 }
 0xde1   :  { %v1732_v1 = vsel %vm283_vm4, %v3770_v28, 0.0 }
 0xde2   :  { %v3148_v2 = vpop.eup %3147  ;;  %1555 = vadd.xlane.f32.xlu0 %v1554_v30  ;;  %1733 = vadd.xlane.f32.xlu1 %v1732_v1 }
 0xde3   :  { %v3150_v31 = vpop.eup %3149  ;;  %v1726_v32 = vsel %vm276_vm3, %v3148_v2, 0.0 }
 0xde4   :  { %v1557_v29 = vsel %vm276_vm3, %v3150_v31, 0.0 }
 0xde6   :  { %v3152_v33 = vpop.eup %3151  ;;  %1727 = vadd.xlane.f32.xlu1 %v1726_v32 }
 0xde7   :  { %v1729_v34 = vsel %vm276_vm3, %v3152_v33, 0.0 }
 0xde8   :  { %1730 = vadd.xlane.f32.xlu0 %v1729_v34 }
 0xdea   :  { %1558 = vadd.xlane.f32.xlu1 %v1557_v29 }
 0xdfb   :  { %1571 = vrot.lane.b32.xlu1 %v3714_v54, %s3224_s18 }
 0xdfe   :  { %1573 = vrot.lane.b32.xlu0 %v3710_v47, %s3224_s18 }
 0xdff   :  { %1745 = vrot.lane.b32.xlu1 %v3710_v47, %s3220_s30 }
 0xe02   :  { %1929 = vrot.lane.b32.xlu0 %v3710_v47, %s3221_s14 }
 0xe03   :  { %1743 = vrot.lane.b32.xlu1 %v3714_v54, %s3220_s30 }
 0xe06   :  { %1923 = vrot.lane.b32.xlu0 %v3714_v54, %s3222_s15 }
 0xe07   :  { %1927 = vrot.lane.b32.xlu1 %v3714_v54, %s3221_s14 }
 0xe0a   :  { %2161 = vrot.lane.b32.xlu0 %v3710_v47, %s3225_s19 }
 0xe0b   :  { %1925 = vrot.lane.b32.xlu1 %v3710_v47, %s3222_s15 }
 0xe0e   :  { %2155 = vrot.lane.b32.xlu0 %v3714_v54, %s3226_s20 }
 0xe0f   :  { %2159 = vrot.lane.b32.xlu1 %v3714_v54, %s3225_s19 }
 0xe13   :  { %2157 = vrot.lane.b32.xlu1 %v3710_v47, %s3226_s20 }
 0xe67   :  { %v1562_v36 = vpop.xlane.xlu0 %1561 }
 0xe68   :  { %3153 = vrcp.f32 %v1562_v36 }
 0xe6b   :  { %v1734_v37 = vpop.xlane.xlu1 %1733  ;;  %v1556_v38 = vpop.xlane.xlu0 %1555 }
 0xe6c   :  { %3155 = vrcp.f32 %v1556_v38 }
 0xe6f   :  { %v1728_v39 = vpop.xlane.xlu1 %1727 }
 0xe71   :  { %v1731_v20 = vpop.xlane.xlu0 %1730 }
 0xe72   :  { %3157 = vrcp.f32 %v1731_v20 }
 0xe73   :  { %3159 = vrcp.f32 %v1728_v39  ;;  %v1559_v40 = vpop.xlane.xlu1 %1558 }
 0xe74   :  { %3161 = vrcp.f32 %v1559_v40 }
 0xe75   :  { %v1574_v56 = vpop.permute.xlu0 %1573  ;;  %3163 = vrcp.f32 %v1734_v37  ;;  %v3154_v46 = vpop.eup %3153 }
 0xe76   :  { %v1583_v61 = vand.u32 %v1574_v56, %v3408_v52  ;;  %v1568_v55 = vmul.f32 %v3154_v46, %v3142_v21 }
 0xe77   :  { %v1572_v35 = vpop.permute.xlu1 %1571 }
 0xe78   :  { %2919 = vmatprep.subr.bf16.mxu1 %v1583_v61  ;;  %v1570_v59 = vpack.c.bf16 %v1568_v55, %v1568_v55 }
 0xe79   :  { %2920 = vmatpush3.bf16.msra.mxu1 %v1583_v61  ;;  %v3156_v48 = vpop.eup %3155  ;;  %v1930_v12 = vpop.permute.xlu0 %1929 }
 0xe7a   :  { %2921 = vmatprep.subr.bf16.mxu1 %v1572_v35  ;;  %v1566_v57 = vmul.f32 %v3156_v48, %v3144_v25 }
 0xe7b   :  { %v1746_v45 = vpop.permute.xlu1 %1745 }
 0xe7c   :  { %v1755_v0 = vand.u32 %v1746_v45, %v3408_v52 }
 0xe7d   :  { %2922 = vmatpush3.bf16.msra.mxu1 %v1572_v35  ;;  %v1924_v34 = vpop.permute.xlu0 %1923 }
 0xe7e   :  { %2935 = vmatprep.subr.bf16.mxu1 %v1755_v0 }
 0xe7f   :  { %v3158_v41 = vpop.eup %3157  ;;  %v1744_v6 = vpop.permute.xlu1 %1743 }
 0xe80   :  { %v3160_v49 = vpop.eup %3159  ;;  %v1739_v58 = vmul.f32 %v3158_v41, %v3152_v33  ;;  %v1941_v33 = vsel %vm212_vm2, %v1930_v12, 0 }
 0xe81   :  { %v3162_v53 = vpop.eup %3161  ;;  %v1738_v51 = vmul.f32 %v3160_v49, %v3148_v2  ;;  %v2162_v37 = vpop.permute.xlu0 %2161 }
 0xe82   :  { %v1567_v50 = vmul.f32 %v3162_v53, %v3150_v31  ;;  %v3164_v60 = vpop.eup %3163  ;;  %v2173_v39 = vsel %vm212_vm2, %v2162_v37, 0 }
 0xe83   :  { %v1741_v62 = vpack.c.bf16 %v1739_v58, %v1738_v51  ;;  %v1740_v26 = vmul.f32 %v3164_v60, %v3770_v28  ;;  %v1928_v29 = vpop.permute.xlu1 %1927 }
 0xe84   :  { %v1569_v44 = vpack.c.bf16 %v1567_v50, %v1566_v57  ;;  %v1938_v36 = vsel %vm212_vm2, %v1928_v29, 0 }
 0xe85   :  { %v1742_v8 = vpack.c.bf16 %v1740_v26, %v1740_v26  ;;  %v2156_v20 = vpop.permute.xlu0 %2155 }
 0xe86   :  { %2923 = vmatprep.mubr.msk.bf16.mxu1 %vm276_vm3, %v1569_v44 }
 0xe87   :  { %2924 = vmatmul.mubr.msk.bf16.vlgmr.msra.gmra.mxu1 %vm276_vm3, %v1570_v59  ;;  %v1926_v38 = vpop.permute.xlu1 %1925 }
 0xe88   :  { %2936 = vmatpush3.bf16.msra.mxu1 %v1755_v0  ;;  %2939 = vmatprep.mubr.msk.bf16.mxu1 %vm276_vm3, %v1741_v62 }
 0xe89   :  { %2937 = vmatprep.subr.bf16.mxu1 %v1744_v6 }
 0xe8b   :  { %v2160_v40 = vpop.permute.xlu1 %2159 }
 0xe8c   :  { %2938 = vmatpush3.bf16.msra.mxu1 %v1744_v6  ;;  %v2170_v56 = vsel %vm212_vm2, %v2160_v40, 0 }
 0xe8d   :  { %3043 = vmatprep.subr.msk.bf16.mxu1 %vm560_vm6, %v1808_v7 }
 0xe8f   :  { %2940 = vmatmul.mubr.msk.bf16.vlgmr.msra.gmra.mxu1 %vm276_vm3, %v1742_v8  ;;  %v2158_v61 = vpop.permute.xlu1 %2157 }
 0xe90   :  { %2944 = vmatpush3.bf16.msra.mxu1 %v1816_v11 }
 0xe91   :  { %3045 = vmatprep.subr.msk.bf16.mxu1 %vm212_vm2, %v1930_v12 }
 0xf47   :  { %v2925_v15 = vpop.f32.mrf.mxu1 }
 0xf48   :  { %v1635_v25 = vpack.c.bf16 %v2925_v15, %v2925_v15 }
 0xf49   :  { %v1619_v17 = vpop.f32.mrf.mxu1 }
 0xf4b   :  { %v2926_v18 = vpop.f32.mrf.mxu1 }
 0xf4d   :  { %v1622_v21 = vpop.f32.mrf.mxu1 }
 0xf4e   :  { %v1634_v22 = vpack.c.bf16 %v1622_v21, %v1619_v17 }
 0xf4f   :  { %v2941_v28 = vpop.f32.mrf.mxu1 }
 0xf50   :  { %2951 = vmatprep.mubr.msk.bf16.mxu0 %vm212_vm2, %v1634_v22  ;;  %v1807_v32 = vpack.c.bf16 %v2941_v28, %v2941_v28 }
 0xf51   :  { %v1791_v30 = vpop.f32.mrf.mxu1  ;;  %2952 = vmatmul.mubr.msk.bf16.vlgmr.msra.gmra.mxu0 %vm212_vm2, %v1635_v25 }
 0xf53   :  { %v2942_v1 = vpop.f32.mrf.mxu1 }
 0xf55   :  { %v1794_v2 = vpop.f32.mrf.mxu1 }
 0xf56   :  { %v1806_v31 = vpack.c.bf16 %v1794_v2, %v1791_v30 }
 0xf58   :  { %2945 = vmatprep.mubr.msk.bf16.mxu1 %vm212_vm2, %v1806_v31 }
 0xf59   :  { %2946 = vmatmul.mubr.msk.bf16.vlgmr.msra.gmra.mxu1 %vm212_vm2, %v1807_v32 }
 0xf5a   :  { %2956 = vmatpush3.bf16.xpose.msra.mxu1 %v1941_v33  ;;  %2959 = vmatprep.mubr.msk.bf16.mxu1 %vm212_vm2, %v1924_v34 }
 0xf5b   :  { %3046 = vmatprep.subr.msk.bf16.mxu1 %vm212_vm2, %v1928_v29 }
 0xf62   :  { %2958 = vmatpush3.bf16.xpose.msra.mxu1 %v1938_v36 }
 0xf63   :  { %3048 = vmatprep.subr.msk.bf16.mxu1 %vm212_vm2, %v2162_v37 }
 0xf69   :  { %2960 = vmatmul.mubr.msk.bf16.vlgmr.msra.gmra.mxu1 %vm212_vm2, %v1926_v38 }
 0xf6a   :  { %2978 = vmatpush3.bf16.xpose.msra.mxu1 %v2173_v39  ;;  %2981 = vmatprep.mubr.msk.bf16.mxu1 %vm212_vm2, %v2156_v20 }
 0xf6b   :  { %3049 = vmatprep.subr.msk.bf16.mxu1 %vm212_vm2, %v2160_v40 }
 0xf72   :  { %2980 = vmatpush3.bf16.xpose.msra.mxu1 %v2170_v56 }
 0xf73   :  { %2999 = vmatprep.subr.bf16.mxu1 %v3584_v10 }
 0xf79   :  { %2982 = vmatmul.mubr.msk.bf16.vlgmr.msra.gmra.mxu1 %vm212_vm2, %v2158_v61 }
 0xf7a   :  { %3000 = vmatpush3.bf16.msra.mxu1 %v3584_v10 }
 0xf7b   :  { %3001 = vmatprep.subr.bf16.mxu1 %v3594_v13 }
 0xf7e   :  { %3002 = vmatpush3.bf16.msra.mxu1 %v3594_v13 }
0x1011   :  { %v2953_v35 = vpop.f32.mrf.mxu0 }
0x1013   :  { %v1909_v45 = vpop.f32.mrf.mxu0 }
0x1015   :  { %v2954_v0 = vpop.f32.mrf.mxu0 }
0x1019   :  { %v2947_v46 = vpop.f32.mrf.mxu1 }
0x101a   :  { %v3839_v48 = vadd.f32 %v2953_v35, %v2947_v46 }
0x101b   :  { %v1852_v41 = vpop.f32.mrf.mxu1 }
0x101c   :  { %v3841_v49 = vadd.f32 %v1909_v45, %v1852_v41 }
0x101d   :  { %v2948_v53 = vpop.f32.mrf.mxu1 }
0x101f   :  { %v3843_v55 = vpop.f32.mrf.mxu1 }
0x1029   :  { %v2961_v57 = vpop.f32.mrf.mxu1 }
0x102a   :  { %v1993_v44 = vmul.f32 0.35355338, %v2961_v57 }
0x102b   :  { %v1977_v50 = vpop.f32.mrf.mxu1 }
0x102c   :  { %v1991_v58 = vmul.f32 0.35355338, %v1977_v50  ;;  %v2000_v60 = vsel %vm283_vm4, %v1993_v44, -inf }
0x102d   :  { %v2962_v10 = vpop.f32.mrf.mxu1 }
0x102e   :  { %v1994_v51 = vsel %vm276_vm3, %v1991_v58, -inf }
0x102f   :  { %1995 = vmax.xlane.f32.xlu0 %v1994_v51  ;;  %v1980_v13 = vpop.f32.mrf.mxu1 }
0x1030   :  { %v1992_v59 = vmul.f32 0.35355338, %v1980_v13 }
0x1032   :  { %v1997_v62 = vsel %vm276_vm3, %v1992_v59, -inf }
0x1033   :  { %2001 = vmax.xlane.f32.xlu0 %v2000_v60  ;;  %1998 = vmax.xlane.f32.xlu1 %v1997_v62 }
0x1039   :  { %v2983_v4 = vpop.f32.mrf.mxu1 }
0x103a   :  { %v2225_v33 = vmul.f32 0.35355338, %v2983_v4 }
0x103b   :  { %v2209_v6 = vpop.f32.mrf.mxu1 }
0x103c   :  { %v2223_v2 = vmul.f32 0.35355338, %v2209_v6  ;;  %v2232_v29 = vsel %vm283_vm4, %v2225_v33, -inf }
0x103d   :  { %v2984_v7 = vpop.f32.mrf.mxu1 }
0x103e   :  { %v2226_v32 = vsel %vm276_vm3, %v2223_v2, -inf }
0x103f   :  { %v2212_v1 = vpop.f32.mrf.mxu1 }
0x1040   :  { %v2224_v31 = vmul.f32 0.35355338, %v2212_v1 }
0x1042   :  { %v2229_v34 = vsel %vm276_vm3, %v2224_v31, -inf }
0x10b8   :  { %v1996_v26 = vpop.xlane.xlu0 %1995 }
0x10b9   :  { %v2003_v8 = vsub.f32 %v1991_v58, %v1996_v26 }
0x10bb   :  { %v2006_v11 = vmul.f32 1.442695, %v2003_v8 }
0x10bc   :  { %v2002_v12 = vpop.xlane.xlu0 %2001  ;;  %v1999_v42 = vpop.xlane.xlu1 %1998 }
0x10bd   :  { %3165 = vpow2.f32 %v2006_v11  ;;  %v2005_v14 = vsub.f32 %v1993_v44, %v2002_v12  ;;  %v2004_v43 = vsub.f32 %v1992_v59, %v1999_v42  ;;  %v2091_v11 = vld [vmem:[%s3968_s5 + $0x10] sm:$0xff] }
0x10be   :  { %v2094_v12 = vpack.c.bf16 %v2091_v11, %v2091_v11 }
0x10bf   :  { %v2010_v15 = vmul.f32 1.442695, %v2005_v14  ;;  %v2008_v17 = vmul.f32 1.442695, %v2004_v43  ;;  %v1912_v14 = vpop.f32.mrf.mxu0 }
0x10c0   :  { %v2102_v42 = vsel %vm560_vm6, %v2094_v12, 0 }
0x10c1   :  { %3167 = vpow2.f32 %v2010_v15 }
0x10c2   :  { %3169 = vpow2.f32 %v2008_v17 }
0x10ca   :  { %v3166_v18 = vpop.eup %3165 }
0x10cb   :  { %v2012_v21 = vsel %vm276_vm3, %v3166_v18, 0.0 }
0x10cc   :  { %2013 = vadd.xlane.f32.xlu0 %v2012_v21 }
0x10ce   :  { %v3168_v22 = vpop.eup %3167 }
0x10cf   :  { %v3170_v25 = vpop.eup %3169  ;;  %v2018_v28 = vsel %vm283_vm4, %v3168_v22, 0.0 }
0x10d0   :  { %2019 = vadd.xlane.f32.xlu1 %v2018_v28  ;;  %v2015_v30 = vsel %vm276_vm3, %v3170_v25, 0.0 }
0x10d1   :  { %2016 = vadd.xlane.f32.xlu0 %v2015_v30 }
0x10e1   :  { %2029 = vrot.lane.b32.xlu1 %v3714_v54, %s3227_s22 }
0x10e7   :  { %2031 = vrot.lane.b32.xlu0 %v3710_v47, %s3227_s22  ;;  %s3979_s22 = smov 40  }
0x1105   :  { %2227 = vmax.xlane.f32.xlu1 %v2226_v32 }
0x1106   :  { %2230 = vmax.xlane.f32.xlu0 %v2229_v34 }
0x110a   :  { %2233 = vmax.xlane.f32.xlu0 %v2232_v29 }
0x1155   :  { %v2014_v36 = vpop.xlane.xlu0 %2013 }
0x1156   :  { %3171 = vrcp.f32 %v2014_v36 }
0x1159   :  { %v2020_v37 = vpop.xlane.xlu1 %2019 }
0x115a   :  { %v2017_v38 = vpop.xlane.xlu0 %2016  ;;  %3173 = vrcp.f32 %v2020_v37  ;;  %v2323_v37 = vld [vmem:[%s3968_s5 + $0x18] sm:$0xff] }
0x115b   :  { %3175 = vrcp.f32 %v2017_v38  ;;  %v2326_v38 = vpack.c.bf16 %v2323_v37, %v2323_v37 }
0x115d   :  { %v2030_v40 = vpop.permute.xlu1 %2029 }
0x115e   :  { %v2032_v39 = vpop.permute.xlu0 %2031 }
0x115f   :  { %v2041_v20 = vand.u32 %v2032_v39, %v3408_v52  ;;  %v2334_v39 = vsel %vm560_vm6, %v2326_v38, 0 }
0x1161   :  { %2963 = vmatprep.subr.bf16.mxu0 %v2041_v20 }
0x1162   :  { %2964 = vmatpush3.bf16.msra.mxu0 %v2041_v20 }
0x1163   :  { %2965 = vmatprep.subr.bf16.mxu0 %v2030_v40  ;;  %v3172_v56 = vpop.eup %3171 }
0x1164   :  { %v2024_v0 = vmul.f32 %v3172_v56, %v3166_v18 }
0x1166   :  { %2966 = vmatpush3.bf16.msra.mxu0 %v2030_v40 }
0x1167   :  { %v3174_v61 = vpop.eup %3173  ;;  %3047 = vmatprep.subr.msk.bf16.mxu0 %vm560_vm6, %v2094_v12 }
0x1168   :  { %v3176_v35 = vpop.eup %3175  ;;  %v2026_v45 = vmul.f32 %v3174_v61, %v3168_v22 }
0x1169   :  { %v2025_v46 = vmul.f32 %v3176_v35, %v3170_v25 }
0x116a   :  { %v2028_v41 = vpack.c.bf16 %v2026_v45, %v2026_v45  ;;  %v1913_v45 = vadd.f32 %v1912_v14, %v3843_v55 }
0x116b   :  { %v2027_v53 = vpack.c.bf16 %v2025_v46, %v2024_v0 }
0x116d   :  { %2967 = vmatprep.mubr.msk.bf16.mxu0 %vm276_vm3, %v2027_v53 }
0x116e   :  { %2968 = vmatmul.mubr.msk.bf16.vlgmr.msra.gmra.mxu0 %vm276_vm3, %v2028_v41 }
0x116f   :  { %2972 = vmatpush3.bf16.msra.mxu0 %v2102_v42 }
0x118e   :  { %v2228_v50 = vpop.xlane.xlu1 %2227 }
0x118f   :  { %v2231_v57 = vpop.xlane.xlu0 %2230  ;;  %v2235_v44 = vsub.f32 %v2223_v2, %v2228_v50 }
0x1190   :  { %v2236_v58 = vsub.f32 %v2224_v31, %v2231_v57 }
0x1191   :  { %v2238_v59 = vmul.f32 1.442695, %v2235_v44 }
0x1192   :  { %v2240_v10 = vmul.f32 1.442695, %v2236_v58 }
0x1193   :  { %v2234_v51 = vpop.xlane.xlu0 %2233 }
0x1194   :  { %3177 = vpow2.f32 %v2240_v10  ;;  %v2237_v13 = vsub.f32 %v2225_v33, %v2234_v51 }
0x1196   :  { %v2242_v60 = vmul.f32 1.442695, %v2237_v13  ;;  %v3213_v13 = vld [vmem:[%s3963_s0 + $0x20] sm:$0xff] }
0x1198   :  { %3179 = vpow2.f32 %v2242_v60 }
0x1199   :  { %3181 = vpow2.f32 %v2238_v59 }
0x11a1   :  { %v3178_v62 = vpop.eup %3177 }
0x11a2   :  { %v2247_v4 = vsel %vm276_vm3, %v3178_v62, 0.0 }
0x11a3   :  { %2248 = vadd.xlane.f32.xlu0 %v2247_v4 }
0x11a5   :  { %v3180_v6 = vpop.eup %3179 }
0x11a6   :  { %v2250_v7 = vsel %vm283_vm4, %v3180_v6, 0.0  ;;  %v3182_v26 = vpop.eup %3181 }
0x11a7   :  { %2251 = vadd.xlane.f32.xlu1 %v2250_v7  ;;  %v2244_v8 = vsel %vm276_vm3, %v3182_v26, 0.0 }
0x11ab   :  { %2245 = vadd.xlane.f32.xlu1 %v2244_v8 }
0x11b9   :  { %2263 = vrot.lane.b32.xlu0 %v3710_v47, %s3979_s22 }
0x11bc   :  { %2261 = vrot.lane.b32.xlu1 %v3714_v54, %s3979_s22 }
0x122c   :  { %v2249_v43 = vpop.xlane.xlu0 %2248 }
0x122e   :  { %v2969_v15 = vpop.f32.mrf.mxu0 }
0x122f   :  { %v2093_v2 = vpack.c.bf16 %v2969_v15, %v2969_v15 }
0x1230   :  { %v2264_v17 = vpop.permute.xlu0 %2263  ;;  %v2077_v18 = vpop.f32.mrf.mxu0 }
0x1231   :  { %v2273_v21 = vand.u32 %v2264_v17, %v3408_v52  ;;  %v2252_v22 = vpop.xlane.xlu1 %2251 }
0x1232   :  { %v2970_v25 = vpop.f32.mrf.mxu0  ;;  %3183 = vrcp.f32 %v2252_v22 }
0x1233   :  { %2985 = vmatprep.subr.bf16.mxu0 %v2273_v21  ;;  %3185 = vrcp.f32 %v2249_v43 }
0x1234   :  { %v2080_v28 = vpop.f32.mrf.mxu0 }
0x1235   :  { %v2092_v30 = vpack.c.bf16 %v2080_v28, %v2077_v18  ;;  %v2246_v1 = vpop.xlane.xlu1 %2245 }
0x1236   :  { %3187 = vrcp.f32 %v2246_v1 }
0x1237   :  { %2973 = vmatprep.mubr.msk.bf16.mxu0 %vm212_vm2, %v2092_v30 }
0x1238   :  { %2974 = vmatmul.mubr.msk.bf16.vlgmr.msra.gmra.mxu0 %vm212_vm2, %v2093_v2 }
0x1239   :  { %2986 = vmatpush3.bf16.msra.mxu0 %v2273_v21  ;;  %v2262_v47 = vpop.permute.xlu1 %2261 }
0x123a   :  { %2987 = vmatprep.subr.bf16.mxu0 %v2262_v47 }
0x123d   :  { %2988 = vmatpush3.bf16.msra.mxu0 %v2262_v47 }
0x123e   :  { %3050 = vmatprep.subr.msk.bf16.mxu0 %vm560_vm6, %v2326_v38 }
0x123f   :  { %v3184_v54 = vpop.eup %3183 }
0x1240   :  { %v3186_v52 = vpop.eup %3185  ;;  %v2258_v32 = vmul.f32 %v3184_v54, %v3180_v6 }
0x1241   :  { %v2257_v34 = vmul.f32 %v3186_v52, %v3178_v62 }
0x1242   :  { %v2260_v36 = vpack.c.bf16 %v2258_v32, %v2258_v32 }
0x1243   :  { %v3188_v31 = vpop.eup %3187 }
0x1244   :  { %v2256_v33 = vmul.f32 %v3188_v31, %v3182_v26 }
0x1246   :  { %v2259_v29 = vpack.c.bf16 %v2257_v34, %v2256_v33 }
0x1248   :  { %2989 = vmatprep.mubr.msk.bf16.mxu0 %vm276_vm3, %v2259_v29 }
0x1249   :  { %2990 = vmatmul.mubr.msk.bf16.vlgmr.msra.gmra.mxu0 %vm276_vm3, %v2260_v36 }
0x124a   :  { %2994 = vmatpush3.bf16.msra.mxu0 %v2334_v39  ;;  %v3214_v39 = vld [vmem:[%s3971_s7] ss:$0 sm:$0xff] }
0x124b   :  { %3007 = vmatprep.subr.bf16.mxu0 %v3630_v24 }
0x12f8   :  { %v2975_v20 = vpop.f32.mrf.mxu0 }
0x12f9   :  { %v2154_v40 = vadd.f32 %v2975_v20, %v3839_v48 }
0x12fa   :  { %v2138_v56 = vpop.f32.mrf.mxu0 }
0x12fb   :  { %v2152_v61 = vadd.f32 %v2138_v56, %v3841_v49 }
0x12fc   :  { %v2976_v35 = vpop.f32.mrf.mxu0 }
0x12fd   :  { %v3215_v35 = vld [vmem:[%s3972_s8] ss:$0 sm:$0xff] }
0x12fe   :  { %v2141_v0 = vpop.f32.mrf.mxu0 }
0x12ff   :  { %v2153_v46 = vadd.f32 %v2141_v0, %v1913_v45 }
0x1309   :  { %v2991_v41 = vpop.f32.mrf.mxu0 }
0x130a   :  { %v2325_v10 = vpack.c.bf16 %v2991_v41, %v2991_v41 }
0x130b   :  { %v2309_v53 = vpop.f32.mrf.mxu0 }
0x130d   :  { %v2992_v57 = vpop.f32.mrf.mxu0 }
0x130f   :  { %v2312_v50 = vpop.f32.mrf.mxu0 }
0x1310   :  { %v2324_v58 = vpack.c.bf16 %v2312_v50, %v2309_v53 }
0x1312   :  { %2995 = vmatprep.mubr.msk.bf16.mxu0 %vm212_vm2, %v2324_v58  ;;  %v3216_v58 = vld [vmem:[%s3974_s10] ss:$0 sm:$0xff] }
0x1313   :  { %2996 = vmatmul.mubr.msk.bf16.vlgmr.msra.gmra.mxu0 %vm212_vm2, %v2325_v10 }
0x1314   :  { %3008 = vmatpush3.bf16.msra.mxu0 %v3630_v24 }
0x1315   :  { %3009 = vmatprep.subr.bf16.mxu0 %v3640_v9 }
0x1318   :  { %3010 = vmatpush3.bf16.msra.mxu0 %v3640_v9 }
0x1319   :  { %3011 = vmatprep.subr.bf16.mxu0 %v3650_v63 }
0x131c   :  { %3012 = vmatpush3.bf16.msra.mxu0 %v3650_v63 }
0x131d   :  { %3013 = vmatprep.subr.bf16.mxu0 %v3660_v3 }
0x1320   :  { %3014 = vmatpush3.bf16.msra.mxu0 %v3660_v3 }
0x1321   :  { %3015 = vmatprep.subr.bf16.mxu0 %v3670_v16 }
0x1324   :  { %3016 = vmatpush3.bf16.msra.mxu0 %v3670_v16  ;;  %v3210_v16 = vld [vmem:[%s3963_s0 + $0x18] sm:$0xff] }
0x1325   :  { %3017 = vmatprep.subr.bf16.mxu0 %v3680_v19 }
0x1328   :  { %3018 = vmatpush3.bf16.msra.mxu0 %v3680_v19  ;;  %v3211_v19 = vld [vmem:[%s3969_s6] ss:$0 sm:$0xff] }
0x1329   :  { %3019 = vmatprep.subr.bf16.mxu0 %v3690_v5 }
0x132c   :  { %3020 = vmatpush3.bf16.msra.mxu0 %v3690_v5 }
0x132d   :  { %3021 = vmatprep.subr.bf16.mxu0 %v3700_v27 }
0x1330   :  { %3022 = vmatpush3.bf16.msra.mxu0 %v3700_v27  ;;  %v3212_v27 = vld [vmem:[%s3963_s0 + $0x28] sm:$0x1] }
0x13d3   :  { %v2997_v24 = vpop.f32.mrf.mxu0 }
0x13d4   :  { %v2386_v48 = vadd.f32 %v2997_v24, %v2154_v40 }
0x13d5   :  { %v2370_v9 = vpop.f32.mrf.mxu0 }
0x13d6   :  { %v2384_v63 = vadd.f32 %v2370_v9, %v2152_v61  ;;  %v2389_v51 = vadd.f32 %v3212_v27, %v2386_v48 }
0x13d7   :  { %v2998_v3 = vpop.f32.mrf.mxu0 }
0x13d8   :  { %v2387_v49 = vadd.f32 %v3210_v16, %v2384_v63  ;;  %v3922_v4 = vadd.f32 %v3211_v19, %v2389_v51 }
0x13d9   :  { %v2373_v55 = vpop.f32.mrf.mxu0 }
0x13da   :  { %v3910_v5 = vadd.f32 %v3211_v19, %v2387_v49  ;;  %v2385_v44 = vadd.f32 %v2373_v55, %v2153_v46  ;;  %v2399_v7 = vsel %vm87_vm1, %v3922_v4, 0.0 }
0x13dc   :  { %v2388_v59 = vadd.f32 %v3213_v13, %v2385_v44  ;;  %v2393_v60 = vsel %vm80_vm0, %v3910_v5, 0.0 }
0x13dd   :  { %2394 = vadd.xlane.f32.xlu1 %v2393_v60 }
0x13de   :  { %v3920_v62 = vadd.f32 %v3211_v19, %v2388_v59 }
0x13e0   :  { %v2396_v6 = vsel %vm80_vm0, %v3920_v62, 0.0 }
0x13e1   :  { %2397 = vadd.xlane.f32.xlu0 %v2396_v6 }
0x13e5   :  { %2400 = vadd.xlane.f32.xlu0 %v2399_v7 }
0x1466   :  { %v2395_v26 = vpop.xlane.xlu1 %2394 }
0x1467   :  { %v2402_v8 = vmul.f32 0.03125, %v2395_v26 }
0x1469   :  { %v2405_v11 = vsub.f32 %v3910_v5, %v2402_v8 }
0x146a   :  { %v2398_v12 = vpop.xlane.xlu0 %2397 }
0x146b   :  { %v2403_v42 = vmul.f32 0.03125, %v2398_v12  ;;  %v2408_v14 = vmul.f32 %v2405_v11, %v2405_v11 }
0x146d   :  { %v2406_v43 = vsub.f32 %v3920_v62, %v2403_v42  ;;  %v2411_v15 = vsel %vm80_vm0, %v2408_v14, 0.0 }
0x146e   :  { %2412 = vadd.xlane.f32.xlu1 %v2411_v15  ;;  %v2401_v17 = vpop.xlane.xlu0 %2400 }
0x146f   :  { %v2404_v18 = vmul.f32 0.03125, %v2401_v17  ;;  %v2409_v21 = vmul.f32 %v2406_v43, %v2406_v43 }
0x1471   :  { %v2407_v22 = vsub.f32 %v3922_v4, %v2404_v18  ;;  %v2414_v25 = vsel %vm80_vm0, %v2409_v21, 0.0 }
0x1472   :  { %2415 = vadd.xlane.f32.xlu0 %v2414_v25 }
0x1473   :  { %v2410_v28 = vmul.f32 %v2407_v22, %v2407_v22 }
0x1475   :  { %v2417_v30 = vsel %vm87_vm1, %v2410_v28, 0.0 }
0x1476   :  { %2418 = vadd.xlane.f32.xlu1 %v2417_v30 }
0x14f7   :  { %v2413_v1 = vpop.xlane.xlu1 %2412 }
0x14f8   :  { %v2420_v2 = vmul.f32 0.03125, %v2413_v1 }
0x14fa   :  { %v2423_v47 = vadd.f32 1e-05, %v2420_v2 }
0x14fb   :  { %v2416_v54 = vpop.xlane.xlu0 %2415 }
0x14fc   :  { %3189 = vrsqrt.f32 %v2423_v47  ;;  %v2421_v52 = vmul.f32 0.03125, %v2416_v54 }
0x14fe   :  { %v2424_v31 = vadd.f32 1e-05, %v2421_v52 }
0x14ff   :  { %v2419_v32 = vpop.xlane.xlu1 %2418 }
0x1500   :  { %3191 = vrsqrt.f32 %v2424_v31  ;;  %v2422_v33 = vmul.f32 0.03125, %v2419_v32 }
0x1502   :  { %v2425_v34 = vadd.f32 1e-05, %v2422_v33 }
0x1504   :  { %3193 = vrsqrt.f32 %v2425_v34 }
0x1509   :  { %v3190_v29 = vpop.eup %3189 }
0x150a   :  { %v2429_v36 = vmul.f32 %v3190_v29, %v2405_v11 }
0x150c   :  { %v2432_v20 = vmul.f32 %v3214_v39, %v2429_v36 }
0x150d   :  { %v3192_v37 = vpop.eup %3191 }
0x150e   :  { %v2430_v38 = vmul.f32 %v3192_v37, %v2406_v43  ;;  %v2435_v45 = vadd.f32 %v3215_v35, %v2432_v20 }
0x1510   :  { %v2433_v40 = vmul.f32 %v3214_v39, %v2430_v38 }
0x1511   :  { %v3194_v56 = vpop.eup %3193 }
0x1512   :  { %v2431_v61 = vmul.f32 %v3194_v56, %v2407_v22  ;;  %v2436_v0 = vadd.f32 %v3215_v35, %v2433_v40 }
0x1514   :  { %v2438_v46 = vpack.c.bf16 %v2436_v0, %v2435_v45  ;;  %v2434_v41 = vmul.f32 %v3214_v39, %v2431_v61 }
0x1516   :  { %3003 = vmatprep.mubr.msk.bf16.mxu1 %vm80_vm0, %v2438_v46  ;;  %v2437_v53 = vadd.f32 %v3215_v35, %v2434_v41 }
0x1518   :  { %v2439_v57 = vpack.c.bf16 %v2437_v53, %v2437_v53 }
0x151a   :  { %3004 = vmatmul.mubr.msk.bf16.vlgmr.msra.gmra.mxu1 %vm80_vm0, %v2439_v57 }
0x15da   :  { %v3005_v50 = vpop.f32.mrf.mxu1 }
0x15db   :  { %v2489_v10 = vadd.f32 %v3216_v58, %v3005_v50 }
0x15dc   :  { %v2480_v24 = vpop.f32.mrf.mxu1 }
0x15dd   :  { %v2651_v9 = vmul.f32 -1.702, %v2489_v10  ;;  %v2481_v63 = vadd.f32 %v3216_v58, %v2480_v24 }
0x15de   :  { %v3006_v3 = vpop.f32.mrf.mxu1 }
0x15df   :  { %v2504_v48 = vmul.f32 1.442695, %v2651_v9  ;;  %v2649_v16 = vmul.f32 -1.702, %v2481_v63 }
0x15e0   :  { %v2483_v49 = vpop.f32.mrf.mxu1 }
0x15e1   :  { %3195 = vpow2.f32 %v2504_v48  ;;  %v2500_v55 = vmul.f32 1.442695, %v2649_v16  ;;  %v2484_v19 = vadd.f32 %v3216_v58, %v2483_v49 }
0x15e3   :  { %3197 = vpow2.f32 %v2500_v55  ;;  %v2650_v44 = vmul.f32 -1.702, %v2484_v19 }
0x15e5   :  { %v2502_v27 = vmul.f32 1.442695, %v2650_v44 }
0x15e7   :  { %3199 = vpow2.f32 %v2502_v27 }
0x15ee   :  { %v3196_v51 = vpop.eup %3195 }
0x15ef   :  { %v2508_v59 = vadd.f32 1.0, %v3196_v51 }
0x15f0   :  { %v3198_v13 = vpop.eup %3197 }
0x15f1   :  { %v2506_v60 = vadd.f32 1.0, %v3198_v13  ;;  %3201 = vrcp.f32 %v2508_v59 }
0x15f3   :  { %3203 = vrcp.f32 %v2506_v60 }
0x15f4   :  { %v3200_v6 = vpop.eup %3199 }
0x15f5   :  { %v2507_v7 = vadd.f32 1.0, %v3200_v6 }
0x15f7   :  { %3205 = vrcp.f32 %v2507_v7 }
0x15fe   :  { %v3202_v26 = vpop.eup %3201 }
0x15ff   :  { %v2517_v12 = vmul.f32 %v3202_v26, %v2489_v10 }
0x1600   :  { %v3204_v8 = vpop.eup %3203 }
0x1601   :  { %v2515_v42 = vmul.f32 %v3204_v8, %v2481_v63  ;;  %v2519_v15 = vpack.c.bf16 %v2517_v12, %v2517_v12 }
0x1604   :  { %v3206_v11 = vpop.eup %3205 }
0x1605   :  { %v2516_v14 = vmul.f32 %v3206_v11, %v2484_v19 }
0x1607   :  { %v2518_v43 = vpack.c.bf16 %v2516_v14, %v2515_v42 }
0x1609   :  { %3023 = vmatprep.mubr.bf16.mxu0 %v2518_v43 }
0x160a   :  { %3024 = vmatmul.mubr.bf16.vlgmr.msra.gmra.mxu0 %v2519_v15 }
0x16ca   :  { %v3025_v17 = vpop.f32.mrf.mxu0 }
0x16cb   :  { %v2563_v18 = vadd.f32 %v3025_v17, %v3743_v23 }
0x16cc   :  { %v2554_v21 = vpop.f32.mrf.mxu0 }
0x16cd   :  { %v2570_v22 = vadd.f32 %v2563_v18, %v3922_v4  ;;  %v2555_v25 = vadd.f32 %v3743_v23, %v2554_v21 }
0x16ce   :  { %v3026_v28 = vpop.f32.mrf.mxu0 }
0x16cf   :  { %2654 = vst.msk [vmem:[%s3976_s13 + $0x28] sm:$0x1] %vm87_vm1, %v2570_v22  ;;  %v2568_v30 = vadd.f32 %v2555_v25, %v3910_v5 }
0x16d0   :  { %v2557_v1 = vpop.f32.mrf.mxu0 }
0x16d1   :  { %2652 = vst.msk [vmem:[%s3976_s13 + $0x18] sm:$0xff] %vm80_vm0, %v2568_v30  ;;  %v2558_v2 = vadd.f32 %v3743_v23, %v2557_v1 }
0x16d3   :  { %v2569_v4 = vadd.f32 %v2558_v2, %v3920_v62 }
0x16d5   :  { %2653 = vst.msk [vmem:[%s3976_s13 + $0x20] sm:$0xff] %vm80_vm0, %v2569_v4 }

</bundles_post_ra>
